<compile_context>
chip_gen: v6e
topology: v6e:2x2x1
jax: 0.10.0
libtpu: 0.0.40
codegen_flags: <defaults>
</compile_context>

<pallas_src>
import jax
import jax.numpy as jnp
from jax.experimental import pallas as pl
from jax.experimental.pallas import tpu as pltpu

IN_DIM = 784
IN_PAD = 896            # 7 * 128: lane-aligned K for the first matmul
H1, H2, H3 = 512, 384, 128
OUT_PAD = 128           # head output padded 1 -> 128 lanes (lane-dense vst, full MXU tile)
TB_MAX = 512            # max batch tile (fills the 2x256x256 MXU on v6e/v7x)


def _mlp_kernel(x_ref,
                w1_ref, b1_ref,
                w2_ref, b2_ref,
                w3_ref, b3_ref,
                wh_ref, bh_ref,
                out_ref):
    # x already bf16; bf16 operands on the MXU with f32 accumulation,
    # biases added in f32, ReLU in f32, re-narrow to bf16 for the next matmul.
    x = x_ref[...]

    h = jnp.dot(x, w1_ref[...], preferred_element_type=jnp.float32) + b1_ref[...]
    h = jnp.maximum(h, 0.0).astype(jnp.bfloat16)

    h = jnp.dot(h, w2_ref[...], preferred_element_type=jnp.float32) + b2_ref[...]
    h = jnp.maximum(h, 0.0).astype(jnp.bfloat16)

    h = jnp.dot(h, w3_ref[...], preferred_element_type=jnp.float32) + b3_ref[...]
    h = jnp.maximum(h, 0.0).astype(jnp.bfloat16)

    y = jnp.dot(h, wh_ref[...], preferred_element_type=jnp.float32) + bh_ref[...]
    out_ref[...] = y.astype(out_ref.dtype)   # bf16 store, lane-dense


def _pick_tb(batch):
    """Largest tile <= TB_MAX that keeps the grid length >= 2 when the batch
    allows (so both of v7x's TensorCores get work); 128-aligned."""
    bp = pl.cdiv(max(batch, 1), 128) * 128
    for tb in (512, 256, 128):
        if tb <= TB_MAX and bp >= 2 * tb:
            return tb
    return 128


def discriminator_forward(x, params):
    """x: (B, 784), any float dtype. Returns (B, 1) float32."""
    B = x.shape[0]
    tb = _pick_tb(B)
    Bp = pl.cdiv(B, tb) * tb

    # Fused pad (rows to Bp, cols 784->896) + cast to bf16. In production the
    # upstream producer should emit bf16 directly so no extra HBM round trip
    # is introduced here.
    xp = jnp.pad(x, ((0, Bp - B), (0, IN_PAD - IN_DIM))).astype(jnp.bfloat16)

    w1, b1 = params["w1"], params["b1"]
    w2, b2 = params["w2"], params["b2"]
    w3, b3 = params["w3"], params["b3"]
    wh, bh = params["wh"], params["bh"]

    # Resident (non-tiled) operands: constant block index across the batch grid.
    def resident(a):
        return pl.BlockSpec(a.shape, lambda i: (0,) * a.ndim)

    out = pl.pallas_call(
        _mlp_kernel,
        out_shape=jax.ShapeDtypeStruct((Bp, OUT_PAD), jnp.bfloat16),
        grid=(Bp // tb,),
        in_specs=[
            pl.BlockSpec((tb, IN_PAD), lambda i: (i, 0)),
            resident(w1), resident(b1),
            resident(w2), resident(b2),
            resident(w3), resident(b3),
            resident(wh), resident(bh),
        ],
        out_specs=pl.BlockSpec((tb, OUT_PAD), lambda i: (i, 0)),
        compiler_params=pltpu.CompilerParams(
            dimension_semantics=("parallel",),
            vmem_limit_bytes=32 << 20,   # v5e default scoped VMEM is 16 MiB
        ),
    )(xp, w1, b1, w2, b2, w3, b3, wh, bh)

    return out[:B, :1].astype(jnp.float32)


def init_params(key):
    """nn.Linear-style init (uniform +/- 1/sqrt(fan_in)).

    Weights stored (in, out) in bf16; biases (1, out) in f32.
    w1 rows are zero-padded 784 -> 896; the head layer is zero-padded
    from 1 to OUT_PAD output columns. Zero padding leaves the math exact.
    """
    dims = [(IN_DIM, H1), (H1, H2), (H2, H3), (H3, 1)]
    names = ["1", "2", "3", "h"]
    params = {}
    for (fan_in, fan_out), n in zip(dims, names):
        key, kw, kb = jax.random.split(key, 3)
        bound = 1.0 / jnp.sqrt(fan_in)
        w = jax.random.uniform(kw, (fan_in, fan_out), jnp.float32, -bound, bound)
        b = jax.random.uniform(kb, (1, fan_out), jnp.float32, -bound, bound)
        if n == "1":
            w = jnp.pad(w, ((0, IN_PAD - IN_DIM), (0, 0)))
        if n == "h":
            w = jnp.pad(w, ((0, 0), (0, OUT_PAD - fan_out)))
            b = jnp.pad(b, ((0, 0), (0, OUT_PAD - fan_out)))
        params[f"w{n}"] = w.astype(jnp.bfloat16)
        params[f"b{n}"] = b.astype(jnp.float32)
    return params


def reference_forward(x, params):
    """Pure-JAX reference with the original (unpadded) layer shapes and the
    same bf16-operand / f32-accumulate numerics."""
    h = x.astype(jnp.bfloat16)
    h = jnp.dot(h, params["w1"][:IN_DIM], preferred_element_type=jnp.float32) + params["b1"]
    h = jnp.maximum(h, 0.0).astype(jnp.bfloat16)
    h = jnp.dot(h, params["w2"], preferred_element_type=jnp.float32) + params["b2"]
    h = jnp.maximum(h, 0.0).astype(jnp.bfloat16)
    h = jnp.dot(h, params["w3"], preferred_element_type=jnp.float32) + params["b3"]
    h = jnp.maximum(h, 0.0).astype(jnp.bfloat16)
    y = (jnp.dot(h, params["wh"][:, :1], preferred_element_type=jnp.float32)
         + params["bh"][:, :1])
    return y


if __name__ == "__main__":
    key = jax.random.PRNGKey(0)
    kp, kx = jax.random.split(key)
    params = init_params(kp)

    B = 8  # small batch; features = 784 (flattened 28x28) as the module implies
    x = jax.random.normal(kx, (B, 784), jnp.float32)

    y = discriminator_forward(x, params)
    y = jax.block_until_ready(y)

    # Reference kept in f32; kernel output is bf16-quantized, so compare with
    # the reference also quantized to bf16 (note: bf16 weights/output are a
    # deliberate precision deviation from the f32 PyTorch module).
    y_ref = reference_forward(x, params).astype(jnp.bfloat16).astype(jnp.float32)

    assert y.shape == (B, 1), y.shape
    assert jnp.allclose(y, y_ref, atol=1e-2, rtol=1e-2), "mismatch vs. JAX reference"

    print("KERNEL_OK")
</pallas_src>

<mosaic_0001>
module attributes {stable_mosaic.version = 11 : i64} {
  func.func @_mlp_kernel(%arg0: i32, %arg1: memref<128x896xbf16, #tpu.memory_space<vmem>>, %arg2: memref<896x512xbf16, #tpu.memory_space<vmem>>, %arg3: memref<1x512xf32, #tpu.memory_space<vmem>>, %arg4: memref<512x384xbf16, #tpu.memory_space<vmem>>, %arg5: memref<1x384xf32, #tpu.memory_space<vmem>>, %arg6: memref<384x128xbf16, #tpu.memory_space<vmem>>, %arg7: memref<1x128xf32, #tpu.memory_space<vmem>>, %arg8: memref<128x128xbf16, #tpu.memory_space<vmem>>, %arg9: memref<1x128xf32, #tpu.memory_space<vmem>>, %arg10: memref<128x128xbf16, #tpu.memory_space<vmem>>) attributes {dimension_semantics = [#tpu.dimension_semantics<parallel>], iteration_bounds = array<i64: 1>, scalar_prefetch = 0 : i64, scratch_operands = 0 : i64, tpu.core_type = #tpu.core_type<tc>, window_params = [{transform_indices = @transform_0, window_bounds = array<i64: 128, 896>}, {pipeline_mode = #tpu.pipeline_mode<synchronous>, transform_indices = @transform_1, window_bounds = array<i64: 896, 512>}, {pipeline_mode = #tpu.pipeline_mode<synchronous>, transform_indices = @transform_2, window_bounds = array<i64: 1, 512>}, {pipeline_mode = #tpu.pipeline_mode<synchronous>, transform_indices = @transform_3, window_bounds = array<i64: 512, 384>}, {pipeline_mode = #tpu.pipeline_mode<synchronous>, transform_indices = @transform_4, window_bounds = array<i64: 1, 384>}, {pipeline_mode = #tpu.pipeline_mode<synchronous>, transform_indices = @transform_5, window_bounds = array<i64: 384, 128>}, {pipeline_mode = #tpu.pipeline_mode<synchronous>, transform_indices = @transform_6, window_bounds = array<i64: 1, 128>}, {pipeline_mode = #tpu.pipeline_mode<synchronous>, transform_indices = @transform_7, window_bounds = array<i64: 128, 128>}, {pipeline_mode = #tpu.pipeline_mode<synchronous>, transform_indices = @transform_8, window_bounds = array<i64: 1, 128>}, {transform_indices = @transform_9, window_bounds = array<i64: 128, 128>}]} {
    %c0 = arith.constant 0 : index
    %c0_0 = arith.constant 0 : index
    %0 = vector.load %arg1[%c0, %c0_0] : memref<128x896xbf16, #tpu.memory_space<vmem>>, vector<128x896xbf16>
    %c0_1 = arith.constant 0 : index
    %c0_2 = arith.constant 0 : index
    %1 = vector.load %arg2[%c0_1, %c0_2] : memref<896x512xbf16, #tpu.memory_space<vmem>>, vector<896x512xbf16>
    %cst = arith.constant dense<0.000000e+00> : vector<128x512xf32>
    %2 = tpu.matmul %0, %1, %cst {dimension_numbers = #tpu.dot_dimension_numbers<[1], [0], [0], [1], [0, 0, 1, 1], [], []>} : vector<128x896xbf16>, vector<896x512xbf16>, vector<128x512xf32> -> vector<128x512xf32>
    %c0_3 = arith.constant 0 : index
    %c0_4 = arith.constant 0 : index
    %3 = vector.load %arg3[%c0_3, %c0_4] : memref<1x512xf32, #tpu.memory_space<vmem>>, vector<1x512xf32>
    %4 = vector.broadcast %3 : vector<1x512xf32> to vector<128x512xf32>
    %5 = arith.addf %2, %4 : vector<128x512xf32>
    %cst_5 = arith.constant 0.000000e+00 : f32
    %6 = vector.broadcast %cst_5 : f32 to vector<128x512xf32>
    %7 = arith.maximumf %5, %6 : vector<128x512xf32>
    %8 = arith.truncf %7 : vector<128x512xf32> to vector<128x512xbf16>
    %c0_6 = arith.constant 0 : index
    %c0_7 = arith.constant 0 : index
    %9 = vector.load %arg4[%c0_6, %c0_7] : memref<512x384xbf16, #tpu.memory_space<vmem>>, vector<512x384xbf16>
    %cst_8 = arith.constant dense<0.000000e+00> : vector<128x384xf32>
    %10 = tpu.matmul %8, %9, %cst_8 {dimension_numbers = #tpu.dot_dimension_numbers<[1], [0], [0], [1], [0, 0, 1, 1], [], []>} : vector<128x512xbf16>, vector<512x384xbf16>, vector<128x384xf32> -> vector<128x384xf32>
    %c0_9 = arith.constant 0 : index
    %c0_10 = arith.constant 0 : index
    %11 = vector.load %arg5[%c0_9, %c0_10] : memref<1x384xf32, #tpu.memory_space<vmem>>, vector<1x384xf32>
    %12 = vector.broadcast %11 : vector<1x384xf32> to vector<128x384xf32>
    %13 = arith.addf %10, %12 : vector<128x384xf32>
    %cst_11 = arith.constant 0.000000e+00 : f32
    %14 = vector.broadcast %cst_11 : f32 to vector<128x384xf32>
    %15 = arith.maximumf %13, %14 : vector<128x384xf32>
    %16 = arith.truncf %15 : vector<128x384xf32> to vector<128x384xbf16>
    %c0_12 = arith.constant 0 : index
    %c0_13 = arith.constant 0 : index
    %17 = vector.load %arg6[%c0_12, %c0_13] : memref<384x128xbf16, #tpu.memory_space<vmem>>, vector<384x128xbf16>
    %cst_14 = arith.constant dense<0.000000e+00> : vector<128x128xf32>
    %18 = tpu.matmul %16, %17, %cst_14 {dimension_numbers = #tpu.dot_dimension_numbers<[1], [0], [0], [1], [0, 0, 1, 1], [], []>} : vector<128x384xbf16>, vector<384x128xbf16>, vector<128x128xf32> -> vector<128x128xf32>
    %c0_15 = arith.constant 0 : index
    %c0_16 = arith.constant 0 : index
    %19 = vector.load %arg7[%c0_15, %c0_16] : memref<1x128xf32, #tpu.memory_space<vmem>>, vector<1x128xf32>
    %20 = vector.broadcast %19 : vector<1x128xf32> to vector<128x128xf32>
    %21 = arith.addf %18, %20 : vector<128x128xf32>
    %cst_17 = arith.constant 0.000000e+00 : f32
    %22 = vector.broadcast %cst_17 : f32 to vector<128x128xf32>
    %23 = arith.maximumf %21, %22 : vector<128x128xf32>
    %24 = arith.truncf %23 : vector<128x128xf32> to vector<128x128xbf16>
    %c0_18 = arith.constant 0 : index
    %c0_19 = arith.constant 0 : index
    %25 = vector.load %arg8[%c0_18, %c0_19] : memref<128x128xbf16, #tpu.memory_space<vmem>>, vector<128x128xbf16>
    %cst_20 = arith.constant dense<0.000000e+00> : vector<128x128xf32>
    %26 = tpu.matmul %24, %25, %cst_20 {dimension_numbers = #tpu.dot_dimension_numbers<[1], [0], [0], [1], [0, 0, 1, 1], [], []>} : vector<128x128xbf16>, vector<128x128xbf16>, vector<128x128xf32> -> vector<128x128xf32>
    %c0_21 = arith.constant 0 : index
    %c0_22 = arith.constant 0 : index
    %27 = vector.load %arg9[%c0_21, %c0_22] : memref<1x128xf32, #tpu.memory_space<vmem>>, vector<1x128xf32>
    %28 = vector.broadcast %27 : vector<1x128xf32> to vector<128x128xf32>
    %29 = arith.addf %26, %28 : vector<128x128xf32>
    %30 = arith.truncf %29 : vector<128x128xf32> to vector<128x128xbf16>
    %c0_23 = arith.constant 0 : index
    %c0_24 = arith.constant 0 : index
    %31 = vector.load %arg10[%c0_23, %c0_24] : memref<128x128xbf16, #tpu.memory_space<vmem>>, vector<128x128xbf16>
    tpu.vector_store %arg10[%c0_23, %c0_24], %30 {strides = array<i32>} : memref<128x128xbf16, #tpu.memory_space<vmem>>, vector<128x128xbf16>,
    return
  }
  func.func @transform_0(%arg0: i32) -> (i32, i32) {
    %c0_i32 = arith.constant 0 : i32
    %c0_i32_0 = arith.constant 0 : i32
    return %arg0, %c0_i32 : i32, i32
  }
  func.func @transform_1(%arg0: i32) -> (i32, i32) {
    %c0_i32 = arith.constant 0 : i32
    %c0_i32_0 = arith.constant 0 : i32
    %c0_i32_1 = arith.constant 0 : i32
    return %c0_i32, %c0_i32_0 : i32, i32
  }
  func.func @transform_2(%arg0: i32) -> (i32, i32) {
    %c0_i32 = arith.constant 0 : i32
    %c0_i32_0 = arith.constant 0 : i32
    %c0_i32_1 = arith.constant 0 : i32
    return %c0_i32, %c0_i32_0 : i32, i32
  }
  func.func @transform_3(%arg0: i32) -> (i32, i32) {
    %c0_i32 = arith.constant 0 : i32
    %c0_i32_0 = arith.constant 0 : i32
    %c0_i32_1 = arith.constant 0 : i32
    return %c0_i32, %c0_i32_0 : i32, i32
  }
  func.func @transform_4(%arg0: i32) -> (i32, i32) {
    %c0_i32 = arith.constant 0 : i32
    %c0_i32_0 = arith.constant 0 : i32
    %c0_i32_1 = arith.constant 0 : i32
    return %c0_i32, %c0_i32_0 : i32, i32
  }
  func.func @transform_5(%arg0: i32) -> (i32, i32) {
    %c0_i32 = arith.constant 0 : i32
    %c0_i32_0 = arith.constant 0 : i32
    %c0_i32_1 = arith.constant 0 : i32
    return %c0_i32, %c0_i32_0 : i32, i32
  }
  func.func @transform_6(%arg0: i32) -> (i32, i32) {
    %c0_i32 = arith.constant 0 : i32
    %c0_i32_0 = arith.constant 0 : i32
    %c0_i32_1 = arith.constant 0 : i32
    return %c0_i32, %c0_i32_0 : i32, i32
  }
  func.func @transform_7(%arg0: i32) -> (i32, i32) {
    %c0_i32 = arith.constant 0 : i32
    %c0_i32_0 = arith.constant 0 : i32
    %c0_i32_1 = arith.constant 0 : i32
    return %c0_i32, %c0_i32_0 : i32, i32
  }
  func.func @transform_8(%arg0: i32) -> (i32, i32) {
    %c0_i32 = arith.constant 0 : i32
    %c0_i32_0 = arith.constant 0 : i32
    %c0_i32_1 = arith.constant 0 : i32
    return %c0_i32, %c0_i32_0 : i32, i32
  }
  func.func @transform_9(%arg0: i32) -> (i32, i32) {
    %c0_i32 = arith.constant 0 : i32
    %c0_i32_0 = arith.constant 0 : i32
    return %arg0, %c0_i32 : i32, i32
  }
}

</mosaic_0001>

<bundles_post_ra>
// kernel: tpu_custom_call.1
= control target key start
LH: loop header
LB: loop body
LE: loop exit
PB: predicated region body
PF: predicated region fallthrough
CT: control target
= control target key end

     0   :  { %14 = vsyncpa [#allocation3], 0  ;;  %s7100_s0 = inlined_call_operand.hbm [shape: bf16[128,896], index: 0, kind: input, shape index: {}]   ;;  %s7101_s1 = inlined_call_operand.hbm [shape: bf16[896,512], index: 1, kind: input, shape index: {}]   ;;  %s7102_s2 = inlined_call_operand.hbm [shape: f32[1,512], index: 2, kind: input, shape index: {}]   ;;  %s7103_s3 = inlined_call_operand.hbm [shape: bf16[512,384], index: 3, kind: input, shape index: {}]   ;;  %s7104_s4 = inlined_call_operand.vmem [shape: f32[1,384], index: 4, kind: input, shape index: {}]   ;;  %s7105_s5 = inlined_call_operand.hbm [shape: bf16[384,128], index: 5, kind: input, shape index: {}]   ;;  %s7106_s6 = inlined_call_operand.vmem [shape: f32[1,128], index: 6, kind: input, shape index: {}]   ;;  %s7107_s7 = inlined_call_operand.hbm [shape: bf16[128,128], index: 7, kind: input, shape index: {}]   ;;  %s7108_s8 = inlined_call_operand.vmem [shape: f32[1,128], index: 8, kind: input, shape index: {}]   ;;  %s7109_s9 = inlined_call_operand.hbm [shape: bf16[128,128], index: 9, kind: output, shape index: {}]  }
   0x1   :  { %15 = vsyncpa [#allocation6], 0 }
   0x2   :  { %16 = vsyncpa [#allocation9], 0 }
   0x3   :  { %17 = vsyncpa [#allocation12], 0 }
   0x4   :  { %18 = vsyncpa [#allocation4], 0  ;;  %s6242_s30 = smov [#allocation5]  }
   0x5   :  { %s36_s10 = sshll.u32 %s6242_s30, 4  ;;  %s37_s10 = int_to_ptr.vmem [resolvable:$true] %s36_s10 }
   0x6   :  { %s6100_s11 = scalar_lea.vmem %s37_s10, 28672  ;;  %p6105_p1 = scmp.lt.s32.totalorder %s37_s10, %s37_s10 }
   0x7   :  { %p6101_p0 = scmp.ne.s32.totalorder %s37_s10, %s6100_s11  ;;  %p6106_p2 = scmp.lt.s32.totalorder %s6100_s11, %s6100_s11 }
   0x9   :  { %p6107_p3 = por %p6106_p2, %p6105_p1 }
   0xb   :  { %p6108_p4 = pnand %p6107_p3, %p6101_p0 }
   0xd   :  { %6111 = shalt.err (!%p6108_p4)
}
   0xe   :  { %s6243_s12 = smov 256   ;;  %s6244_s13 = smov 16  }
   0xf   :  { %42 = dma.hbm_to_vmem [thread:$0]  %s7101_s1, 28672, %s37_s10, [#allocation6], %s6243_s12, %s6243_s12, %s6244_s13  }
  0x10   :  { %s6245_s16 = smov [#allocation8]  }
  0x11   :  { %s58_s17 = sshll.u32 %s6245_s16, 4  ;;  %s59_s17 = int_to_ptr.vmem [resolvable:$true] %s58_s17 }
  0x12   :  { %s6120_s18 = scalar_lea.vmem %s59_s17, 12288  ;;  %p6125_p6 = scmp.lt.s32.totalorder %s59_s17, %s59_s17 }
  0x13   :  { %p6121_p5 = scmp.ne.s32.totalorder %s59_s17, %s6120_s18  ;;  %p6126_p7 = scmp.lt.s32.totalorder %s6120_s18, %s6120_s18 }
  0x15   :  { %p6127_p8 = por %p6126_p7, %p6125_p6 }
  0x17   :  { %p6128_p9 = pnand %p6127_p8, %p6121_p5 }
  0x19   :  { %6131 = shalt.err (!%p6128_p9)
}
  0x1a   :  { %s6246_s19 = smov 192   ;;  %s6247_s20 = smov 12  }
  0x1b   :  { %64 = dma.hbm_to_vmem [thread:$0]  %s7103_s3, 12288, %s59_s17, [#allocation9], %s6246_s19, %s6246_s19, %s6247_s20  }
  0x1c   :  { %s6248_s23 = smov [#allocation2]  }
  0x1d   :  { %s24_s24 = sshll.u32 %s6248_s23, 4  ;;  %s25_s24 = int_to_ptr.vmem [resolvable:$true] %s24_s24 }
  0x1e   :  { %s6140_s1 = scalar_lea.vmem %s25_s24, 7168  ;;  %p6145_p11 = scmp.lt.s32.totalorder %s25_s24, %s25_s24 }
  0x1f   :  { %p6141_p10 = scmp.ne.s32.totalorder %s25_s24, %s6140_s1  ;;  %p6146_p12 = scmp.lt.s32.totalorder %s6140_s1, %s6140_s1 }
  0x21   :  { %p6147_p13 = por %p6146_p12, %p6145_p11 }
  0x23   :  { %p6148_p0 = pnand %p6147_p13, %p6141_p10 }
  0x25   :  { %6151 = shalt.err (!%p6148_p0)
}
  0x26   :  { %s6249_s25 = smov 448   ;;  %s6250_s26 = smov 28  }
  0x27   :  { %30 = dma.hbm_to_vmem [thread:$0]  %s7100_s0, 7168, %s25_s24, [#allocation3], %s6249_s25, %s6249_s25, %s6250_s26  }
  0x28   :  { %s6251_s29 = smov [#allocation7]   ;;  %s6252_s3 = smov [#allocation10]  }
  0x29   :  { %s49_s30 = sshll.u32 %s6251_s29, 4  ;;  %s72_s10 = sshll.u32 %s6252_s3, 4  ;;  %s50_s30 = int_to_ptr.vmem [resolvable:$true] %s49_s30  ;;  %s73_s10 = int_to_ptr.vmem [resolvable:$true] %s72_s10 }
  0x2a   :  { %s6160_s11 = scalar_lea.vmem %s50_s30, 64  ;;  %p6165_p2 = scmp.lt.s32.totalorder %s50_s30, %s50_s30 }
  0x2b   :  { %p6161_p1 = scmp.ne.s32.totalorder %s50_s30, %s6160_s11  ;;  %p6166_p3 = scmp.lt.s32.totalorder %s6160_s11, %s6160_s11 }
  0x2d   :  { %p6167_p4 = por %p6166_p3, %p6165_p2 }
  0x2f   :  { %p6168_p5 = pnand %p6167_p4, %p6161_p1 }
  0x31   :  { %6171 = shalt.err (!%p6168_p5)
}
  0x32   :  { %52 = dma.hbm_to_vmem [thread:$0]  %s7102_s2, 64, %s50_s30, [#allocation6]  }
  0x33   :  { %s6180_s14 = scalar_lea.vmem %s73_s10, 3072  ;;  %p6185_p7 = scmp.lt.s32.totalorder %s73_s10, %s73_s10 }
  0x34   :  { %p6181_p6 = scmp.ne.s32.totalorder %s73_s10, %s6180_s14  ;;  %p6186_p8 = scmp.lt.s32.totalorder %s6180_s14, %s6180_s14 }
  0x36   :  { %p6187_p9 = por %p6186_p8, %p6185_p7 }
  0x38   :  { %p6188_p10 = pnand %p6187_p9, %p6181_p6 }
  0x3a   :  { %6191 = shalt.err (!%p6188_p10)
}
  0x3b   :  { %s6253_s0 = smov 64   ;;  %s6254_s15 = smov 4  }
  0x3c   :  { %78 = dma.hbm_to_vmem [thread:$0]  %s7105_s5, 3072, %s73_s10, [#allocation9], %s6253_s0, %s6253_s0, %s6254_s15  }
  0x3d   :  { %s6255_s18 = smov [#allocation11]  }
  0x3e   :  { %s86_s19 = sshll.u32 %s6255_s18, 4  ;;  %s87_s19 = int_to_ptr.vmem [resolvable:$true] %s86_s19 }
  0x3f   :  { %s6200_s2 = scalar_lea.vmem %s87_s19, 1024  ;;  %p6205_p12 = scmp.lt.s32.totalorder %s87_s19, %s87_s19 }
  0x40   :  { %p6201_p11 = scmp.ne.s32.totalorder %s87_s19, %s6200_s2  ;;  %p6206_p13 = scmp.lt.s32.totalorder %s6200_s2, %s6200_s2 }
  0x42   :  { %p6207_p0 = por %p6206_p13, %p6205_p12 }
  0x44   :  { %p6208_p1 = pnand %p6207_p0, %p6201_p11 }
  0x46   :  { %6211 = shalt.err (!%p6208_p1)
}
  0x47   :  { %92 = dma.hbm_to_vmem [thread:$0]  %s7107_s7, 1024, %s87_s19, [#allocation12], %s6253_s0, %s6253_s0, %s6254_s15  }
  0x48   :  { %6232 = dma.done.wait [#allocation3], 7168  }
  0x49   :  { %6233 = vsyncadd [#allocation3], 4294960128 }
  0x4a   :  { %6234 = dma.done.wait [#allocation6], 28736  }
  0x4b   :  { %6235 = vsyncadd [#allocation6], 4294938560 }
  0x4c   :  { %6236 = dma.done.wait [#allocation9], 15360  }
  0x4d   :  { %6237 = vsyncadd [#allocation9], 4294951936 }
  0x4e   :  { %6238 = dma.done.wait [#allocation12], 1024  }
  0x4f   :  { %6239 = vsyncadd [#allocation12], 4294966272  ;;  %v5459_v0 = vld [vmem:[#allocation5 + $0xe4] ss:$16 sps:$4 sm:$0xff]   ;;  %v5463_v2 = vld [vmem:[#allocation5 + $0xe0] ss:$16 sps:$4 sm:$0xff]  }
  0x50   :  { %v5461_v1 = vld [vmem:[#allocation5 + $0x2e4] ss:$16 sps:$4 sm:$0xff]   ;;  %1832 = vmatprep.subr.bf16.mxu0 %v5459_v0  ;;  %v5464_v3 = vld [vmem:[#allocation5 + $0x2e0] ss:$16 sps:$4 sm:$0xff]   ;;  %v5560_v51 = vld [vmem:[#allocation2 + $0xc] ss:$28 sps:$4 sm:$0xff]  }
  0x51   :  { %1945 = vmatprep.subr.bf16.mxu1 %v5461_v1  ;;  %v5465_v4 = vld [vmem:[#allocation5 + $0xc4] ss:$16 sps:$4 sm:$0xff]   ;;  %1833 = vmatpush1.bf16.msra.mxu0 %v5463_v2  ;;  %v5469_v6 = vld [vmem:[#allocation5 + $0xc0] ss:$16 sps:$4 sm:$0xff]  }
  0x52   :  { %1946 = vmatpush1.bf16.msra.mxu1 %v5464_v3  ;;  %v5467_v5 = vld [vmem:[#allocation5 + $0x2c4] ss:$16 sps:$4 sm:$0xff]   ;;  %1834 = vmatprep.subr.bf16.mxu0 %v5465_v4  ;;  %v5470_v7 = vld [vmem:[#allocation5 + $0x2c0] ss:$16 sps:$4 sm:$0xff]  }
  0x53   :  { %1947 = vmatprep.subr.bf16.mxu1 %v5467_v5  ;;  %v5471_v8 = vld [vmem:[#allocation5 + $0xa4] ss:$16 sps:$4 sm:$0xff]   ;;  %v5475_v10 = vld [vmem:[#allocation5 + $0xa0] ss:$16 sps:$4 sm:$0xff]   ;;  %1977 = vmatprep.mubr.bf16.mxu1 %v5560_v51 }
  0x54   :  { %v5473_v9 = vld [vmem:[#allocation5 + $0x2a4] ss:$16 sps:$4 sm:$0xff]   ;;  %v5476_v11 = vld [vmem:[#allocation5 + $0x2a0] ss:$16 sps:$4 sm:$0xff]  }
  0x55   :  { %1835 = vmatpush1.bf16.msra.mxu0 %v5469_v6  ;;  %v5477_v12 = vld [vmem:[#allocation5 + $0x84] ss:$16 sps:$4 sm:$0xff]   ;;  %v5481_v14 = vld [vmem:[#allocation5 + $0x80] ss:$16 sps:$4 sm:$0xff]  }
  0x56   :  { %1948 = vmatpush1.bf16.msra.mxu1 %v5470_v7  ;;  %1836 = vmatprep.subr.bf16.mxu0 %v5471_v8  ;;  %v5479_v13 = vld [vmem:[#allocation5 + $0x284] ss:$16 sps:$4 sm:$0xff]   ;;  %v5482_v15 = vld [vmem:[#allocation5 + $0x280] ss:$16 sps:$4 sm:$0xff]  }
  0x57   :  { %1949 = vmatprep.subr.bf16.mxu1 %v5473_v9  ;;  %v5483_v16 = vld [vmem:[#allocation5 + $0x64] ss:$16 sps:$4 sm:$0xff]   ;;  %v5487_v18 = vld [vmem:[#allocation5 + $0x60] ss:$16 sps:$4 sm:$0xff]   ;;  %v5570_v9 = vld [vmem:[#allocation2 + $0x3c] ss:$28 sps:$4 sm:$0xff]  }
  0x58   :  { %v5485_v17 = vld [vmem:[#allocation5 + $0x264] ss:$16 sps:$4 sm:$0xff]   ;;  %v5488_v19 = vld [vmem:[#allocation5 + $0x260] ss:$16 sps:$4 sm:$0xff]  }
  0x59   :  { %1837 = vmatpush1.bf16.msra.mxu0 %v5475_v10  ;;  %v5489_v20 = vld [vmem:[#allocation5 + $0x44] ss:$16 sps:$4 sm:$0xff]   ;;  %v5493_v22 = vld [vmem:[#allocation5 + $0x40] ss:$16 sps:$4 sm:$0xff]  }
  0x5a   :  { %1950 = vmatpush1.bf16.msra.mxu1 %v5476_v11  ;;  %1838 = vmatprep.subr.bf16.mxu0 %v5477_v12  ;;  %v5491_v21 = vld [vmem:[#allocation5 + $0x244] ss:$16 sps:$4 sm:$0xff]   ;;  %v5494_v23 = vld [vmem:[#allocation5 + $0x240] ss:$16 sps:$4 sm:$0xff]  }
  0x5b   :  { %1951 = vmatprep.subr.bf16.mxu1 %v5479_v13  ;;  %v5495_v24 = vld [vmem:[#allocation5 + $0x24] ss:$16 sps:$4 sm:$0xff]   ;;  %v5499_v26 = vld [vmem:[#allocation5 + $0x20] ss:$16 sps:$4 sm:$0xff]  }
  0x5c   :  { %v5497_v25 = vld [vmem:[#allocation5 + $0x224] ss:$16 sps:$4 sm:$0xff]   ;;  %v5500_v27 = vld [vmem:[#allocation5 + $0x220] ss:$16 sps:$4 sm:$0xff]  }
  0x5d   :  { %1839 = vmatpush1.bf16.msra.mxu0 %v5481_v14  ;;  %v5501_v28 = vld [vmem:[#allocation5 + $0x4] ss:$16 sps:$4 sm:$0xff]   ;;  %v5505_v30 = vld [vmem:[#allocation5] ss:$16 sps:$4 sm:$0xff]  }
  0x5e   :  { %1952 = vmatpush1.bf16.msra.mxu1 %v5482_v15  ;;  %1840 = vmatprep.subr.bf16.mxu0 %v5483_v16  ;;  %v5503_v29 = vld [vmem:[#allocation5 + $0x204] ss:$16 sps:$4 sm:$0xff]   ;;  %v5506_v31 = vld [vmem:[#allocation5 + $0x200] ss:$16 sps:$4 sm:$0xff]  }
  0x5f   :  { %1953 = vmatprep.subr.bf16.mxu1 %v5485_v17  ;;  %v5507_v32 = vld [vmem:[#allocation5 + $0x1e4] ss:$16 sps:$4 sm:$0xff]   ;;  %v5511_v34 = vld [vmem:[#allocation5 + $0x1e0] ss:$16 sps:$4 sm:$0xff]  }
  0x60   :  { %v5509_v33 = vld [vmem:[#allocation5 + $0x3e4] ss:$16 sps:$4 sm:$0xff]   ;;  %v5512_v35 = vld [vmem:[#allocation5 + $0x3e0] ss:$16 sps:$4 sm:$0xff]  }
  0x61   :  { %1841 = vmatpush1.bf16.msra.mxu0 %v5487_v18  ;;  %v5513_v36 = vld [vmem:[#allocation5 + $0x1c4] ss:$16 sps:$4 sm:$0xff]   ;;  %v5517_v38 = vld [vmem:[#allocation5 + $0x1c0] ss:$16 sps:$4 sm:$0xff]  }
  0x62   :  { %1954 = vmatpush1.bf16.msra.mxu1 %v5488_v19  ;;  %1842 = vmatprep.subr.bf16.mxu0 %v5489_v20  ;;  %v5515_v37 = vld [vmem:[#allocation5 + $0x3c4] ss:$16 sps:$4 sm:$0xff]   ;;  %v5518_v39 = vld [vmem:[#allocation5 + $0x3c0] ss:$16 sps:$4 sm:$0xff]  }
  0x63   :  { %1955 = vmatprep.subr.bf16.mxu1 %v5491_v21  ;;  %v5519_v40 = vld [vmem:[#allocation5 + $0x1a4] ss:$16 sps:$4 sm:$0xff]   ;;  %v5523_v42 = vld [vmem:[#allocation5 + $0x1a0] ss:$16 sps:$4 sm:$0xff]   ;;  %v5587_v21 = vld [vmem:[#allocation2 + $0x7c] ss:$28 sps:$4 sm:$0xff]  }
  0x64   :  { %v5521_v41 = vld [vmem:[#allocation5 + $0x3a4] ss:$16 sps:$4 sm:$0xff]   ;;  %v5524_v43 = vld [vmem:[#allocation5 + $0x3a0] ss:$16 sps:$4 sm:$0xff]  }
  0x65   :  { %1843 = vmatpush1.bf16.msra.mxu0 %v5493_v22  ;;  %v5525_v44 = vld [vmem:[#allocation5 + $0x184] ss:$16 sps:$4 sm:$0xff]   ;;  %v5529_v46 = vld [vmem:[#allocation5 + $0x180] ss:$16 sps:$4 sm:$0xff]  }
  0x66   :  { %1956 = vmatpush1.bf16.msra.mxu1 %v5494_v23  ;;  %1844 = vmatprep.subr.bf16.mxu0 %v5495_v24  ;;  %v5527_v45 = vld [vmem:[#allocation5 + $0x384] ss:$16 sps:$4 sm:$0xff]   ;;  %v5530_v47 = vld [vmem:[#allocation5 + $0x380] ss:$16 sps:$4 sm:$0xff]  }
  0x67   :  { %1957 = vmatprep.subr.bf16.mxu1 %v5497_v25  ;;  %v5531_v48 = vld [vmem:[#allocation5 + $0x164] ss:$16 sps:$4 sm:$0xff]   ;;  %v5535_v52 = vld [vmem:[#allocation5 + $0x160] ss:$16 sps:$4 sm:$0xff]  }
  0x68   :  { %v5557_v49 = vld [vmem:[#allocation2 + $0x4] ss:$28 sps:$4 sm:$0xff]   ;;  %v5574_v16 = vld [vmem:[#allocation2 + $0x38] ss:$28 sps:$4 sm:$0xff]   ;;  %v5589_v25 = vld [vmem:[#allocation2 + $0x70] ss:$28 sps:$4 sm:$0xff]  }
  0x69   :  { %1845 = vmatpush1.bf16.msra.mxu0 %v5499_v26  ;;  %v5533_v50 = vld [vmem:[#allocation5 + $0x364] ss:$16 sps:$4 sm:$0xff]   ;;  %1864 = vmatprep.mubr.bf16.mxu0 %v5557_v49  ;;  %v5536_v53 = vld [vmem:[#allocation5 + $0x360] ss:$16 sps:$4 sm:$0xff]  }
  0x6a   :  { %1958 = vmatpush1.bf16.msra.mxu1 %v5500_v27  ;;  %1846 = vmatprep.subr.bf16.mxu0 %v5501_v28  ;;  %v5537_v54 = vld [vmem:[#allocation5 + $0x144] ss:$16 sps:$4 sm:$0xff]   ;;  %v5541_v56 = vld [vmem:[#allocation5 + $0x140] ss:$16 sps:$4 sm:$0xff]  }
  0x6b   :  { %1959 = vmatprep.subr.bf16.mxu1 %v5503_v29  ;;  %v5539_v55 = vld [vmem:[#allocation5 + $0x344] ss:$16 sps:$4 sm:$0xff]   ;;  %v5542_v57 = vld [vmem:[#allocation5 + $0x340] ss:$16 sps:$4 sm:$0xff]  }
  0x6c   :  { %v5543_v58 = vld [vmem:[#allocation5 + $0x124] ss:$16 sps:$4 sm:$0xff]   ;;  %v5547_v60 = vld [vmem:[#allocation5 + $0x120] ss:$16 sps:$4 sm:$0xff]  }
  0x6d   :  { %1847 = vmatpush1.bf16.msra.mxu0 %v5505_v30  ;;  %v5545_v59 = vld [vmem:[#allocation5 + $0x324] ss:$16 sps:$4 sm:$0xff]   ;;  %v5548_v61 = vld [vmem:[#allocation5 + $0x320] ss:$16 sps:$4 sm:$0xff]  }
  0x6e   :  { %1960 = vmatpush1.bf16.msra.mxu1 %v5506_v31  ;;  %1848 = vmatprep.subr.bf16.mxu0 %v5507_v32  ;;  %v5549_v62 = vld [vmem:[#allocation5 + $0x104] ss:$16 sps:$4 sm:$0xff]   ;;  %v5553_v0 = vld [vmem:[#allocation5 + $0x100] ss:$16 sps:$4 sm:$0xff]   ;;  %v5600_v31 = vld [vmem:[#allocation2 + $0xac] ss:$28 sps:$4 sm:$0xff]  }
  0x6f   :  { %1961 = vmatprep.subr.bf16.mxu1 %v5509_v33  ;;  %v5551_v63 = vld [vmem:[#allocation5 + $0x304] ss:$16 sps:$4 sm:$0xff]   ;;  %v5554_v1 = vld [vmem:[#allocation5 + $0x300] ss:$16 sps:$4 sm:$0xff]  }
  0x70   :  { %v5563_v2 = vld [vmem:[#allocation5 + $0x4e4] ss:$16 sps:$4 sm:$0xff]   ;;  %v5555_v4 = vld [vmem:[#allocation2] ss:$28 sps:$4 sm:$0xff]  }
  0x71   :  { %1849 = vmatpush2.bf16.msra.mxu0 %v5511_v34  ;;  %v5566_v3 = vld [vmem:[#allocation5 + $0x6e4] ss:$16 sps:$4 sm:$0xff]   ;;  %v5561_v6 = vld [vmem:[#allocation5 + $0x4e0] ss:$16 sps:$4 sm:$0xff]  }
  0x72   :  { %1962 = vmatpush2.bf16.msra.mxu1 %v5512_v35  ;;  %1850 = vmatprep.subr.bf16.mxu0 %v5513_v36  ;;  %v5558_v5 = vld [vmem:[#allocation2 + $0x8] ss:$28 sps:$4 sm:$0xff]   ;;  %v5564_v7 = vld [vmem:[#allocation5 + $0x6e0] ss:$16 sps:$4 sm:$0xff]   ;;  %v5590_v27 = vld [vmem:[#allocation2 + $0x78] ss:$28 sps:$4 sm:$0xff]  }
  0x73   :  { %1963 = vmatprep.subr.bf16.mxu1 %v5515_v37  ;;  %v5569_v8 = vld [vmem:[#allocation5 + $0x4c4] ss:$16 sps:$4 sm:$0xff]   ;;  %v5567_v12 = vld [vmem:[#allocation5 + $0x4c0] ss:$16 sps:$4 sm:$0xff]  }
  0x74   :  { %v5572_v10 = vld [vmem:[#allocation2 + $0x44] ss:$28 sps:$4 sm:$0xff]   ;;  %v5585_v20 = vld [vmem:[#allocation2 + $0x74] ss:$28 sps:$4 sm:$0xff]  }
  0x75   :  { %1851 = vmatpush2.bf16.msra.mxu0 %v5517_v38  ;;  %v5581_v11 = vld [vmem:[#allocation5 + $0x6c4] ss:$16 sps:$4 sm:$0xff]   ;;  %v5579_v14 = vld [vmem:[#allocation5 + $0x6c0] ss:$16 sps:$4 sm:$0xff]  }
  0x76   :  { %1964 = vmatpush2.bf16.msra.mxu1 %v5518_v39  ;;  %1852 = vmatprep.subr.bf16.mxu0 %v5519_v40  ;;  %v5578_v13 = vld [vmem:[#allocation5 + $0x4a4] ss:$16 sps:$4 sm:$0xff]   ;;  %v5575_v17 = vld [vmem:[#allocation2 + $0x40] ss:$28 sps:$4 sm:$0xff]   ;;  %v5605_v39 = vld [vmem:[#allocation2 + $0xb0] ss:$28 sps:$4 sm:$0xff]  }
  0x77   :  { %1965 = vmatprep.subr.bf16.mxu1 %v5521_v41  ;;  %v5596_v15 = vld [vmem:[#allocation5 + $0x6a4] ss:$16 sps:$4 sm:$0xff]   ;;  %v5576_v18 = vld [vmem:[#allocation5 + $0x4a0] ss:$16 sps:$4 sm:$0xff]  }
  0x78   :  { %v5584_v19 = vld [vmem:[#allocation5 + $0x484] ss:$16 sps:$4 sm:$0xff]   ;;  %v5594_v22 = vld [vmem:[#allocation5 + $0x6a0] ss:$16 sps:$4 sm:$0xff]  }
  0x79   :  { %1853 = vmatpush2.bf16.msra.mxu0 %v5523_v42  ;;  %v5611_v23 = vld [vmem:[#allocation5 + $0x684] ss:$16 sps:$4 sm:$0xff]   ;;  %v5582_v24 = vld [vmem:[#allocation5 + $0x480] ss:$16 sps:$4 sm:$0xff]  }
  0x7a   :  { %1966 = vmatpush2.bf16.msra.mxu1 %v5524_v43  ;;  %1854 = vmatprep.subr.bf16.mxu0 %v5525_v44  ;;  %v5593_v26 = vld [vmem:[#allocation5 + $0x464] ss:$16 sps:$4 sm:$0xff]   ;;  %v5609_v28 = vld [vmem:[#allocation5 + $0x680] ss:$16 sps:$4 sm:$0xff]   ;;  %v5617_v43 = vld [vmem:[#allocation2 + $0xec] ss:$28 sps:$4 sm:$0xff]  }
  0x7b   :  { %1967 = vmatprep.subr.bf16.mxu1 %v5527_v45  ;;  %v5591_v29 = vld [vmem:[#allocation5 + $0x460] ss:$16 sps:$4 sm:$0xff]   ;;  %v5599_v30 = vld [vmem:[#allocation5 + $0x444] ss:$16 sps:$4 sm:$0xff]  }
  0x7c   :  { %v5602_v32 = vld [vmem:[#allocation2 + $0xb4] ss:$28 sps:$4 sm:$0xff]   ;;  %v5604_v38 = vld [vmem:[#allocation2 + $0xa8] ss:$28 sps:$4 sm:$0xff]  }
  0x7d   :  { %1855 = vmatpush2.bf16.msra.mxu0 %v5529_v46  ;;  %v5626_v33 = vld [vmem:[#allocation5 + $0x664] ss:$16 sps:$4 sm:$0xff]   ;;  %v5624_v34 = vld [vmem:[#allocation5 + $0x660] ss:$16 sps:$4 sm:$0xff]  }
  0x7e   :  { %1968 = vmatpush2.bf16.msra.mxu1 %v5530_v47  ;;  %1856 = vmatprep.subr.bf16.mxu0 %v5531_v48  ;;  %v5597_v35 = vld [vmem:[#allocation5 + $0x440] ss:$16 sps:$4 sm:$0xff]   ;;  %v5641_v36 = vld [vmem:[#allocation5 + $0x644] ss:$16 sps:$4 sm:$0xff]  }
  0x7f   :  { %1969 = vmatprep.subr.bf16.mxu1 %v5533_v50  ;;  %v5608_v37 = vld [vmem:[#allocation5 + $0x424] ss:$16 sps:$4 sm:$0xff]   ;;  %v5606_v40 = vld [vmem:[#allocation5 + $0x420] ss:$16 sps:$4 sm:$0xff]  }
  0x80   :  { %v5614_v41 = vld [vmem:[#allocation5 + $0x404] ss:$16 sps:$4 sm:$0xff]   ;;  %v5639_v44 = vld [vmem:[#allocation5 + $0x640] ss:$16 sps:$4 sm:$0xff]  }
  0x81   :  { %1857 = vmatpush2.bf16.msra.mxu0 %v5535_v52  ;;  %v5615_v42 = vld [vmem:[#allocation2 + $0xe4] ss:$28 sps:$4 sm:$0xff]  }
  0x82   :  { %1970 = vmatpush2.bf16.msra.mxu1 %v5536_v53  ;;  %1858 = vmatprep.subr.bf16.mxu0 %v5537_v54  ;;  %v5656_v45 = vld [vmem:[#allocation5 + $0x624] ss:$16 sps:$4 sm:$0xff]   ;;  %v5612_v46 = vld [vmem:[#allocation5 + $0x400] ss:$16 sps:$4 sm:$0xff]   ;;  %v5630_v53 = vld [vmem:[#allocation2 + $0x11c] ss:$28 sps:$4 sm:$0xff]  }
  0x83   :  { %1971 = vmatprep.subr.bf16.mxu1 %v5539_v55  ;;  %v5619_v47 = vld [vmem:[#allocation2 + $0xe0] ss:$28 sps:$4 sm:$0xff]   ;;  %v5623_v48 = vld [vmem:[#allocation5 + $0x5e4] ss:$16 sps:$4 sm:$0xff]  }
  0x84   :  { %v5620_v49 = vld [vmem:[#allocation2 + $0xe8] ss:$28 sps:$4 sm:$0xff]   ;;  %v5654_v50 = vld [vmem:[#allocation5 + $0x620] ss:$16 sps:$4 sm:$0xff]  }
  0x85   :  { %1859 = vmatpush2.bf16.msra.mxu0 %v5541_v56  ;;  %v5621_v51 = vld [vmem:[#allocation5 + $0x5e0] ss:$16 sps:$4 sm:$0xff]   ;;  %v5629_v52 = vld [vmem:[#allocation5 + $0x5c4] ss:$16 sps:$4 sm:$0xff]  }
  0x86   :  { %1972 = vmatpush2.bf16.msra.mxu1 %v5542_v57  ;;  %1860 = vmatprep.subr.bf16.mxu0 %v5543_v58  ;;  %v5632_v54 = vld [vmem:[#allocation2 + $0x124] ss:$28 sps:$4 sm:$0xff]   ;;  %v5684_v58 = vld [vmem:[#allocation5 + $0x2ec] ss:$16 sps:$4 sm:$0xff]  }
  0x87   :  { %1973 = vmatprep.subr.bf16.mxu1 %v5545_v59  ;;  %v5671_v55 = vld [vmem:[#allocation5 + $0x604] ss:$16 sps:$4 sm:$0xff]   ;;  %v5669_v56 = vld [vmem:[#allocation5 + $0x600] ss:$16 sps:$4 sm:$0xff]  }
  0x88   :  { %v5627_v57 = vld [vmem:[#allocation5 + $0x5c0] ss:$16 sps:$4 sm:$0xff]   ;;  %v5638_v59 = vld [vmem:[#allocation5 + $0x5a4] ss:$16 sps:$4 sm:$0xff]  }
  0x89   :  { %1861 = vmatpush2.bf16.msra.mxu0 %v5547_v60  ;;  %v5634_v60 = vld [vmem:[#allocation2 + $0x118] ss:$28 sps:$4 sm:$0xff]  }
  0x8a   :  { %1974 = vmatpush2.bf16.msra.mxu1 %v5548_v61  ;;  %1862 = vmatprep.subr.bf16.mxu0 %v5549_v62  ;;  %v5635_v61 = vld [vmem:[#allocation2 + $0x120] ss:$28 sps:$4 sm:$0xff]  }
  0x8b   :  { %1975 = vmatprep.subr.bf16.mxu1 %v5551_v63  ;;  %v5636_v62 = vld [vmem:[#allocation5 + $0x5a0] ss:$16 sps:$4 sm:$0xff]   ;;  %v5644_v63 = vld [vmem:[#allocation5 + $0x584] ss:$16 sps:$4 sm:$0xff]  }
  0x8d   :  { %1863 = vmatpush2.bf16.msra.mxu0 %v5553_v0  ;;  %v5645_v0 = vld [vmem:[#allocation2 + $0x154] ss:$28 sps:$4 sm:$0xff]  }
  0x8e   :  { %1976 = vmatpush2.bf16.msra.mxu1 %v5554_v1  ;;  %2058 = vmatprep.subr.bf16.mxu0 %v5563_v2  ;;  %v5647_v1 = vld [vmem:[#allocation2 + $0x15c] ss:$28 sps:$4 sm:$0xff]   ;;  %v5642_v2 = vld [vmem:[#allocation5 + $0x580] ss:$16 sps:$4 sm:$0xff]  }
  0x8f   :  { %2171 = vmatprep.subr.bf16.mxu1 %v5566_v3  ;;  %v5649_v3 = vld [vmem:[#allocation2 + $0x150] ss:$28 sps:$4 sm:$0xff]  }
  0x90   :  { %1865 = vmatmul.mubr.bf16.vlgmr.msra.gmra.mxu0 %v5555_v4  ;;  %v5653_v4 = vld [vmem:[#allocation5 + $0x564] ss:$16 sps:$4 sm:$0xff]  }
  0x91   :  { %1978 = vmatmul.mubr.bf16.vlgmr.msra.gmra.mxu1 %v5558_v5  ;;  %2059 = vmatpush1.bf16.msra.mxu0 %v5561_v6  ;;  %v5650_v5 = vld [vmem:[#allocation2 + $0x158] ss:$28 sps:$4 sm:$0xff]   ;;  %v5651_v6 = vld [vmem:[#allocation5 + $0x560] ss:$16 sps:$4 sm:$0xff]  }
  0x92   :  { %2172 = vmatpush1.bf16.msra.mxu1 %v5564_v7  ;;  %2060 = vmatprep.subr.bf16.mxu0 %v5569_v8  ;;  %v5659_v7 = vld [vmem:[#allocation5 + $0x544] ss:$16 sps:$4 sm:$0xff]   ;;  %v5660_v8 = vld [vmem:[#allocation2 + $0x18c] ss:$28 sps:$4 sm:$0xff]  }
  0x93   :  { %1874 = vmatprep.mubr.bf16.mxu0 %v5570_v9  ;;  %1987 = vmatprep.mubr.bf16.mxu1 %v5572_v10  ;;  %v5662_v9 = vld [vmem:[#allocation2 + $0x194] ss:$28 sps:$4 sm:$0xff]  }
  0x94   :  { %2173 = vmatprep.subr.bf16.mxu1 %v5581_v11  ;;  %v5657_v10 = vld [vmem:[#allocation5 + $0x540] ss:$16 sps:$4 sm:$0xff]   ;;  %v5668_v11 = vld [vmem:[#allocation5 + $0x524] ss:$16 sps:$4 sm:$0xff]  }
  0x95   :  { %2061 = vmatpush1.bf16.msra.mxu0 %v5567_v12  ;;  %v5664_v12 = vld [vmem:[#allocation2 + $0x188] ss:$28 sps:$4 sm:$0xff]  }
  0x96   :  { %2174 = vmatpush1.bf16.msra.mxu1 %v5579_v14  ;;  %2062 = vmatprep.subr.bf16.mxu0 %v5578_v13  ;;  %v5665_v13 = vld [vmem:[#allocation2 + $0x190] ss:$28 sps:$4 sm:$0xff]  }
  0x97   :  { %2175 = vmatprep.subr.bf16.mxu1 %v5596_v15  ;;  %v5666_v14 = vld [vmem:[#allocation5 + $0x520] ss:$16 sps:$4 sm:$0xff]  }
  0x98   :  { %1875 = vmatmul.mubr.bf16.gmra.mxu0 %v5574_v16  ;;  %v5677_v15 = vld [vmem:[#allocation2 + $0x14] ss:$28 sps:$4 sm:$0xff]  }
  0x99   :  { %1988 = vmatmul.mubr.bf16.gmra.mxu1 %v5575_v17  ;;  %2063 = vmatpush1.bf16.msra.mxu0 %v5576_v18  ;;  %v5674_v16 = vld [vmem:[#allocation5 + $0x504] ss:$16 sps:$4 sm:$0xff]   ;;  %v5672_v17 = vld [vmem:[#allocation5 + $0x500] ss:$16 sps:$4 sm:$0xff]   ;;  %v6256_v18 = vmov 0  }
  0x9a   :  { %1884 = vmatprep.mubr.bf16.mxu0 %v5585_v20  ;;  %2064 = vmatprep.subr.bf16.mxu0 %v5584_v19  ;;  %v5681_v19 = vld [vmem:[#allocation5 + $0xec] ss:$16 sps:$4 sm:$0xff]  }
  0x9b   :  { %1997 = vmatprep.mubr.bf16.mxu1 %v5587_v21  ;;  %2176 = vmatpush1.bf16.msra.mxu1 %v5594_v22  ;;  %v5675_v20 = vld [vmem:[#allocation2 + $0x10] ss:$28 sps:$4 sm:$0xff]   ;;  %v5678_v21 = vld [vmem:[#allocation2 + $0x18] ss:$28 sps:$4 sm:$0xff]  }
  0x9c   :  { %2177 = vmatprep.subr.bf16.mxu1 %v5611_v23  ;;  %v5679_v22 = vld [vmem:[#allocation5 + $0xe8] ss:$16 sps:$4 sm:$0xff]  }
  0x9d   :  { %2065 = vmatpush1.bf16.msra.mxu0 %v5582_v24  ;;  %v5682_v23 = vld [vmem:[#allocation5 + $0x2e8] ss:$16 sps:$4 sm:$0xff]   ;;  %v5687_v24 = vld [vmem:[#allocation5 + $0xcc] ss:$16 sps:$4 sm:$0xff]  }
  0x9e   :  { %2066 = vmatprep.subr.bf16.mxu0 %v5593_v26  ;;  %v5691_v26 = vld [vmem:[#allocation2 + $0x4c] ss:$28 sps:$4 sm:$0xff]  }
  0x9f   :  { %2178 = vmatpush1.bf16.msra.mxu1 %v5609_v28  ;;  %v5688_v28 = vld [vmem:[#allocation5 + $0x2c8] ss:$16 sps:$4 sm:$0xff]  }
  0xa0   :  { %1885 = vmatmul.mubr.bf16.gmra.mxu0 %v5589_v25  ;;  %2179 = vmatprep.subr.bf16.mxu1 %v5626_v33  ;;  %v5690_v25 = vld [vmem:[#allocation5 + $0x2cc] ss:$16 sps:$4 sm:$0xff]   ;;  %v5695_v33 = vld [vmem:[#allocation5 + $0xa8] ss:$16 sps:$4 sm:$0xff]  }
  0xa1   :  { %1998 = vmatmul.mubr.bf16.gmra.mxu1 %v5590_v27  ;;  %2067 = vmatpush1.bf16.msra.mxu0 %v5591_v29  ;;  %v5685_v27 = vld [vmem:[#allocation5 + $0xc8] ss:$16 sps:$4 sm:$0xff]   ;;  %v5697_v29 = vld [vmem:[#allocation5 + $0xac] ss:$16 sps:$4 sm:$0xff]  }
  0xa2   :  { %1894 = vmatprep.mubr.bf16.mxu0 %v5600_v31  ;;  %2068 = vmatprep.subr.bf16.mxu0 %v5599_v30  ;;  %v5700_v30 = vld [vmem:[#allocation5 + $0x2ac] ss:$16 sps:$4 sm:$0xff]   ;;  %v5693_v31 = vld [vmem:[#allocation2 + $0x48] ss:$28 sps:$4 sm:$0xff]  }
  0xa3   :  { %2007 = vmatprep.mubr.bf16.mxu1 %v5602_v32  ;;  %2180 = vmatpush1.bf16.msra.mxu1 %v5624_v34  ;;  %v5694_v32 = vld [vmem:[#allocation2 + $0x50] ss:$28 sps:$4 sm:$0xff]   ;;  %v5698_v34 = vld [vmem:[#allocation5 + $0x2a8] ss:$16 sps:$4 sm:$0xff]  }
  0xa4   :  { %2181 = vmatprep.subr.bf16.mxu1 %v5641_v36  ;;  %v5706_v36 = vld [vmem:[#allocation5 + $0x28c] ss:$16 sps:$4 sm:$0xff]  }
  0xa5   :  { %2069 = vmatpush1.bf16.msra.mxu0 %v5597_v35  ;;  %v5703_v35 = vld [vmem:[#allocation5 + $0x8c] ss:$16 sps:$4 sm:$0xff]  }
  0xa6   :  { %2070 = vmatprep.subr.bf16.mxu0 %v5608_v37  ;;  %v5707_v37 = vld [vmem:[#allocation2 + $0x84] ss:$28 sps:$4 sm:$0xff]  }
  0xa7   :  { %2182 = vmatpush1.bf16.msra.mxu1 %v5639_v44  ;;  %v5711_v44 = vld [vmem:[#allocation5 + $0x68] ss:$16 sps:$4 sm:$0xff]  }
  0xa8   :  { %1895 = vmatmul.mubr.bf16.gmra.mxu0 %v5604_v38  ;;  %2183 = vmatprep.subr.bf16.mxu1 %v5656_v45  ;;  %v5701_v38 = vld [vmem:[#allocation5 + $0x88] ss:$16 sps:$4 sm:$0xff]  }
  0xa9   :  { %2008 = vmatmul.mubr.bf16.gmra.mxu1 %v5605_v39  ;;  %2071 = vmatpush1.bf16.msra.mxu0 %v5606_v40  ;;  %v5704_v39 = vld [vmem:[#allocation5 + $0x288] ss:$16 sps:$4 sm:$0xff]   ;;  %v5709_v40 = vld [vmem:[#allocation2 + $0x80] ss:$28 sps:$4 sm:$0xff]  }
  0xaa   :  { %1904 = vmatprep.mubr.bf16.mxu0 %v5615_v42  ;;  %2072 = vmatprep.subr.bf16.mxu0 %v5614_v41  ;;  %v5713_v41 = vld [vmem:[#allocation5 + $0x6c] ss:$16 sps:$4 sm:$0xff]   ;;  %v5714_v45 = vld [vmem:[#allocation5 + $0x268] ss:$16 sps:$4 sm:$0xff]  }
  0xab   :  { %2017 = vmatprep.mubr.bf16.mxu1 %v5617_v43  ;;  %2184 = vmatpush1.bf16.msra.mxu1 %v5654_v50  ;;  %v5716_v42 = vld [vmem:[#allocation5 + $0x26c] ss:$16 sps:$4 sm:$0xff]   ;;  %v5710_v43 = vld [vmem:[#allocation2 + $0x88] ss:$28 sps:$4 sm:$0xff]  }
  0xac   :  { %2185 = vmatprep.subr.bf16.mxu1 %v5671_v55  ;;  %v5720_v50 = vld [vmem:[#allocation5 + $0x248] ss:$16 sps:$4 sm:$0xff]  }
  0xad   :  { %2073 = vmatpush1.bf16.msra.mxu0 %v5612_v46  ;;  %v5719_v46 = vld [vmem:[#allocation5 + $0x4c] ss:$16 sps:$4 sm:$0xff]   ;;  %v5727_v55 = vld [vmem:[#allocation5 + $0x28] ss:$16 sps:$4 sm:$0xff]  }
  0xae   :  { %2074 = vmatprep.subr.bf16.mxu0 %v5623_v48  ;;  %v5723_v48 = vld [vmem:[#allocation2 + $0xbc] ss:$28 sps:$4 sm:$0xff]  }
  0xaf   :  { %2186 = vmatpush1.bf16.msra.mxu1 %v5669_v56  ;;  %v5730_v56 = vld [vmem:[#allocation5 + $0x228] ss:$16 sps:$4 sm:$0xff]  }
  0xb0   :  { %1905 = vmatmul.mubr.bf16.gmra.mxu0 %v5619_v47  ;;  %2397 = vmatprep.subr.bf16.mxu1 %v5684_v58  ;;  %v5722_v47 = vld [vmem:[#allocation5 + $0x24c] ss:$16 sps:$4 sm:$0xff]  }
  0xb1   :  { %2018 = vmatmul.mubr.bf16.gmra.mxu1 %v5620_v49  ;;  %2075 = vmatpush2.bf16.msra.mxu0 %v5621_v51  ;;  %v5717_v49 = vld [vmem:[#allocation5 + $0x48] ss:$16 sps:$4 sm:$0xff]   ;;  %v5738_v58 = vld [vmem:[#allocation5 + $0x20c] ss:$16 sps:$4 sm:$0xff]  }
  0xb2   :  { %1914 = vmatprep.mubr.bf16.mxu0 %v5630_v53  ;;  %2076 = vmatprep.subr.bf16.mxu0 %v5629_v52  ;;  %v5725_v51 = vld [vmem:[#allocation2 + $0xb8] ss:$28 sps:$4 sm:$0xff]   ;;  %v5729_v52 = vld [vmem:[#allocation5 + $0x2c] ss:$16 sps:$4 sm:$0xff]  }
  0xb3   :  { %2027 = vmatprep.mubr.bf16.mxu1 %v5632_v54  ;;  %v5732_v53 = vld [vmem:[#allocation5 + $0x22c] ss:$16 sps:$4 sm:$0xff]  }
  0xb4   :  { %v5726_v54 = vld [vmem:[#allocation2 + $0xc0] ss:$28 sps:$4 sm:$0xff]  }
  0xb5   :  { %2077 = vmatpush2.bf16.msra.mxu0 %v5627_v57  ;;  %v5735_v57 = vld [vmem:[#allocation5 + $0xc] ss:$16 sps:$4 sm:$0xff]  }
  0xb6   :  { %2078 = vmatprep.subr.bf16.mxu0 %v5638_v59  ;;  %v5739_v59 = vld [vmem:[#allocation2 + $0xf4] ss:$28 sps:$4 sm:$0xff]  }
  0xb8   :  { %1915 = vmatmul.mubr.bf16.gmra.mxu0 %v5634_v60  ;;  %v5733_v60 = vld [vmem:[#allocation5 + $0x8] ss:$16 sps:$4 sm:$0xff]  }
  0xb9   :  { %2028 = vmatmul.mubr.bf16.gmra.mxu1 %v5635_v61  ;;  %2079 = vmatpush2.bf16.msra.mxu0 %v5636_v62  ;;  %v5736_v61 = vld [vmem:[#allocation5 + $0x208] ss:$16 sps:$4 sm:$0xff]   ;;  %v5745_v62 = vld [vmem:[#allocation5 + $0x1ec] ss:$16 sps:$4 sm:$0xff]  }
  0xba   :  { %1924 = vmatprep.mubr.bf16.mxu0 %v5645_v0  ;;  %2080 = vmatprep.subr.bf16.mxu0 %v5644_v63  ;;  %v5748_v63 = vld [vmem:[#allocation5 + $0x3ec] ss:$16 sps:$4 sm:$0xff]  }
  0xbb   :  { %2037 = vmatprep.mubr.bf16.mxu1 %v5647_v1  ;;  %v5741_v0 = vld [vmem:[#allocation2 + $0xf0] ss:$28 sps:$4 sm:$0xff]   ;;  %v5742_v1 = vld [vmem:[#allocation2 + $0xf8] ss:$28 sps:$4 sm:$0xff]  }
  0xbd   :  { %2081 = vmatpush2.bf16.msra.mxu0 %v5642_v2  ;;  %v5743_v2 = vld [vmem:[#allocation5 + $0x1e8] ss:$16 sps:$4 sm:$0xff]  }
  0xbe   :  { %2082 = vmatprep.subr.bf16.mxu0 %v5653_v4  ;;  %v5751_v4 = vld [vmem:[#allocation5 + $0x1cc] ss:$16 sps:$4 sm:$0xff]  }
  0xc0   :  { %1925 = vmatmul.mubr.bf16.gmra.mxu0 %v5649_v3  ;;  %v5746_v3 = vld [vmem:[#allocation5 + $0x3e8] ss:$16 sps:$4 sm:$0xff]  }
  0xc1   :  { %2038 = vmatmul.mubr.bf16.gmra.mxu1 %v5650_v5  ;;  %2083 = vmatpush2.bf16.msra.mxu0 %v5651_v6  ;;  %v5754_v5 = vld [vmem:[#allocation5 + $0x3cc] ss:$16 sps:$4 sm:$0xff]  }
  0xc2   :  { %1934 = vmatprep.mubr.bf16.mxu0 %v5660_v8  ;;  %2084 = vmatprep.subr.bf16.mxu0 %v5659_v7  ;;  %v5755_v6 = vld [vmem:[#allocation2 + $0x12c] ss:$28 sps:$4 sm:$0xff]  }
  0xc3   :  { %2047 = vmatprep.mubr.bf16.mxu1 %v5662_v9  ;;  %v5749_v7 = vld [vmem:[#allocation5 + $0x1c8] ss:$16 sps:$4 sm:$0xff]   ;;  %v5761_v9 = vld [vmem:[#allocation5 + $0x1ac] ss:$16 sps:$4 sm:$0xff]  }
  0xc4   :  { %v5752_v8 = vld [vmem:[#allocation5 + $0x3c8] ss:$16 sps:$4 sm:$0xff]  }
  0xc5   :  { %2085 = vmatpush2.bf16.msra.mxu0 %v5657_v10  ;;  %v5764_v10 = vld [vmem:[#allocation5 + $0x3ac] ss:$16 sps:$4 sm:$0xff]  }
  0xc6   :  { %2086 = vmatprep.subr.bf16.mxu0 %v5668_v11  ;;  %v5757_v11 = vld [vmem:[#allocation2 + $0x128] ss:$28 sps:$4 sm:$0xff]  }
  0xc8   :  { %1935 = vmatmul.mubr.bf16.gmra.mxu0 %v5664_v12  ;;  %v5758_v12 = vld [vmem:[#allocation2 + $0x130] ss:$28 sps:$4 sm:$0xff]  }
  0xc9   :  { %2048 = vmatmul.mubr.bf16.gmra.mxu1 %v5665_v13  ;;  %2087 = vmatpush2.bf16.msra.mxu0 %v5666_v14  ;;  %v5759_v13 = vld [vmem:[#allocation5 + $0x1a8] ss:$16 sps:$4 sm:$0xff]  }
  0xca   :  { %2090 = vmatprep.mubr.bf16.mxu0 %v5677_v15  ;;  %2088 = vmatprep.subr.bf16.mxu0 %v5674_v16  ;;  %v5762_v14 = vld [vmem:[#allocation5 + $0x3a8] ss:$16 sps:$4 sm:$0xff]   ;;  %v5767_v15 = vld [vmem:[#allocation5 + $0x18c] ss:$16 sps:$4 sm:$0xff]  }
  0xcb   :  { %2203 = vmatprep.mubr.bf16.mxu1 %v6256_v18  ;;  %v5770_v16 = vld [vmem:[#allocation5 + $0x38c] ss:$16 sps:$4 sm:$0xff]  }
  0xcd   :  { %2089 = vmatpush2.bf16.msra.mxu0 %v5672_v17  ;;  %v5771_v17 = vld [vmem:[#allocation2 + $0x164] ss:$28 sps:$4 sm:$0xff]  }
  0xce   :  { %2284 = vmatprep.subr.bf16.mxu0 %v5681_v19  ;;  %v5765_v19 = vld [vmem:[#allocation5 + $0x188] ss:$16 sps:$4 sm:$0xff]  }
  0xd0   :  { %2091 = vmatmul.mubr.bf16.vlgmr.msra.gmra.mxu0 %v5675_v20  ;;  %v5768_v20 = vld [vmem:[#allocation5 + $0x388] ss:$16 sps:$4 sm:$0xff]  }
  0xd1   :  { %2204 = vmatmul.mubr.bf16.vlgmr.msra.gmra.mxu1 %v5678_v21  ;;  %2285 = vmatpush1.bf16.msra.mxu0 %v5679_v22  ;;  %v5777_v21 = vld [vmem:[#allocation5 + $0x16c] ss:$16 sps:$4 sm:$0xff]  }
  0xd2   :  { %2398 = vmatpush1.bf16.msra.mxu1 %v5682_v23  ;;  %2286 = vmatprep.subr.bf16.mxu0 %v5687_v24  ;;  %v5780_v22 = vld [vmem:[#allocation5 + $0x36c] ss:$16 sps:$4 sm:$0xff]   ;;  %v5774_v24 = vld [vmem:[#allocation2 + $0x168] ss:$28 sps:$4 sm:$0xff]  }
  0xd3   :  { %2399 = vmatprep.subr.bf16.mxu1 %v5690_v25  ;;  %2100 = vmatprep.mubr.bf16.mxu0 %v5691_v26  ;;  %v5773_v23 = vld [vmem:[#allocation2 + $0x160] ss:$28 sps:$4 sm:$0xff]   ;;  %v5775_v25 = vld [vmem:[#allocation5 + $0x168] ss:$16 sps:$4 sm:$0xff]  }
  0xd4   :  { %2213 = vmatprep.mubr.bf16.mxu1 %v6256_v18  ;;  %v5778_v26 = vld [vmem:[#allocation5 + $0x368] ss:$16 sps:$4 sm:$0xff]  }
  0xd5   :  { %2287 = vmatpush1.bf16.msra.mxu0 %v5685_v27  ;;  %v5783_v27 = vld [vmem:[#allocation5 + $0x14c] ss:$16 sps:$4 sm:$0xff]  }
  0xd6   :  { %2400 = vmatpush1.bf16.msra.mxu1 %v5688_v28  ;;  %2288 = vmatprep.subr.bf16.mxu0 %v5697_v29  ;;  %v5786_v28 = vld [vmem:[#allocation5 + $0x34c] ss:$16 sps:$4 sm:$0xff]  }
  0xd7   :  { %2401 = vmatprep.subr.bf16.mxu1 %v5700_v30  ;;  %v5787_v29 = vld [vmem:[#allocation2 + $0x19c] ss:$28 sps:$4 sm:$0xff]  }
  0xd8   :  { %2101 = vmatmul.mubr.bf16.gmra.mxu0 %v5693_v31  ;;  %v5781_v30 = vld [vmem:[#allocation5 + $0x148] ss:$16 sps:$4 sm:$0xff]  }
  0xd9   :  { %2214 = vmatmul.mubr.bf16.gmra.mxu1 %v5694_v32  ;;  %2289 = vmatpush1.bf16.msra.mxu0 %v5695_v33  ;;  %v5784_v31 = vld [vmem:[#allocation5 + $0x348] ss:$16 sps:$4 sm:$0xff]   ;;  %v5793_v32 = vld [vmem:[#allocation5 + $0x12c] ss:$16 sps:$4 sm:$0xff]  }
  0xda   :  { %2402 = vmatpush1.bf16.msra.mxu1 %v5698_v34  ;;  %2290 = vmatprep.subr.bf16.mxu0 %v5703_v35  ;;  %v5796_v33 = vld [vmem:[#allocation5 + $0x32c] ss:$16 sps:$4 sm:$0xff]   ;;  %v5789_v34 = vld [vmem:[#allocation2 + $0x198] ss:$28 sps:$4 sm:$0xff]  }
  0xdb   :  { %2403 = vmatprep.subr.bf16.mxu1 %v5706_v36  ;;  %2110 = vmatprep.mubr.bf16.mxu0 %v5707_v37  ;;  %v5790_v35 = vld [vmem:[#allocation2 + $0x1a0] ss:$28 sps:$4 sm:$0xff]   ;;  %v5791_v36 = vld [vmem:[#allocation5 + $0x128] ss:$16 sps:$4 sm:$0xff]  }
  0xdc   :  { %2223 = vmatprep.mubr.bf16.mxu1 %v6256_v18  ;;  %v5794_v37 = vld [vmem:[#allocation5 + $0x328] ss:$16 sps:$4 sm:$0xff]  }
  0xdd   :  { %2291 = vmatpush1.bf16.msra.mxu0 %v5701_v38  ;;  %v5799_v38 = vld [vmem:[#allocation5 + $0x10c] ss:$16 sps:$4 sm:$0xff]  }
  0xde   :  { %2404 = vmatpush1.bf16.msra.mxu1 %v5704_v39  ;;  %2292 = vmatprep.subr.bf16.mxu0 %v5713_v41  ;;  %v5802_v39 = vld [vmem:[#allocation5 + $0x30c] ss:$16 sps:$4 sm:$0xff]   ;;  %v5800_v41 = vld [vmem:[#allocation5 + $0x308] ss:$16 sps:$4 sm:$0xff]  }
  0xdf   :  { %2405 = vmatprep.subr.bf16.mxu1 %v5716_v42  ;;  %v5805_v42 = vld [vmem:[#allocation5 + $0x4ec] ss:$16 sps:$4 sm:$0xff]  }
  0xe0   :  { %2111 = vmatmul.mubr.bf16.gmra.mxu0 %v5709_v40  ;;  %v5797_v40 = vld [vmem:[#allocation5 + $0x108] ss:$16 sps:$4 sm:$0xff]  }
  0xe1   :  { %2224 = vmatmul.mubr.bf16.gmra.mxu1 %v5710_v43  ;;  %2293 = vmatpush1.bf16.msra.mxu0 %v5711_v44  ;;  %v5808_v43 = vld [vmem:[#allocation5 + $0x6ec] ss:$16 sps:$4 sm:$0xff]   ;;  %v6035_v44 = vld [vmem:[#allocation2 + $0x4] ss:$28 sps:$4 sm:$0xff]  }
  0xe2   :  { %2406 = vmatpush1.bf16.msra.mxu1 %v5714_v45  ;;  %2294 = vmatprep.subr.bf16.mxu0 %v5719_v46  ;;  %v6036_v45 = vld [vmem:[#allocation2 + $0xc] ss:$28 sps:$4 sm:$0xff]  }
  0xe3   :  { %2407 = vmatprep.subr.bf16.mxu1 %v5722_v47  ;;  %2120 = vmatprep.mubr.bf16.mxu0 %v5723_v48  ;;  %v5803_v46 = vld [vmem:[#allocation5 + $0x4e8] ss:$16 sps:$4 sm:$0xff]   ;;  %v5811_v48 = vld [vmem:[#allocation5 + $0x4cc] ss:$16 sps:$4 sm:$0xff]  }
  0xe4   :  { %2233 = vmatprep.mubr.bf16.mxu1 %v6256_v18  ;;  %v5806_v47 = vld [vmem:[#allocation5 + $0x6e8] ss:$16 sps:$4 sm:$0xff]  }
  0xe5   :  { %2295 = vmatpush1.bf16.msra.mxu0 %v5717_v49  ;;  %v5817_v49 = vld [vmem:[#allocation5 + $0x6cc] ss:$16 sps:$4 sm:$0xff]  }
  0xe6   :  { %2408 = vmatpush1.bf16.msra.mxu1 %v5720_v50  ;;  %2296 = vmatprep.subr.bf16.mxu0 %v5729_v52  ;;  %v6037_v50 = vld [vmem:[#allocation2] ss:$28 sps:$4 sm:$0xff]   ;;  %v5809_v52 = vld [vmem:[#allocation5 + $0x4c8] ss:$16 sps:$4 sm:$0xff]  }
  0xe7   :  { %2409 = vmatprep.subr.bf16.mxu1 %v5732_v53  ;;  %v5815_v53 = vld [vmem:[#allocation5 + $0x6c8] ss:$16 sps:$4 sm:$0xff]  }
  0xe8   :  { %2121 = vmatmul.mubr.bf16.gmra.mxu0 %v5725_v51  ;;  %v6038_v51 = vld [vmem:[#allocation2 + $0x8] ss:$28 sps:$4 sm:$0xff]  }
  0xe9   :  { %2234 = vmatmul.mubr.bf16.gmra.mxu1 %v5726_v54  ;;  %2297 = vmatpush1.bf16.msra.mxu0 %v5727_v55  ;;  %v6039_v54 = vld [vmem:[#allocation2 + $0x3c] ss:$28 sps:$4 sm:$0xff]  }
  0xea   :  { %2410 = vmatpush1.bf16.msra.mxu1 %v5730_v56  ;;  %2298 = vmatprep.subr.bf16.mxu0 %v5735_v57  ;;  %v5814_v55 = vld [vmem:[#allocation5 + $0x4ac] ss:$16 sps:$4 sm:$0xff]   ;;  %v6040_v57 = vld [vmem:[#allocation2 + $0x44] ss:$28 sps:$4 sm:$0xff]  }
  0xeb   :  { %2411 = vmatprep.subr.bf16.mxu1 %v5738_v58  ;;  %2130 = vmatprep.mubr.bf16.mxu0 %v5739_v59  ;;  %v5826_v56 = vld [vmem:[#allocation5 + $0x6ac] ss:$16 sps:$4 sm:$0xff]   ;;  %v5812_v58 = vld [vmem:[#allocation5 + $0x4a8] ss:$16 sps:$4 sm:$0xff]  }
  0xec   :  { %2243 = vmatprep.mubr.bf16.mxu1 %v6256_v18  ;;  %v5820_v59 = vld [vmem:[#allocation5 + $0x48c] ss:$16 sps:$4 sm:$0xff]  }
  0xed   :  { %2299 = vmatpush1.bf16.msra.mxu0 %v5733_v60  ;;  %v5824_v60 = vld [vmem:[#allocation5 + $0x6a8] ss:$16 sps:$4 sm:$0xff]  }
  0xee   :  { %2412 = vmatpush1.bf16.msra.mxu1 %v5736_v61  ;;  %2300 = vmatprep.subr.bf16.mxu0 %v5745_v62  ;;  %v6041_v61 = vld [vmem:[#allocation2 + $0x38] ss:$28 sps:$4 sm:$0xff]   ;;  %v6042_v62 = vld [vmem:[#allocation2 + $0x40] ss:$28 sps:$4 sm:$0xff]  }
  0xef   :  { %2413 = vmatprep.subr.bf16.mxu1 %v5748_v63  ;;  %v5835_v63 = vld [vmem:[#allocation5 + $0x68c] ss:$16 sps:$4 sm:$0xff]  }
  0xf0   :  { %2131 = vmatmul.mubr.bf16.gmra.mxu0 %v5741_v0  ;;  %v5818_v0 = vld [vmem:[#allocation5 + $0x488] ss:$16 sps:$4 sm:$0xff]  }
  0xf1   :  { %2244 = vmatmul.mubr.bf16.gmra.mxu1 %v5742_v1  ;;  %2301 = vmatpush2.bf16.msra.mxu0 %v5743_v2  ;;  %v6043_v1 = vld [vmem:[#allocation2 + $0x74] ss:$28 sps:$4 sm:$0xff]   ;;  %v6044_v2 = vld [vmem:[#allocation2 + $0x7c] ss:$28 sps:$4 sm:$0xff]  }
  0xf2   :  { %2414 = vmatpush2.bf16.msra.mxu1 %v5746_v3  ;;  %2302 = vmatprep.subr.bf16.mxu0 %v5751_v4  ;;  %v5823_v3 = vld [vmem:[#allocation5 + $0x46c] ss:$16 sps:$4 sm:$0xff]   ;;  %v5833_v4 = vld [vmem:[#allocation5 + $0x688] ss:$16 sps:$4 sm:$0xff]  }
  0xf3   :  { %2415 = vmatprep.subr.bf16.mxu1 %v5754_v5  ;;  %2140 = vmatprep.mubr.bf16.mxu0 %v5755_v6  ;;  %v5821_v5 = vld [vmem:[#allocation5 + $0x468] ss:$16 sps:$4 sm:$0xff]   ;;  %v5829_v6 = vld [vmem:[#allocation5 + $0x44c] ss:$16 sps:$4 sm:$0xff]  }
  0xf4   :  { %2253 = vmatprep.mubr.bf16.mxu1 %v6256_v18 }
  0xf5   :  { %2303 = vmatpush2.bf16.msra.mxu0 %v5749_v7  ;;  %v5842_v7 = vld [vmem:[#allocation5 + $0x668] ss:$16 sps:$4 sm:$0xff]  }
  0xf6   :  { %2416 = vmatpush2.bf16.msra.mxu1 %v5752_v8  ;;  %2304 = vmatprep.subr.bf16.mxu0 %v5761_v9  ;;  %v5827_v8 = vld [vmem:[#allocation5 + $0x448] ss:$16 sps:$4 sm:$0xff]   ;;  %v5844_v9 = vld [vmem:[#allocation5 + $0x66c] ss:$16 sps:$4 sm:$0xff]  }
  0xf7   :  { %2417 = vmatprep.subr.bf16.mxu1 %v5764_v10  ;;  %v5853_v10 = vld [vmem:[#allocation5 + $0x64c] ss:$16 sps:$4 sm:$0xff]  }
  0xf8   :  { %2141 = vmatmul.mubr.bf16.gmra.mxu0 %v5757_v11  ;;  %v6045_v11 = vld [vmem:[#allocation2 + $0x70] ss:$28 sps:$4 sm:$0xff]  }
  0xf9   :  { %2254 = vmatmul.mubr.bf16.gmra.mxu1 %v5758_v12  ;;  %2305 = vmatpush2.bf16.msra.mxu0 %v5759_v13  ;;  %v6046_v12 = vld [vmem:[#allocation2 + $0x78] ss:$28 sps:$4 sm:$0xff]   ;;  %v5832_v13 = vld [vmem:[#allocation5 + $0x42c] ss:$16 sps:$4 sm:$0xff]  }
  0xfa   :  { %2418 = vmatpush2.bf16.msra.mxu1 %v5762_v14  ;;  %2306 = vmatprep.subr.bf16.mxu0 %v5767_v15  ;;  %v6047_v14 = vld [vmem:[#allocation2 + $0xac] ss:$28 sps:$4 sm:$0xff]   ;;  %v6048_v15 = vld [vmem:[#allocation2 + $0xb4] ss:$28 sps:$4 sm:$0xff]  }
  0xfb   :  { %2419 = vmatprep.subr.bf16.mxu1 %v5770_v16  ;;  %2150 = vmatprep.mubr.bf16.mxu0 %v5771_v17  ;;  %v5830_v16 = vld [vmem:[#allocation5 + $0x428] ss:$16 sps:$4 sm:$0xff]   ;;  %v5838_v17 = vld [vmem:[#allocation5 + $0x40c] ss:$16 sps:$4 sm:$0xff]  }
  0xfc   :  { %2263 = vmatprep.mubr.bf16.mxu1 %v6256_v18 }
  0xfd   :  { %2307 = vmatpush2.bf16.msra.mxu0 %v5765_v19  ;;  %v5851_v19 = vld [vmem:[#allocation5 + $0x648] ss:$16 sps:$4 sm:$0xff]  }
  0xfe   :  { %2420 = vmatpush2.bf16.msra.mxu1 %v5768_v20  ;;  %2308 = vmatprep.subr.bf16.mxu0 %v5777_v21  ;;  %v5862_v20 = vld [vmem:[#allocation5 + $0x62c] ss:$16 sps:$4 sm:$0xff]   ;;  %v5836_v21 = vld [vmem:[#allocation5 + $0x408] ss:$16 sps:$4 sm:$0xff]  }
  0xff   :  { %2421 = vmatprep.subr.bf16.mxu1 %v5780_v22  ;;  %v6049_v22 = vld [vmem:[#allocation2 + $0xa8] ss:$28 sps:$4 sm:$0xff]  }
 0x100   :  { %2151 = vmatmul.mubr.bf16.gmra.mxu0 %v5773_v23  ;;  %v6050_v23 = vld [vmem:[#allocation2 + $0xb0] ss:$28 sps:$4 sm:$0xff]  }
 0x101   :  { %2264 = vmatmul.mubr.bf16.gmra.mxu1 %v5774_v24  ;;  %2309 = vmatpush2.bf16.msra.mxu0 %v5775_v25  ;;  %v5841_v24 = vld [vmem:[#allocation5 + $0x5ec] ss:$16 sps:$4 sm:$0xff]   ;;  %v6051_v25 = vld [vmem:[#allocation2 + $0xe4] ss:$28 sps:$4 sm:$0xff]  }
 0x102   :  { %2422 = vmatpush2.bf16.msra.mxu1 %v5778_v26  ;;  %2310 = vmatprep.subr.bf16.mxu0 %v5783_v27  ;;  %v5860_v26 = vld [vmem:[#allocation5 + $0x628] ss:$16 sps:$4 sm:$0xff]  }
 0x103   :  { %2423 = vmatprep.subr.bf16.mxu1 %v5786_v28  ;;  %2160 = vmatprep.mubr.bf16.mxu0 %v5787_v29  ;;  %v6052_v27 = vld [vmem:[#allocation2 + $0xec] ss:$28 sps:$4 sm:$0xff]  }
 0x104   :  { %2273 = vmatprep.mubr.bf16.mxu1 %v6256_v18  ;;  %v5839_v28 = vld [vmem:[#allocation5 + $0x5e8] ss:$16 sps:$4 sm:$0xff]   ;;  %v5847_v29 = vld [vmem:[#allocation5 + $0x5cc] ss:$16 sps:$4 sm:$0xff]  }
 0x105   :  { %2311 = vmatpush2.bf16.msra.mxu0 %v5781_v30  ;;  %v5871_v30 = vld [vmem:[#allocation5 + $0x60c] ss:$16 sps:$4 sm:$0xff]  }
 0x106   :  { %2424 = vmatpush2.bf16.msra.mxu1 %v5784_v31  ;;  %2312 = vmatprep.subr.bf16.mxu0 %v5793_v32  ;;  %v404_v31 = vlaneseq  ;;  %v5869_v32 = vld [vmem:[#allocation5 + $0x608] ss:$16 sps:$4 sm:$0xff]  }
 0x107   :  { %2425 = vmatprep.subr.bf16.mxu1 %v5796_v33  ;;  %v5845_v33 = vld [vmem:[#allocation5 + $0x5c8] ss:$16 sps:$4 sm:$0xff]  }
 0x108   :  { %2161 = vmatmul.mubr.bf16.gmra.mxu0 %v5789_v34  ;;  %v6053_v34 = vld [vmem:[#allocation2 + $0xe0] ss:$28 sps:$4 sm:$0xff]  }
 0x109   :  { %2274 = vmatmul.mubr.bf16.gmra.mxu1 %v5790_v35  ;;  %2313 = vmatpush2.bf16.msra.mxu0 %v5791_v36  ;;  %v6054_v35 = vld [vmem:[#allocation2 + $0xe8] ss:$28 sps:$4 sm:$0xff]   ;;  %v5850_v36 = vld [vmem:[#allocation5 + $0x5ac] ss:$16 sps:$4 sm:$0xff]  }
 0x10a   :  { %2426 = vmatpush2.bf16.msra.mxu1 %v5794_v37  ;;  %2314 = vmatprep.subr.bf16.mxu0 %v5799_v38  ;;  %v6055_v37 = vld [vmem:[#allocation2 + $0x11c] ss:$28 sps:$4 sm:$0xff]   ;;  %v6340_v38 = vshrl.u32 %v404_v31, 7  ;;  %v6073_v31 = vld [vmem:[#allocation2 + $0x84] ss:$28 sps:$4 sm:$0xff]  }
 0x10b   :  { %2427 = vmatprep.subr.bf16.mxu1 %v5802_v39  ;;  %2316 = vmatprep.mubr.bf16.mxu0 %v6035_v44  ;;  %v6056_v39 = vld [vmem:[#allocation2 + $0x124] ss:$28 sps:$4 sm:$0xff]   ;;  %v6057_v44 = vld [vmem:[#allocation2 + $0x118] ss:$28 sps:$4 sm:$0xff]  }
 0x10c   :  { %2429 = vmatprep.mubr.bf16.mxu1 %v6036_v45  ;;  %7116 = vst [vmem:[#allocation19_spill] sm:$0xff] %v6340_v38  ;;  %v6058_v45 = vld [vmem:[#allocation2 + $0x120] ss:$28 sps:$4 sm:$0xff]  }
 0x10d   :  { %2315 = vmatpush2.bf16.msra.mxu0 %v5797_v40  ;;  %v5848_v40 = vld [vmem:[#allocation5 + $0x5a8] ss:$16 sps:$4 sm:$0xff]  }
 0x10e   :  { %2428 = vmatpush2.bf16.msra.mxu1 %v5800_v41  ;;  %2510 = vmatprep.subr.bf16.mxu0 %v5805_v42  ;;  %v5856_v41 = vld [vmem:[#allocation5 + $0x58c] ss:$16 sps:$4 sm:$0xff]   ;;  %v7110_v42 = vsub.s32 0, %v6340_v38 }
 0x10f   :  { %2623 = vmatprep.subr.bf16.mxu1 %v5808_v43  ;;  %v5854_v43 = vld [vmem:[#allocation5 + $0x588] ss:$16 sps:$4 sm:$0xff]  }
 0x110   :  { %2317 = vmatmul.mubr.bf16.vlgmr.msra.gmra.mxu0 %v6037_v50  ;;  %v5865_v50 = vld [vmem:[#allocation5 + $0x54c] ss:$16 sps:$4 sm:$0xff]  }
 0x111   :  { %2430 = vmatmul.mubr.bf16.vlgmr.msra.gmra.mxu1 %v6038_v51  ;;  %2511 = vmatpush1.bf16.msra.mxu0 %v5803_v46  ;;  %v5859_v46 = vld [vmem:[#allocation5 + $0x56c] ss:$16 sps:$4 sm:$0xff]   ;;  %v5863_v51 = vld [vmem:[#allocation5 + $0x548] ss:$16 sps:$4 sm:$0xff]  }
 0x112   :  { %2624 = vmatpush1.bf16.msra.mxu1 %v5806_v47  ;;  %2512 = vmatprep.subr.bf16.mxu0 %v5811_v48  ;;  %v6059_v47 = vld [vmem:[#allocation2 + $0x154] ss:$28 sps:$4 sm:$0xff]   ;;  %v6060_v48 = vld [vmem:[#allocation2 + $0x15c] ss:$28 sps:$4 sm:$0xff]  }
 0x113   :  { %2326 = vmatprep.mubr.bf16.mxu0 %v6039_v54  ;;  %2439 = vmatprep.mubr.bf16.mxu1 %v6040_v57  ;;  %v6063_v54 = vld [vmem:[#allocation2 + $0x18c] ss:$28 sps:$4 sm:$0xff]  }
 0x114   :  { %2625 = vmatprep.subr.bf16.mxu1 %v5817_v49  ;;  %v5857_v49 = vld [vmem:[#allocation5 + $0x568] ss:$16 sps:$4 sm:$0xff]  }
 0x115   :  { %2513 = vmatpush1.bf16.msra.mxu0 %v5809_v52  ;;  %v6061_v52 = vld [vmem:[#allocation2 + $0x150] ss:$28 sps:$4 sm:$0xff]   ;;  %v5866_v57 = vld [vmem:[#allocation5 + $0x528] ss:$16 sps:$4 sm:$0xff]  }
 0x116   :  { %2626 = vmatpush1.bf16.msra.mxu1 %v5815_v53  ;;  %2514 = vmatprep.subr.bf16.mxu0 %v5814_v55  ;;  %v6062_v53 = vld [vmem:[#allocation2 + $0x158] ss:$28 sps:$4 sm:$0xff]  }
 0x117   :  { %2627 = vmatprep.subr.bf16.mxu1 %v5826_v56  ;;  %v6064_v55 = vld [vmem:[#allocation2 + $0x194] ss:$28 sps:$4 sm:$0xff]   ;;  %v5868_v56 = vld [vmem:[#allocation5 + $0x52c] ss:$16 sps:$4 sm:$0xff]  }
 0x118   :  { %2327 = vmatmul.mubr.bf16.gmra.mxu0 %v6041_v61  ;;  %v6066_v61 = vld [vmem:[#allocation2 + $0x190] ss:$28 sps:$4 sm:$0xff]  }
 0x119   :  { %2440 = vmatmul.mubr.bf16.gmra.mxu1 %v6042_v62  ;;  %2515 = vmatpush1.bf16.msra.mxu0 %v5812_v58  ;;  %v5874_v58 = vld [vmem:[#allocation5 + $0x50c] ss:$16 sps:$4 sm:$0xff]   ;;  %v402_v62 = vld [vmem:[#allocation7] sm:$0xf] }
 0x11a   :  { %2336 = vmatprep.mubr.bf16.mxu0 %v6043_v1  ;;  %2516 = vmatprep.subr.bf16.mxu0 %v5820_v59  ;;  %v5872_v59 = vld [vmem:[#allocation5 + $0x508] ss:$16 sps:$4 sm:$0xff]   ;;  %v7111_v1 = vsub.s32 1, %v6340_v38 }
 0x11b   :  { %2449 = vmatprep.mubr.bf16.mxu1 %v6044_v2  ;;  %2628 = vmatpush1.bf16.msra.mxu1 %v5824_v60  ;;  %v6065_v60 = vld [vmem:[#allocation2 + $0x188] ss:$28 sps:$4 sm:$0xff]   ;;  %v6347_v2 = vrot.slane %v402_v62, %v7110_v42 }
 0x11c   :  { %2629 = vmatprep.subr.bf16.mxu1 %v5835_v63  ;;  %v6067_v63 = vld [vmem:[#allocation2 + $0x14] ss:$28 sps:$4 sm:$0xff]  }
 0x11d   :  { %2517 = vmatpush1.bf16.msra.mxu0 %v5818_v0  ;;  %v5877_v0 = vld [vmem:[#allocation8 + $0xac] ss:$12 sps:$4 sm:$0xff]  }
 0x11e   :  { %2518 = vmatprep.subr.bf16.mxu0 %v5823_v3  ;;  %v5875_v3 = vld [vmem:[#allocation8 + $0xa8] ss:$12 sps:$4 sm:$0xff]  }
 0x11f   :  { %2630 = vmatpush1.bf16.msra.mxu1 %v5833_v4  ;;  %v6351_v4 = vrot.slane %v402_v62, %v7111_v1  ;;  %v5942_v62 = vld [vmem:[#allocation8 + $0x210] ss:$12 sps:$4 sm:$0xff]  }
 0x120   :  { %2337 = vmatmul.mubr.bf16.gmra.mxu0 %v6045_v11  ;;  %2631 = vmatprep.subr.bf16.mxu1 %v5844_v9  ;;  %v6069_v9 = vld [vmem:[#allocation2 + $0x18] ss:$28 sps:$4 sm:$0xff]   ;;  %v6070_v11 = vld [vmem:[#allocation2 + $0x4c] ss:$28 sps:$4 sm:$0xff]  }
 0x121   :  { %2450 = vmatmul.mubr.bf16.gmra.mxu1 %v6046_v12  ;;  %2519 = vmatpush1.bf16.msra.mxu0 %v5821_v5  ;;  %v5880_v5 = vld [vmem:[#allocation8 + $0x94] ss:$12 sps:$4 sm:$0xff]  }
 0x122   :  { %2346 = vmatprep.mubr.bf16.mxu0 %v6047_v14  ;;  %2520 = vmatprep.subr.bf16.mxu0 %v5829_v6  ;;  %v5878_v14 = vld [vmem:[#allocation8 + $0x90] ss:$12 sps:$4 sm:$0xff]  }
 0x123   :  { %2459 = vmatprep.mubr.bf16.mxu1 %v6048_v15  ;;  %2632 = vmatpush1.bf16.msra.mxu1 %v5842_v7 }
 0x124   :  { %2633 = vmatprep.subr.bf16.mxu1 %v5853_v10 }
 0x125   :  { %2521 = vmatpush1.bf16.msra.mxu0 %v5827_v8  ;;  %v6068_v8 = vld [vmem:[#allocation2 + $0x10] ss:$28 sps:$4 sm:$0xff]  }
 0x126   :  { %2522 = vmatprep.subr.bf16.mxu0 %v5832_v13 }
 0x127   :  { %2634 = vmatpush1.bf16.msra.mxu1 %v5851_v19 }
 0x128   :  { %2347 = vmatmul.mubr.bf16.gmra.mxu0 %v6049_v22  ;;  %2635 = vmatprep.subr.bf16.mxu1 %v5862_v20 }
 0x129   :  { %2460 = vmatmul.mubr.bf16.gmra.mxu1 %v6050_v23  ;;  %2523 = vmatpush1.bf16.msra.mxu0 %v5830_v16 }
 0x12a   :  { %2356 = vmatprep.mubr.bf16.mxu0 %v6051_v25  ;;  %2524 = vmatprep.subr.bf16.mxu0 %v5838_v17  ;;  %v5883_v17 = vld [vmem:[#allocation8 + $0x7c] ss:$12 sps:$4 sm:$0xff]   ;;  %v5886_v25 = vld [vmem:[#allocation8 + $0x64] ss:$12 sps:$4 sm:$0xff]  }
 0x12b   :  { %2469 = vmatprep.mubr.bf16.mxu1 %v6052_v27  ;;  %2636 = vmatpush1.bf16.msra.mxu1 %v5860_v26 }
 0x12c   :  { %2637 = vmatprep.subr.bf16.mxu1 %v5871_v30 }
 0x12d   :  { %2525 = vmatpush1.bf16.msra.mxu0 %v5836_v21 }
 0x12e   :  { %2526 = vmatprep.subr.bf16.mxu0 %v5841_v24  ;;  %v5881_v24 = vld [vmem:[#allocation8 + $0x78] ss:$12 sps:$4 sm:$0xff]  }
 0x12f   :  { %2638 = vmatpush1.bf16.msra.mxu1 %v5869_v32 }
 0x130   :  { %2357 = vmatmul.mubr.bf16.gmra.mxu0 %v6053_v34  ;;  %v5884_v34 = vld [vmem:[#allocation8 + $0x60] ss:$12 sps:$4 sm:$0xff]  }
 0x131   :  { %2470 = vmatmul.mubr.bf16.gmra.mxu1 %v6054_v35  ;;  %2527 = vmatpush2.bf16.msra.mxu0 %v5839_v28  ;;  %v6071_v28 = vld [vmem:[#allocation2 + $0x48] ss:$28 sps:$4 sm:$0xff]  }
 0x132   :  { %2366 = vmatprep.mubr.bf16.mxu0 %v6055_v37  ;;  %2528 = vmatprep.subr.bf16.mxu0 %v5847_v29  ;;  %v6072_v29 = vld [vmem:[#allocation2 + $0x50] ss:$28 sps:$4 sm:$0xff]  }
 0x133   :  { %2479 = vmatprep.mubr.bf16.mxu1 %v6056_v39  ;;  %v5889_v37 = vld [vmem:[#allocation8 + $0x4c] ss:$12 sps:$4 sm:$0xff]  }
 0x135   :  { %2529 = vmatpush2.bf16.msra.mxu0 %v5845_v33 }
 0x136   :  { %2530 = vmatprep.subr.bf16.mxu0 %v5850_v36 }
 0x138   :  { %2367 = vmatmul.mubr.bf16.gmra.mxu0 %v6057_v44 }
 0x139   :  { %2480 = vmatmul.mubr.bf16.gmra.mxu1 %v6058_v45  ;;  %2531 = vmatpush2.bf16.msra.mxu0 %v5848_v40  ;;  %v5887_v45 = vld [vmem:[#allocation8 + $0x48] ss:$12 sps:$4 sm:$0xff]  }
 0x13a   :  { %2376 = vmatprep.mubr.bf16.mxu0 %v6059_v47  ;;  %2532 = vmatprep.subr.bf16.mxu0 %v5856_v41  ;;  %v5892_v47 = vld [vmem:[#allocation8 + $0x34] ss:$12 sps:$4 sm:$0xff]  }
 0x13b   :  { %2489 = vmatprep.mubr.bf16.mxu1 %v6060_v48  ;;  %v5939_v48 = vld [vmem:[#allocation8 + $0x228] ss:$12 sps:$4 sm:$0xff]  }
 0x13d   :  { %2533 = vmatpush2.bf16.msra.mxu0 %v5854_v43 }
 0x13e   :  { %2534 = vmatprep.subr.bf16.mxu0 %v5859_v46  ;;  %v5941_v46 = vld [vmem:[#allocation8 + $0x22c] ss:$12 sps:$4 sm:$0xff]  }
 0x13f   :  { %3602 = vmatprep.subr.bf16.mxu1 %v5941_v46  ;;  %v5953_v46 = vld [vmem:[#allocation8 + $0x1cc] ss:$12 sps:$4 sm:$0xff]  }
 0x140   :  { %2377 = vmatmul.mubr.bf16.gmra.mxu0 %v6061_v52  ;;  %v6075_v52 = vld [vmem:[#allocation2 + $0x88] ss:$28 sps:$4 sm:$0xff]  }
 0x141   :  { %2490 = vmatmul.mubr.bf16.gmra.mxu1 %v6062_v53  ;;  %2535 = vmatpush2.bf16.msra.mxu0 %v5857_v49 }
 0x142   :  { %2386 = vmatprep.mubr.bf16.mxu0 %v6063_v54  ;;  %2536 = vmatprep.subr.bf16.mxu0 %v5865_v50  ;;  %v6076_v54 = vld [vmem:[#allocation2 + $0xbc] ss:$28 sps:$4 sm:$0xff]  }
 0x143   :  { %2499 = vmatprep.mubr.bf16.mxu1 %v6064_v55 }
 0x145   :  { %2537 = vmatpush2.bf16.msra.mxu0 %v5863_v51  ;;  %v6074_v51 = vld [vmem:[#allocation2 + $0x80] ss:$28 sps:$4 sm:$0xff]  }
 0x146   :  { %2538 = vmatprep.subr.bf16.mxu0 %v5868_v56 }
 0x148   :  { %2387 = vmatmul.mubr.bf16.gmra.mxu0 %v6065_v60 }
 0x149   :  { %2500 = vmatmul.mubr.bf16.gmra.mxu1 %v6066_v61  ;;  %2539 = vmatpush2.bf16.msra.mxu0 %v5866_v57  ;;  %v5890_v57 = vld [vmem:[#allocation8 + $0x30] ss:$12 sps:$4 sm:$0xff]  }
 0x14a   :  { %2542 = vmatprep.mubr.bf16.mxu0 %v6067_v63  ;;  %2540 = vmatprep.subr.bf16.mxu0 %v5874_v58  ;;  %v5944_v58 = vld [vmem:[#allocation8 + $0x214] ss:$12 sps:$4 sm:$0xff]   ;;  %v5895_v61 = vld [vmem:[#allocation8 + $0x1c] ss:$12 sps:$4 sm:$0xff]  }
 0x14b   :  { %2655 = vmatprep.mubr.bf16.mxu1 %v6256_v18 }
 0x14d   :  { %2541 = vmatpush2.bf16.msra.mxu0 %v5872_v59 }
 0x14e   :  { %3489 = vmatprep.subr.bf16.mxu0 %v5877_v0 }
 0x150   :  { %v1866_v6 = vpop.f32.mrf.mxu0  ;;  %2543 = vmatmul.mubr.bf16.vlgmr.msra.gmra.mxu0 %v6068_v8  ;;  %v5947_v8 = vld [vmem:[#allocation8 + $0x1fc] ss:$12 sps:$4 sm:$0xff]  }
 0x151   :  { %v1979_v7 = vpop.f32.mrf.mxu1  ;;  %2656 = vmatmul.mubr.bf16.vlgmr.msra.gmra.mxu1 %v6069_v9  ;;  %v1867_v10 = vadd.f32 %v1866_v6, %v6347_v2  ;;  %2552 = vmatprep.mubr.bf16.mxu0 %v6070_v11  ;;  %v5898_v9 = vld [vmem:[#allocation8 + $0x4] ss:$12 sps:$4 sm:$0xff]  }
 0x152   :  { %2665 = vmatprep.mubr.bf16.mxu1 %v6256_v18  ;;  %v1868_v12 = vpop.f32.mrf.mxu0  ;;  %3490 = vmatpush1.bf16.msra.mxu0 %v5875_v3 }
 0x153   :  { %v1981_v13 = vpop.f32.mrf.mxu1  ;;  %v6355_v15 = vadd.f32 %v1979_v7, %v1867_v10  ;;  %v1869_v16 = vadd.f32 %v1868_v12, %v6351_v4  ;;  %3491 = vmatprep.subr.bf16.mxu0 %v5880_v5  ;;  %3603 = vmatpush1.bf16.msra.mxu1 %v5939_v48  ;;  %v5893_v7 = vld [vmem:[#allocation8 + $0x18] ss:$12 sps:$4 sm:$0xff]   ;;  %v5951_v48 = vld [vmem:[#allocation8 + $0x1c8] ss:$12 sps:$4 sm:$0xff]  }
 0x154   :  { %v6358_v19 = vpop.f32.mrf.mxu0  ;;  %3604 = vmatprep.subr.bf16.mxu1 %v5944_v58  ;;  %v5945_v10 = vld [vmem:[#allocation8 + $0x1f8] ss:$12 sps:$4 sm:$0xff]   ;;  %v5956_v58 = vld [vmem:[#allocation8 + $0x1b4] ss:$12 sps:$4 sm:$0xff]  }
 0x155   :  { %v6360_v20 = vpop.f32.mrf.mxu1  ;;  %v6362_v21 = vadd.f32 %v1981_v13, %v1869_v16  ;;  %v6077_v13 = vld [vmem:[#allocation2 + $0xb8] ss:$28 sps:$4 sm:$0xff]  }
 0x156   :  { %v6364_v22 = vpop.f32.mrf.mxu0  ;;  %3492 = vmatpush1.bf16.msra.mxu0 %v5878_v14  ;;  %v6078_v14 = vld [vmem:[#allocation2 + $0xc0] ss:$28 sps:$4 sm:$0xff]  }
 0x157   :  { %v6366_v23 = vpop.f32.mrf.mxu1  ;;  %3493 = vmatprep.subr.bf16.mxu0 %v5883_v17  ;;  %3605 = vmatpush1.bf16.msra.mxu1 %v5942_v62  ;;  %v6079_v17 = vld [vmem:[#allocation2 + $0xf4] ss:$28 sps:$4 sm:$0xff]   ;;  %v5907_v62 = vld [vmem:[#allocation8 + $0x13c] ss:$12 sps:$4 sm:$0xff]  }
 0x158   :  { %v1876_v26 = vpop.f32.mrf.mxu0  ;;  %2553 = vmatmul.mubr.bf16.gmra.mxu0 %v6071_v28  ;;  %3606 = vmatprep.subr.bf16.mxu1 %v5947_v8 }
 0x159   :  { %v1989_v27 = vpop.f32.mrf.mxu1  ;;  %2666 = vmatmul.mubr.bf16.gmra.mxu1 %v6072_v29  ;;  %v1877_v30 = vadd.f32 %v1876_v26, %v6347_v2  ;;  %2562 = vmatprep.mubr.bf16.mxu0 %v6073_v31  ;;  %v5896_v26 = vld [vmem:[#allocation8] ss:$12 sps:$4 sm:$0xff]  }
 0x15a   :  { %2675 = vmatprep.mubr.bf16.mxu1 %v6256_v18  ;;  %v1878_v32 = vpop.f32.mrf.mxu0  ;;  %3494 = vmatpush1.bf16.msra.mxu0 %v5881_v24  ;;  %v5948_v31 = vld [vmem:[#allocation8 + $0x1e0] ss:$12 sps:$4 sm:$0xff]  }
 0x15b   :  { %v1991_v33 = vpop.f32.mrf.mxu1  ;;  %v6370_v35 = vadd.f32 %v1989_v27, %v1877_v30  ;;  %v1879_v36 = vadd.f32 %v1878_v32, %v6351_v4  ;;  %3495 = vmatprep.subr.bf16.mxu0 %v5886_v25  ;;  %v5950_v27 = vld [vmem:[#allocation8 + $0x1e4] ss:$12 sps:$4 sm:$0xff]   ;;  %v5901_v30 = vld [vmem:[#allocation8 + $0x16c] ss:$12 sps:$4 sm:$0xff]   ;;  %3607 = vmatpush1.bf16.msra.mxu1 %v5945_v10 }
 0x15c   :  { %v6373_v39 = vpop.f32.mrf.mxu0  ;;  %3608 = vmatprep.subr.bf16.mxu1 %v5950_v27  ;;  %v6084_v27 = vld [vmem:[#allocation2 + $0x130] ss:$28 sps:$4 sm:$0xff]  }
 0x15d   :  { %v6375_v40 = vpop.f32.mrf.mxu1  ;;  %v6377_v41 = vadd.f32 %v1991_v33, %v1879_v36  ;;  %v1881_v38 = vadd.f32 %v6373_v39, %v6347_v2 }
 0x15e   :  { %v6379_v43 = vpop.f32.mrf.mxu0  ;;  %3496 = vmatpush1.bf16.msra.mxu0 %v5884_v34 }
 0x15f   :  { %v6381_v44 = vpop.f32.mrf.mxu1  ;;  %3497 = vmatprep.subr.bf16.mxu0 %v5889_v37  ;;  %3609 = vmatpush1.bf16.msra.mxu1 %v5948_v31 }
 0x160   :  { %v1886_v49 = vpop.f32.mrf.mxu0  ;;  %2563 = vmatmul.mubr.bf16.gmra.mxu0 %v6074_v51  ;;  %v6080_v51 = vld [vmem:[#allocation2 + $0xf0] ss:$28 sps:$4 sm:$0xff]   ;;  %3610 = vmatprep.subr.bf16.mxu1 %v5953_v46 }
 0x161   :  { %v1999_v50 = vpop.f32.mrf.mxu1  ;;  %2676 = vmatmul.mubr.bf16.gmra.mxu1 %v6075_v52  ;;  %v1887_v53 = vadd.f32 %v1886_v49, %v6347_v2  ;;  %2572 = vmatprep.mubr.bf16.mxu0 %v6076_v54  ;;  %v6081_v52 = vld [vmem:[#allocation2 + $0xf8] ss:$28 sps:$4 sm:$0xff]   ;;  %v6082_v54 = vld [vmem:[#allocation2 + $0x12c] ss:$28 sps:$4 sm:$0xff]   ;;  %v5908_v46 = vld [vmem:[#allocation8 + $0x120] ss:$12 sps:$4 sm:$0xff]  }
 0x162   :  { %2685 = vmatprep.mubr.bf16.mxu1 %v6256_v18  ;;  %v1888_v55 = vpop.f32.mrf.mxu0  ;;  %3498 = vmatpush1.bf16.msra.mxu0 %v5887_v45  ;;  %v5899_v45 = vld [vmem:[#allocation8 + $0x168] ss:$12 sps:$4 sm:$0xff]  }
 0x163   :  { %v2001_v56 = vpop.f32.mrf.mxu1  ;;  %v6385_v59 = vadd.f32 %v1999_v50, %v1887_v53  ;;  %v1889_v60 = vadd.f32 %v1888_v55, %v6351_v4  ;;  %3499 = vmatprep.subr.bf16.mxu0 %v5892_v47  ;;  %v5904_v47 = vld [vmem:[#allocation8 + $0x154] ss:$12 sps:$4 sm:$0xff]   ;;  %3611 = vmatpush1.bf16.msra.mxu1 %v5951_v48 }
 0x164   :  { %v6388_v63 = vpop.f32.mrf.mxu0  ;;  %3612 = vmatprep.subr.bf16.mxu1 %v5956_v58  ;;  %v5965_v58 = vld [vmem:[#allocation8 + $0x2ec] ss:$12 sps:$4 sm:$0xff]  }
 0x165   :  { %v6390_v0 = vpop.f32.mrf.mxu1  ;;  %v6392_v3 = vadd.f32 %v2001_v56, %v1889_v60 }
 0x166   :  { %v6394_v5 = vpop.f32.mrf.mxu0  ;;  %3500 = vmatpush1.bf16.msra.mxu0 %v5890_v57  ;;  %v5902_v57 = vld [vmem:[#allocation8 + $0x150] ss:$12 sps:$4 sm:$0xff]  }
 0x167   :  { %v6396_v6 = vpop.f32.mrf.mxu1  ;;  %3501 = vmatprep.subr.bf16.mxu0 %v5895_v61 }
 0x168   :  { %v1896_v11 = vpop.f32.mrf.mxu0  ;;  %2573 = vmatmul.mubr.bf16.gmra.mxu0 %v6077_v13  ;;  %v5905_v13 = vld [vmem:[#allocation8 + $0x138] ss:$12 sps:$4 sm:$0xff]  }
 0x169   :  { %v2009_v12 = vpop.f32.mrf.mxu1  ;;  %2686 = vmatmul.mubr.bf16.gmra.mxu1 %v6078_v14  ;;  %v1897_v16 = vadd.f32 %v1896_v11, %v6347_v2  ;;  %2582 = vmatprep.mubr.bf16.mxu0 %v6079_v17  ;;  %v5959_v14 = vld [vmem:[#allocation8 + $0x19c] ss:$12 sps:$4 sm:$0xff]   ;;  %v5957_v17 = vld [vmem:[#allocation8 + $0x198] ss:$12 sps:$4 sm:$0xff]  }
 0x16a   :  { %2695 = vmatprep.mubr.bf16.mxu1 %v6256_v18  ;;  %v1898_v24 = vpop.f32.mrf.mxu0  ;;  %3502 = vmatpush1.bf16.msra.mxu0 %v5893_v7  ;;  %v5954_v7 = vld [vmem:[#allocation8 + $0x1b0] ss:$12 sps:$4 sm:$0xff]  }
 0x16b   :  { %v2011_v25 = vpop.f32.mrf.mxu1  ;;  %v6400_v28 = vadd.f32 %v2009_v12, %v1897_v16  ;;  %v1899_v29 = vadd.f32 %v1898_v24, %v6351_v4  ;;  %3503 = vmatprep.subr.bf16.mxu0 %v5898_v9  ;;  %v5910_v16 = vld [vmem:[#allocation8 + $0x124] ss:$12 sps:$4 sm:$0xff]   ;;  %3613 = vmatpush1.bf16.msra.mxu1 %v5954_v7 }
 0x16c   :  { %v6403_v32 = vpop.f32.mrf.mxu0  ;;  %3614 = vmatprep.subr.bf16.mxu1 %v5959_v14  ;;  %v6086_v14 = vld [vmem:[#allocation2 + $0x160] ss:$28 sps:$4 sm:$0xff]  }
 0x16d   :  { %v6405_v33 = vpop.f32.mrf.mxu1  ;;  %v6407_v34 = vadd.f32 %v2011_v25, %v1899_v29 }
 0x16e   :  { %v6409_v36 = vpop.f32.mrf.mxu0  ;;  %3504 = vmatpush1.bf16.msra.mxu0 %v5896_v26  ;;  %v6083_v26 = vld [vmem:[#allocation2 + $0x128] ss:$28 sps:$4 sm:$0xff]  }
 0x16f   :  { %v6411_v37 = vpop.f32.mrf.mxu1  ;;  %3505 = vmatprep.subr.bf16.mxu0 %v5901_v30  ;;  %v6085_v30 = vld [vmem:[#allocation2 + $0x164] ss:$28 sps:$4 sm:$0xff]   ;;  %3615 = vmatpush1.bf16.msra.mxu1 %v5957_v17 }
 0x170   :  { %v1906_v49 = vpop.f32.mrf.mxu0  ;;  %2583 = vmatmul.mubr.bf16.gmra.mxu0 %v6080_v51  ;;  %v5960_v51 = vld [vmem:[#allocation8 + $0x180] ss:$12 sps:$4 sm:$0xff]  }
 0x171   :  { %v2019_v50 = vpop.f32.mrf.mxu1  ;;  %2696 = vmatmul.mubr.bf16.gmra.mxu1 %v6081_v52  ;;  %v1907_v53 = vadd.f32 %v1906_v49, %v6347_v2  ;;  %2592 = vmatprep.mubr.bf16.mxu0 %v6082_v54 }
 0x172   :  { %2705 = vmatprep.mubr.bf16.mxu1 %v6256_v18  ;;  %v1908_v55 = vpop.f32.mrf.mxu0  ;;  %3506 = vmatpush2.bf16.msra.mxu0 %v5899_v45 }
 0x173   :  { %v2021_v56 = vpop.f32.mrf.mxu1  ;;  %v6415_v60 = vadd.f32 %v2019_v50, %v1907_v53  ;;  %v1909_v61 = vadd.f32 %v1908_v55, %v6351_v4  ;;  %3507 = vmatprep.subr.bf16.mxu0 %v5904_v47  ;;  %v5962_v47 = vld [vmem:[#allocation8 + $0x184] ss:$12 sps:$4 sm:$0xff]   ;;  %v5913_v50 = vld [vmem:[#allocation8 + $0x10c] ss:$12 sps:$4 sm:$0xff]  }
 0x174   :  { %v6418_v8 = vpop.f32.mrf.mxu0  ;;  %3616 = vmatprep.subr.bf16.mxu1 %v5962_v47 }
 0x175   :  { %v6420_v9 = vpop.f32.mrf.mxu1  ;;  %v6422_v10 = vadd.f32 %v2021_v56, %v1909_v61  ;;  %v5916_v61 = vld [vmem:[#allocation8 + $0xf4] ss:$12 sps:$4 sm:$0xff]   ;;  %3617 = vmatpush1.bf16.msra.mxu1 %v5960_v51 }
 0x176   :  { %v6424_v11 = vpop.f32.mrf.mxu0  ;;  %3508 = vmatpush2.bf16.msra.mxu0 %v5902_v57  ;;  %v5911_v57 = vld [vmem:[#allocation8 + $0x108] ss:$12 sps:$4 sm:$0xff]   ;;  %3618 = vmatprep.subr.bf16.mxu1 %v5965_v58 }
 0x177   :  { %v6426_v12 = vpop.f32.mrf.mxu1  ;;  %3509 = vmatprep.subr.bf16.mxu0 %v5907_v62  ;;  %v5963_v62 = vld [vmem:[#allocation8 + $0x2e8] ss:$12 sps:$4 sm:$0xff]  }
 0x178   :  { %v1916_v24 = vpop.f32.mrf.mxu0  ;;  %2593 = vmatmul.mubr.bf16.gmra.mxu0 %v6083_v26  ;;  %v5971_v58 = vld [vmem:[#allocation8 + $0x2bc] ss:$12 sps:$4 sm:$0xff]  }
 0x179   :  { %v2029_v25 = vpop.f32.mrf.mxu1  ;;  %2706 = vmatmul.mubr.bf16.gmra.mxu1 %v6084_v27  ;;  %v1917_v29 = vadd.f32 %v1916_v24, %v6347_v2  ;;  %2602 = vmatprep.mubr.bf16.mxu0 %v6085_v30  ;;  %v6088_v24 = vld [vmem:[#allocation2 + $0x19c] ss:$28 sps:$4 sm:$0xff]   ;;  %v5914_v27 = vld [vmem:[#allocation8 + $0xf0] ss:$12 sps:$4 sm:$0xff]  }
 0x17a   :  { %2715 = vmatprep.mubr.bf16.mxu1 %v6256_v18  ;;  %v1918_v31 = vpop.f32.mrf.mxu0  ;;  %3510 = vmatpush2.bf16.msra.mxu0 %v5905_v13 }
 0x17b   :  { %v2031_v45 = vpop.f32.mrf.mxu1  ;;  %v6430_v48 = vadd.f32 %v2029_v25, %v1917_v29  ;;  %v1919_v49 = vadd.f32 %v1918_v31, %v6351_v4  ;;  %3511 = vmatprep.subr.bf16.mxu0 %v5910_v16  ;;  %v6087_v16 = vld [vmem:[#allocation2 + $0x168] ss:$28 sps:$4 sm:$0xff]   ;;  %3619 = vmatpush2.bf16.msra.mxu1 %v5963_v62 }
 0x17c   :  { %v6433_v52 = vpop.f32.mrf.mxu0  ;;  %v5968_v29 = vld [vmem:[#allocation8 + $0x2d4] ss:$12 sps:$4 sm:$0xff]  }
 0x17d   :  { %v6435_v53 = vpop.f32.mrf.mxu1  ;;  %v6437_v54 = vadd.f32 %v2031_v45, %v1919_v49  ;;  %v5919_v45 = vld [vmem:[#allocation8 + $0xdc] ss:$12 sps:$4 sm:$0xff]   ;;  %3620 = vmatprep.subr.bf16.mxu1 %v5968_v29 }
 0x17e   :  { %v6439_v55 = vpop.f32.mrf.mxu0  ;;  %3512 = vmatpush2.bf16.msra.mxu0 %v5908_v46  ;;  %v5966_v46 = vld [vmem:[#allocation8 + $0x2d0] ss:$12 sps:$4 sm:$0xff]  }
 0x17f   :  { %v6441_v56 = vpop.f32.mrf.mxu1  ;;  %3513 = vmatprep.subr.bf16.mxu0 %v5913_v50  ;;  %3621 = vmatpush2.bf16.msra.mxu1 %v5966_v46  ;;  %v5972_v46 = vld [vmem:[#allocation8 + $0x2a0] ss:$12 sps:$4 sm:$0xff]  }
 0x180   :  { %v1926_v7 = vpop.f32.mrf.mxu0  ;;  %2603 = vmatmul.mubr.bf16.gmra.mxu0 %v6086_v14  ;;  %v6089_v14 = vld [vmem:[#allocation2 + $0x198] ss:$28 sps:$4 sm:$0xff]   ;;  %3622 = vmatprep.subr.bf16.mxu1 %v5971_v58 }
 0x181   :  { %v2039_v13 = vpop.f32.mrf.mxu1  ;;  %2716 = vmatmul.mubr.bf16.gmra.mxu1 %v6087_v16  ;;  %v1927_v17 = vadd.f32 %v1926_v7, %v6347_v2  ;;  %2612 = vmatprep.mubr.bf16.mxu0 %v6088_v24  ;;  %v5922_v7 = vld [vmem:[#allocation8 + $0xc4] ss:$12 sps:$4 sm:$0xff]   ;;  %v6090_v16 = vld [vmem:[#allocation2 + $0x1a0] ss:$28 sps:$4 sm:$0xff]  }
 0x182   :  { %2725 = vmatprep.mubr.bf16.mxu1 %v6256_v18  ;;  %v1928_v25 = vpop.f32.mrf.mxu0  ;;  %3514 = vmatpush2.bf16.msra.mxu0 %v5911_v57  ;;  %v5917_v57 = vld [vmem:[#allocation8 + $0xd8] ss:$12 sps:$4 sm:$0xff]  }
 0x183   :  { %v2041_v26 = vpop.f32.mrf.mxu1  ;;  %v6445_v30 = vadd.f32 %v2039_v13, %v1927_v17  ;;  %v1929_v31 = vadd.f32 %v1928_v25, %v6351_v4  ;;  %3515 = vmatprep.subr.bf16.mxu0 %v5916_v61  ;;  %v5969_v61 = vld [vmem:[#allocation8 + $0x2b8] ss:$12 sps:$4 sm:$0xff]  }
 0x184   :  { %v6448_v47 = vpop.f32.mrf.mxu0  ;;  %3623 = vmatpush2.bf16.msra.mxu1 %v5969_v61 }
 0x185   :  { %v6450_v49 = vpop.f32.mrf.mxu1  ;;  %v6452_v18 = vadd.f32 %v2041_v26, %v1929_v31  ;;  %v5920_v26 = vld [vmem:[#allocation8 + $0xc0] ss:$12 sps:$4 sm:$0xff]  }
 0x186   :  { %v6454_v50 = vpop.f32.mrf.mxu0  ;;  %3516 = vmatpush2.bf16.msra.mxu0 %v5914_v27  ;;  %v5974_v27 = vld [vmem:[#allocation8 + $0x2a4] ss:$12 sps:$4 sm:$0xff]  }
 0x187   :  { %v6456_v51 = vpop.f32.mrf.mxu1  ;;  %3517 = vmatprep.subr.bf16.mxu0 %v5919_v45  ;;  %v5923_v45 = vld [vmem:[#allocation8 + $0x170] ss:$12 sps:$4 sm:$0xff]   ;;  %3624 = vmatprep.subr.bf16.mxu1 %v5974_v27 }
 0x188   :  { %v1936_v62 = vpop.f32.mrf.mxu0  ;;  %2613 = vmatmul.mubr.bf16.gmra.mxu0 %v6089_v14  ;;  %3625 = vmatpush2.bf16.msra.mxu1 %v5972_v46 }
 0x189   :  { %v2049_v13 = vpop.f32.mrf.mxu1  ;;  %2726 = vmatmul.mubr.bf16.gmra.mxu1 %v6090_v16  ;;  %v1937_v17 = vadd.f32 %v1936_v62, %v6347_v2  ;;  %v1871_v16 = vadd.f32 %v6358_v19, %v6347_v2 }
 0x18a   :  { %v1938_v24 = vpop.f32.mrf.mxu0  ;;  %3518 = vmatpush2.bf16.msra.mxu0 %v5917_v57 }
 0x18b   :  { %v2051_v25 = vpop.f32.mrf.mxu1  ;;  %v6459_v29 = vadd.f32 %v2049_v13, %v1937_v17  ;;  %v1939_v31 = vadd.f32 %v1938_v24, %v6351_v4  ;;  %3519 = vmatprep.subr.bf16.mxu0 %v5922_v7  ;;  %v5977_v13 = vld [vmem:[#allocation8 + $0x28c] ss:$12 sps:$4 sm:$0xff]   ;;  %v5975_v7 = vld [vmem:[#allocation8 + $0x288] ss:$12 sps:$4 sm:$0xff]   ;;  %v1873_v24 = vadd.f32 %v6364_v22, %v6351_v4  ;;  %v1984_v1 = vadd.f32 %v6360_v20, %v1871_v16 }
 0x18c   :  { %v6462_v42 = vpop.f32.mrf.mxu0  ;;  %3626 = vmatprep.subr.bf16.mxu1 %v5977_v13  ;;  %v5983_v22 = vld [vmem:[#allocation8 + $0x25c] ss:$12 sps:$4 sm:$0xff]  }
 0x18d   :  { %7117 = vst [vmem:[#allocation20_spill] sm:$0xff] %v6459_v29  ;;  %7118 = vst [vmem:[#allocation21_spill] sm:$0xff] %v6462_v42  ;;  %v6464_v14 = vpop.f32.mrf.mxu1  ;;  %v6466_v62 = vadd.f32 %v2051_v25, %v1939_v31  ;;  %v5980_v31 = vld [vmem:[#allocation8 + $0x274] ss:$12 sps:$4 sm:$0xff]   ;;  %3627 = vmatpush2.bf16.msra.mxu1 %v5975_v7  ;;  %v1986_v29 = vadd.f32 %v6366_v23, %v1873_v24  ;;  %v1994_v42 = vadd.f32 %v6375_v40, %v1881_v38 }
 0x18e   :  { %7119 = vst [vmem:[#allocation22_spill] sm:$0xff] %v6464_v14  ;;  %v6468_v58 = vpop.f32.mrf.mxu0  ;;  %3520 = vmatpush2.bf16.msra.mxu0 %v5920_v26  ;;  %3628 = vmatprep.subr.bf16.mxu1 %v5980_v31  ;;  %v1891_v38 = vadd.f32 %v6388_v63, %v6347_v2 }
 0x18f   :  { %7120 = vst [vmem:[#allocation23_spill] sm:$0xff] %v6466_v62  ;;  %7121 = vst [vmem:[#allocation24_spill] sm:$0xff] %v6468_v58  ;;  %v6470_v57 = vpop.f32.mrf.mxu1  ;;  %5155 = vmatprep.subr.bf16.mxu0 %v5923_v45 }
 0x190   :  { %7122 = vst [vmem:[#allocation25_spill] sm:$0xff] %v6470_v57  ;;  %v2092_v61 = vpop.f32.mrf.mxu0  ;;  %v5978_v57 = vld [vmem:[#allocation8 + $0x270] ss:$12 sps:$4 sm:$0xff]  }
 0x191   :  { %v2205_v17 = vpop.f32.mrf.mxu1  ;;  %v2093_v19 = vadd.f32 %v2092_v61, %v6355_v15  ;;  %3629 = vmatpush2.bf16.msra.mxu1 %v5978_v57  ;;  %v1883_v61 = vadd.f32 %v6379_v43, %v6351_v4 }
 0x192   :  { %v2094_v25 = vpop.f32.mrf.mxu0  ;;  %3630 = vmatprep.subr.bf16.mxu1 %v5983_v22  ;;  %v5925_v22 = vld [vmem:[#allocation8 + $0x158] ss:$12 sps:$4 sm:$0xff]  }
 0x193   :  { %v2207_v27 = vpop.f32.mrf.mxu1  ;;  %v2095_v26 = vadd.f32 %v2094_v25, %v6362_v21  ;;  %v5981_v21 = vld [vmem:[#allocation8 + $0x258] ss:$12 sps:$4 sm:$0xff]   ;;  %v2206_v7 = vadd.f32 %v2205_v17, %v2093_v19  ;;  %v1996_v43 = vadd.f32 %v6381_v44, %v1883_v61 }
 0x194   :  { %v2096_v45 = vpop.f32.mrf.mxu0 }
 0x195   :  { %v2209_v46 = vpop.f32.mrf.mxu1  ;;  %v2097_v13 = vadd.f32 %v2096_v45, %v1984_v1  ;;  %v2208_v58 = vadd.f32 %v2207_v27, %v2095_v26  ;;  %v5986_v45 = vld [vmem:[#allocation8 + $0x244] ss:$12 sps:$4 sm:$0xff]   ;;  %3631 = vmatpush2.bf16.msra.mxu1 %v5981_v21  ;;  %v2736_v57 = vmax.f32 %v2206_v7, 0.0  ;;  %v1893_v7 = vadd.f32 %v6394_v5, %v6351_v4 }
 0x196   :  { %v2098_v62 = vpop.f32.mrf.mxu0  ;;  %3632 = vmatprep.subr.bf16.mxu1 %v5986_v45 }
 0x197   :  { %v2211_v14 = vpop.f32.mrf.mxu1  ;;  %v2210_v20 = vadd.f32 %v2209_v46, %v2097_v13  ;;  %v2099_v16 = vadd.f32 %v2098_v62, %v1986_v29  ;;  %v2737_v39 = vmax.f32 %v2208_v58, 0.0  ;;  %v5984_v62 = vld [vmem:[#allocation8 + $0x240] ss:$12 sps:$4 sm:$0xff]   ;;  %v5924_v13 = vld [vmem:[#allocation8 + $0xb0] ss:$12 sps:$4 sm:$0xff]   ;;  %v2006_v5 = vadd.f32 %v6396_v6, %v1893_v7 }
 0x198   :  { %v2102_v25 = vpop.f32.mrf.mxu0 }
 0x199   :  { %v2215_v15 = vpop.f32.mrf.mxu1  ;;  %v2212_v23 = vadd.f32 %v2211_v14, %v2099_v16  ;;  %v2740_v1 = vmax.f32 %v2210_v20, 0.0  ;;  %v2103_v17 = vadd.f32 %v2102_v25, %v6370_v35  ;;  %3633 = vmatpush2.bf16.msra.mxu1 %v5984_v62  ;;  %v5926_v25 = vld [vmem:[#allocation8 + $0x98] ss:$12 sps:$4 sm:$0xff]  }
 0x19a   :  { %v2104_v24 = vpop.f32.mrf.mxu0 }
 0x19b   :  { %v2217_v31 = vpop.f32.mrf.mxu1  ;;  %v2741_v27 = vmax.f32 %v2212_v23, 0.0  ;;  %v2105_v29 = vadd.f32 %v2104_v24, %v6377_v41  ;;  %v6492_v40 = vpack.c.bf16 %v2740_v1, %v2736_v57  ;;  %v2216_v21 = vadd.f32 %v2215_v15, %v2103_v17  ;;  %v5927_v24 = vld [vmem:[#allocation8 + $0x140] ss:$12 sps:$4 sm:$0xff]  }
 0x19c   :  { %v2106_v26 = vpop.f32.mrf.mxu0 }
 0x19d   :  { %v2219_v19 = vpop.f32.mrf.mxu1  ;;  %v2107_v14 = vadd.f32 %v2106_v26, %v1994_v42  ;;  %v6488_v46 = vpack.c.bf16 %v2741_v27, %v2737_v39  ;;  %v2218_v20 = vadd.f32 %v2217_v31, %v2105_v29  ;;  %v2004_v31 = vadd.f32 %v6390_v0, %v1891_v38  ;;  %v5929_v38 = vld [vmem:[#allocation8 + $0x128] ss:$12 sps:$4 sm:$0xff]  }
 0x19e   :  { %v2108_v41 = vpop.f32.mrf.mxu0  ;;  %v2744_v27 = vmax.f32 %v2216_v21, 0.0  ;;  %v1901_v0 = vadd.f32 %v6403_v32, %v6347_v2  ;;  %v1903_v32 = vadd.f32 %v6409_v36, %v6351_v4 }
 0x19f   :  { %v2221_v58 = vpop.f32.mrf.mxu1  ;;  %v2220_v16 = vadd.f32 %v2219_v19, %v2107_v14  ;;  %v2109_v35 = vadd.f32 %v2108_v41, %v1996_v43  ;;  %3521 = vmatprep.mubr.bf16.mxu0 %v6488_v46  ;;  %v2745_v45 = vmax.f32 %v2218_v20, 0.0  ;;  %v5928_v19 = vld [vmem:[#allocation8 + $0x80] ss:$12 sps:$4 sm:$0xff]   ;;  %v5987_v43 = vld [vmem:[#allocation8 + $0x2f0] ss:$12 sps:$4 sm:$0xff]  }
 0x1a0   :  { %v2112_v44 = vpop.f32.mrf.mxu0  ;;  %3522 = vmatmul.mubr.bf16.vlgmr.msra.gmra.mxu0 %v6492_v40  ;;  %5219 = vmatprep.subr.bf16.mxu1 %v5987_v43  ;;  %v2016_v36 = vadd.f32 %v6411_v37, %v1903_v32 }
 0x1a1   :  { %v2225_v42 = vpop.f32.mrf.mxu1  ;;  %v2222_v63 = vadd.f32 %v2221_v58, %v2109_v35  ;;  %5156 = vmatpush3.bf16.msra.mxu0 %v5924_v13  ;;  %v2748_v61 = vmax.f32 %v2220_v16, 0.0  ;;  %v2113_v29 = vadd.f32 %v2112_v44, %v6385_v59  ;;  %v5930_v35 = vld [vmem:[#allocation8 + $0x68] ss:$12 sps:$4 sm:$0xff]  }
 0x1a2   :  { %v2114_v23 = vpop.f32.mrf.mxu0  ;;  %5157 = vmatprep.subr.bf16.mxu0 %v5925_v22 }
 0x1a3   :  { %v2227_v1 = vpop.f32.mrf.mxu1  ;;  %v2749_v39 = vmax.f32 %v2222_v63, 0.0  ;;  %v2115_v15 = vadd.f32 %v2114_v23, %v6392_v3  ;;  %v6506_v14 = vpack.c.bf16 %v2748_v61, %v2744_v27  ;;  %v2226_v6 = vadd.f32 %v2225_v42, %v2113_v29  ;;  %v5931_v63 = vld [vmem:[#allocation8 + $0x110] ss:$12 sps:$4 sm:$0xff]  }
 0x1a4   :  { %v2116_v62 = vpop.f32.mrf.mxu0  ;;  %v5932_v27 = vld [vmem:[#allocation8 + $0x50] ss:$12 sps:$4 sm:$0xff]  }
 0x1a5   :  { %v2229_v57 = vpop.f32.mrf.mxu1  ;;  %v2117_v17 = vadd.f32 %v2116_v62, %v2004_v31  ;;  %v6502_v26 = vpack.c.bf16 %v2749_v39, %v2745_v45  ;;  %5158 = vmatpush3.bf16.msra.mxu0 %v5926_v25  ;;  %v2228_v59 = vadd.f32 %v2227_v1, %v2115_v15  ;;  %v2014_v25 = vadd.f32 %v6405_v33, %v1901_v0 }
 0x1a6   :  { %v2118_v13 = vpop.f32.mrf.mxu0  ;;  %5159 = vmatprep.subr.bf16.mxu0 %v5927_v24  ;;  %v2752_v1 = vmax.f32 %v2226_v6, 0.0  ;;  %v1913_v0 = vadd.f32 %v6424_v11, %v6351_v4 }
 0x1a7   :  { %v2231_v3 = vpop.f32.mrf.mxu1  ;;  %v2230_v41 = vadd.f32 %v2229_v57, %v2117_v17  ;;  %v2119_v58 = vadd.f32 %v2118_v13, %v2006_v5  ;;  %3531 = vmatprep.mubr.bf16.mxu0 %v6502_v26  ;;  %v2753_v61 = vmax.f32 %v2228_v59, 0.0  ;;  %v5933_v57 = vld [vmem:[#allocation8 + $0xf8] ss:$12 sps:$4 sm:$0xff]  }
 0x1a8   :  { %v2122_v22 = vpop.f32.mrf.mxu0  ;;  %3532 = vmatmul.mubr.bf16.gmra.mxu0 %v6506_v14  ;;  %v2026_v11 = vadd.f32 %v6426_v12, %v1913_v0 }
 0x1a9   :  { %v2235_v20 = vpop.f32.mrf.mxu1  ;;  %v2232_v16 = vadd.f32 %v2231_v3, %v2119_v58  ;;  %5160 = vmatpush3.bf16.msra.mxu0 %v5928_v19  ;;  %v2756_v21 = vmax.f32 %v2230_v41, 0.0  ;;  %v2123_v24 = vadd.f32 %v2122_v22, %v6400_v28  ;;  %v5934_v3 = vld [vmem:[#allocation8 + $0x38] ss:$12 sps:$4 sm:$0xff]  }
 0x1aa   :  { %v2124_v44 = vpop.f32.mrf.mxu0  ;;  %5161 = vmatprep.subr.bf16.mxu0 %v5929_v38 }
 0x1ab   :  { %v2237_v7 = vpop.f32.mrf.mxu1  ;;  %v2757_v23 = vmax.f32 %v2232_v16, 0.0  ;;  %v2125_v42 = vadd.f32 %v2124_v44, %v6407_v34  ;;  %v6518_v29 = vpack.c.bf16 %v2756_v21, %v2752_v1  ;;  %v1911_v34 = vadd.f32 %v6418_v8, %v6347_v2  ;;  %v5935_v8 = vld [vmem:[#allocation8 + $0xe0] ss:$12 sps:$4 sm:$0xff]  }
 0x1ac   :  { %v2126_v31 = vpop.f32.mrf.mxu0  ;;  %v2236_v37 = vadd.f32 %v2235_v20, %v2123_v24 }
 0x1ad   :  { %v2239_v45 = vpop.f32.mrf.mxu1  ;;  %v2127_v39 = vadd.f32 %v2126_v31, %v2014_v25  ;;  %v6516_v15 = vpack.c.bf16 %v2757_v23, %v2753_v61  ;;  %5162 = vmatpush3.bf16.msra.mxu0 %v5930_v35  ;;  %v2238_v5 = vadd.f32 %v2237_v7, %v2125_v42  ;;  %v2024_v58 = vadd.f32 %v6420_v9, %v1911_v34  ;;  %v5937_v23 = vld [vmem:[#allocation8 + $0xc8] ss:$12 sps:$4 sm:$0xff]  }
 0x1ae   :  { %v2128_v62 = vpop.f32.mrf.mxu0  ;;  %5163 = vmatprep.subr.bf16.mxu0 %v5931_v63  ;;  %v2760_v32 = vmax.f32 %v2236_v37, 0.0  ;;  %v5936_v63 = vld [vmem:[#allocation8 + $0x20] ss:$12 sps:$4 sm:$0xff]  }
 0x1af   :  { %v2241_v33 = vpop.f32.mrf.mxu1  ;;  %v2240_v28 = vadd.f32 %v2239_v45, %v2127_v39  ;;  %v2129_v17 = vadd.f32 %v2128_v62, %v2016_v36  ;;  %3541 = vmatprep.mubr.bf16.mxu0 %v6516_v15  ;;  %v2761_v6 = vmax.f32 %v2238_v5, 0.0  ;;  %v1923_v45 = vadd.f32 %v6439_v55, %v6351_v4  ;;  %v5938_v39 = vld [vmem:[#allocation8 + $0x8] ss:$12 sps:$4 sm:$0xff]  }
 0x1b0   :  { %v2132_v19 = vpop.f32.mrf.mxu0  ;;  %3542 = vmatmul.mubr.bf16.gmra.mxu0 %v6518_v29 }
 0x1b1   :  { %v2245_v43 = vpop.f32.mrf.mxu1  ;;  %v2242_v13 = vadd.f32 %v2241_v33, %v2129_v17  ;;  %5164 = vmatpush3.bf16.msra.mxu0 %v5932_v27  ;;  %v2764_v38 = vmax.f32 %v2240_v28, 0.0  ;;  %v2133_v16 = vadd.f32 %v2132_v19, %v6415_v60  ;;  %v2036_v55 = vadd.f32 %v6441_v56, %v1923_v45 }
 0x1b2   :  { %v2134_v59 = vpop.f32.mrf.mxu0  ;;  %5165 = vmatprep.subr.bf16.mxu0 %v5933_v57  ;;  %v1933_v56 = vadd.f32 %v6454_v50, %v6351_v4 }
 0x1b3   :  { %v2247_v41 = vpop.f32.mrf.mxu1  ;;  %v2765_v22 = vmax.f32 %v2242_v13, 0.0  ;;  %v2135_v20 = vadd.f32 %v2134_v59, %v6422_v10  ;;  %v6532_v25 = vpack.c.bf16 %v2764_v38, %v2760_v32  ;;  %v1921_v10 = vadd.f32 %v6433_v52, %v6347_v2 }
 0x1b4   :  { %v2136_v35 = vpop.f32.mrf.mxu0  ;;  %v2246_v12 = vadd.f32 %v2245_v43, %v2133_v16 }
 0x1b5   :  { %v2249_v21 = vpop.f32.mrf.mxu1  ;;  %v2137_v44 = vadd.f32 %v2136_v35, %v2024_v58  ;;  %v6530_v7 = vpack.c.bf16 %v2765_v22, %v2761_v6  ;;  %5166 = vmatpush3.bf16.msra.mxu0 %v5934_v3  ;;  %v2248_v42 = vadd.f32 %v2247_v41, %v2135_v20  ;;  %v2034_v52 = vadd.f32 %v6435_v53, %v1921_v10 }
 0x1b6   :  { %v2138_v61 = vpop.f32.mrf.mxu0  ;;  %5167 = vmatprep.subr.bf16.mxu0 %v5935_v8  ;;  %v2768_v28 = vmax.f32 %v2246_v12, 0.0  ;;  %v1931_v53 = vadd.f32 %v6448_v47, %v6347_v2 }
 0x1b7   :  { %v2251_v9 = vpop.f32.mrf.mxu1  ;;  %v2250_v60 = vadd.f32 %v2249_v21, %v2137_v44  ;;  %v2139_v1 = vadd.f32 %v2138_v61, %v2026_v11  ;;  %3551 = vmatprep.mubr.bf16.mxu0 %v6530_v7  ;;  %v2769_v57 = vmax.f32 %v2248_v42, 0.0 }
 0x1b8   :  { %v2142_v24 = vpop.f32.mrf.mxu0  ;;  %3552 = vmatmul.mubr.bf16.gmra.mxu0 %v6532_v25  ;;  %v2044_v16 = vadd.f32 %v6450_v49, %v1931_v53  ;;  %v7123_v49 = vld [vmem:[#allocation21_spill] sm:$0xff] }
 0x1b9   :  { %v2255_v31 = vpop.f32.mrf.mxu1  ;;  %v2252_v36 = vadd.f32 %v2251_v9, %v2139_v1  ;;  %5168 = vmatpush3.bf16.msra.mxu0 %v5936_v63  ;;  %v2772_v27 = vmax.f32 %v2250_v60, 0.0  ;;  %v2143_v17 = vadd.f32 %v2142_v24, %v6430_v48  ;;  %v2046_v9 = vadd.f32 %v6456_v51, %v1933_v56  ;;  %v7124_v51 = vld [vmem:[#allocation24_spill] sm:$0xff] }
 0x1ba   :  { %v2144_v62 = vpop.f32.mrf.mxu0  ;;  %5169 = vmatprep.subr.bf16.mxu0 %v5937_v23  ;;  %v1941_v1 = vadd.f32 %v7123_v49, %v6347_v2 }
 0x1bb   :  { %v2257_v33 = vpop.f32.mrf.mxu1  ;;  %v2773_v34 = vmax.f32 %v2252_v36, 0.0  ;;  %v2145_v5 = vadd.f32 %v2144_v62, %v6437_v54  ;;  %v6546_v13 = vpack.c.bf16 %v2772_v27, %v2768_v28  ;;  %v2256_v48 = vadd.f32 %v2255_v31, %v2143_v17  ;;  %v7125_v27 = vld [vmem:[#allocation19_spill] sm:$0xff] }
 0x1bc   :  { %v2146_v37 = vpop.f32.mrf.mxu0  ;;  %v1943_v36 = vadd.f32 %v7124_v51, %v6351_v4  ;;  %v7114_v62 = vsub.s32 2, %v7125_v27  ;;  %v418_v2 = vsub.s32 3, %v7125_v27  ;;  %v7129_v4 = vld [vmem:[#allocation25_spill] sm:$0xff] }
 0x1bd   :  { %v2259_v19 = vpop.f32.mrf.mxu1  ;;  %v2147_v43 = vadd.f32 %v2146_v37, %v2034_v52  ;;  %v6544_v0 = vpack.c.bf16 %v2773_v34, %v2769_v57  ;;  %5170 = vmatpush3.bf16.msra.mxu0 %v5938_v39  ;;  %v2258_v59 = vadd.f32 %v2257_v33, %v2145_v5  ;;  %v2776_v11 = vmax.f32 %v2256_v48, 0.0  ;;  %v7126_v34 = vld [vmem:[#allocation22_spill] sm:$0xff]  ;;  %v7127_v37 = vld [vmem:[#allocation23_spill] sm:$0xff] }
 0x1be   :  { %v2148_v3 = vpop.f32.mrf.mxu0  ;;  %v2054_v5 = vadd.f32 %v7126_v34, %v1941_v1  ;;  %v6091_v48 = vld [vmem:[#allocation7] sm:$0xf] }
 0x1bf   :  { %v2261_v38 = vpop.f32.mrf.mxu1  ;;  %v2260_v54 = vadd.f32 %v2259_v19, %v2147_v43  ;;  %v2149_v41 = vadd.f32 %v2148_v3, %v2036_v55  ;;  %3561 = vmatprep.mubr.bf16.mxu0 %v6544_v0  ;;  %v2777_v47 = vmax.f32 %v2258_v59, 0.0  ;;  %v7128_v43 = vld [vmem:[#allocation20_spill] sm:$0xff]  ;;  %v2056_v59 = vadd.f32 %v7129_v4, %v1943_v36 }
 0x1c0   :  { %v2152_v8 = vpop.f32.mrf.mxu0  ;;  %3562 = vmatmul.mubr.bf16.gmra.mxu0 %v6546_v13 }
 0x1c1   :  { %v2265_v58 = vpop.f32.mrf.mxu1  ;;  %v2262_v6 = vadd.f32 %v2261_v38, %v2149_v41  ;;  %v2780_v22 = vmax.f32 %v2260_v54, 0.0  ;;  %v2153_v44 = vadd.f32 %v2152_v8, %v6445_v30  ;;  %v6578_v8 = vrot.slane %v6091_v48, %v7114_v62 }
 0x1c2   :  { %v2154_v20 = vpop.f32.mrf.mxu0 }
 0x1c3   :  { %v2267_v32 = vpop.f32.mrf.mxu1  ;;  %v2781_v35 = vmax.f32 %v2262_v6, 0.0  ;;  %v2155_v21 = vadd.f32 %v2154_v20, %v6452_v18  ;;  %v6560_v50 = vpack.c.bf16 %v2780_v22, %v2776_v11  ;;  %v2266_v30 = vadd.f32 %v2265_v58, %v2153_v44 }
 0x1c4   :  { %v2156_v63 = vpop.f32.mrf.mxu0 }
 0x1c5   :  { %v2269_v61 = vpop.f32.mrf.mxu1  ;;  %v2157_v23 = vadd.f32 %v2156_v63, %v2044_v16  ;;  %v6558_v10 = vpack.c.bf16 %v2781_v35, %v2777_v47  ;;  %v2268_v12 = vadd.f32 %v2267_v32, %v2155_v21  ;;  %v2784_v55 = vmax.f32 %v2266_v30, 0.0 }
 0x1c6   :  { %v2158_v42 = vpop.f32.mrf.mxu0  ;;  %v6583_v16 = vrot.slane %v6091_v48, %v418_v2 }
 0x1c7   :  { %v2271_v60 = vpop.f32.mrf.mxu1  ;;  %v2270_v24 = vadd.f32 %v2269_v61, %v2157_v23  ;;  %v2159_v18 = vadd.f32 %v2158_v42, %v2046_v9  ;;  %3571 = vmatprep.mubr.bf16.mxu0 %v6558_v10  ;;  %v2785_v28 = vmax.f32 %v2268_v12, 0.0 }
 0x1c8   :  { %v2162_v31 = vpop.f32.mrf.mxu0  ;;  %3572 = vmatmul.mubr.bf16.gmra.mxu0 %v6560_v50 }
 0x1c9   :  { %v2275_v45 = vpop.f32.mrf.mxu1  ;;  %v2272_v39 = vadd.f32 %v2271_v60, %v2159_v18  ;;  %v2788_v33 = vmax.f32 %v2270_v24, 0.0  ;;  %v2163_v3 = vadd.f32 %v2162_v31, %v7128_v43 }
 0x1ca   :  { %v2164_v52 = vpop.f32.mrf.mxu0 }
 0x1cb   :  { %v2277_v57 = vpop.f32.mrf.mxu1  ;;  %v2789_v17 = vmax.f32 %v2272_v39, 0.0  ;;  %v2165_v19 = vadd.f32 %v2164_v52, %v7127_v37  ;;  %v6580_v58 = vpack.c.bf16 %v2788_v33, %v2784_v55  ;;  %v2276_v47 = vadd.f32 %v2275_v45, %v2163_v3 }
 0x1cc   :  { %v2166_v38 = vpop.f32.mrf.mxu0 }
 0x1cd   :  { %v2279_v53 = vpop.f32.mrf.mxu1  ;;  %v2167_v54 = vadd.f32 %v2166_v38, %v2054_v5  ;;  %v6574_v41 = vpack.c.bf16 %v2789_v17, %v2785_v28  ;;  %v2278_v22 = vadd.f32 %v2277_v57, %v2165_v19  ;;  %v2792_v1 = vmax.f32 %v2276_v47, 0.0 }
 0x1ce   :  { %v2168_v56 = vpop.f32.mrf.mxu0 }
 0x1cf   :  { %v2281_v6 = vpop.f32.mrf.mxu1  ;;  %v2280_v20 = vadd.f32 %v2279_v53, %v2167_v54  ;;  %v2169_v32 = vadd.f32 %v2168_v56, %v2056_v59  ;;  %3581 = vmatprep.mubr.bf16.mxu0 %v6574_v41  ;;  %v2793_v23 = vmax.f32 %v2278_v22, 0.0 }
 0x1d0   :  { %v2318_v35 = vpop.f32.mrf.mxu0  ;;  %3582 = vmatmul.mubr.bf16.gmra.mxu0 %v6580_v58 }
 0x1d1   :  { %v2431_v21 = vpop.f32.mrf.mxu1  ;;  %v2282_v11 = vadd.f32 %v2281_v6, %v2169_v32  ;;  %v2319_v44 = vadd.f32 %v2318_v35, %v6578_v8  ;;  %v2796_v63 = vmax.f32 %v2280_v20, 0.0 }
 0x1d2   :  { %v2320_v61 = vpop.f32.mrf.mxu0 }
 0x1d3   :  { %v2433_v9 = vpop.f32.mrf.mxu1  ;;  %v2797_v42 = vmax.f32 %v2282_v11, 0.0  ;;  %v6587_v60 = vadd.f32 %v2431_v21, %v2319_v44  ;;  %v2321_v49 = vadd.f32 %v2320_v61, %v6583_v16  ;;  %v6598_v31 = vpack.c.bf16 %v2796_v63, %v2792_v1 }
 0x1d4   :  { %v6590_v12 = vpop.f32.mrf.mxu0 }
 0x1d5   :  { %v6592_v24 = vpop.f32.mrf.mxu1  ;;  %v6594_v18 = vadd.f32 %v2433_v9, %v2321_v49  ;;  %v6596_v30 = vpack.c.bf16 %v2797_v42, %v2793_v23 }
 0x1d6   :  { %v6600_v45 = vpop.f32.mrf.mxu0 }
 0x1d7   :  { %v6602_v51 = vpop.f32.mrf.mxu1  ;;  %3591 = vmatprep.mubr.bf16.mxu0 %v6596_v30 }
 0x1d8   :  { %v2328_v36 = vpop.f32.mrf.mxu0  ;;  %3592 = vmatmul.mubr.bf16.gmra.mxu0 %v6598_v31 }
 0x1d9   :  { %v2441_v39 = vpop.f32.mrf.mxu1  ;;  %v2329_v33 = vadd.f32 %v2328_v36, %v6578_v8  ;;  %3747 = vmatprep.mubr.bf16.mxu0 %v6488_v46 }
 0x1da   :  { %v2330_v52 = vpop.f32.mrf.mxu0 }
 0x1db   :  { %v2443_v57 = vpop.f32.mrf.mxu1  ;;  %v6608_v2 = vadd.f32 %v2441_v39, %v2329_v33  ;;  %v2331_v34 = vadd.f32 %v2330_v52, %v6583_v16 }
 0x1dc   :  { %v6611_v5 = vpop.f32.mrf.mxu0 }
 0x1dd   :  { %v6613_v28 = vpop.f32.mrf.mxu1  ;;  %v6615_v17 = vadd.f32 %v2443_v57, %v2331_v34 }
 0x1de   :  { %v6617_v37 = vpop.f32.mrf.mxu0 }
 0x1df   :  { %v6619_v19 = vpop.f32.mrf.mxu1 }
 0x1e0   :  { %v2338_v55 = vpop.f32.mrf.mxu0  ;;  %3748 = vmatmul.mubr.bf16.vlgmr.msra.gmra.mxu0 %v6492_v40 }
 0x1e1   :  { %v2451_v43 = vpop.f32.mrf.mxu1  ;;  %v2339_v46 = vadd.f32 %v2338_v55, %v6578_v8  ;;  %3755 = vmatprep.mubr.bf16.mxu0 %v6502_v26 }
 0x1e2   :  { %v2340_v3 = vpop.f32.mrf.mxu0 }
 0x1e3   :  { %v2453_v38 = vpop.f32.mrf.mxu1  ;;  %v6624_v53 = vadd.f32 %v2451_v43, %v2339_v46  ;;  %v2341_v4 = vadd.f32 %v2340_v3, %v6583_v16 }
 0x1e4   :  { %v6627_v59 = vpop.f32.mrf.mxu0 }
 0x1e5   :  { %v6629_v54 = vpop.f32.mrf.mxu1  ;;  %v6631_v48 = vadd.f32 %v2453_v38, %v2341_v4 }
 0x1e6   :  { %v6633_v56 = vpop.f32.mrf.mxu0 }
 0x1e7   :  { %v6635_v6 = vpop.f32.mrf.mxu1 }
 0x1e8   :  { %v2348_v40 = vpop.f32.mrf.mxu0  ;;  %3756 = vmatmul.mubr.bf16.gmra.mxu0 %v6506_v14 }
 0x1e9   :  { %v2461_v22 = vpop.f32.mrf.mxu1  ;;  %v2349_v26 = vadd.f32 %v2348_v40, %v6578_v8  ;;  %3763 = vmatprep.mubr.bf16.mxu0 %v6516_v15 }
 0x1ea   :  { %v2350_v20 = vpop.f32.mrf.mxu0 }
 0x1eb   :  { %v2463_v32 = vpop.f32.mrf.mxu1  ;;  %v6640_v47 = vadd.f32 %v2461_v22, %v2349_v26  ;;  %v2351_v35 = vadd.f32 %v2350_v20, %v6583_v16 }
 0x1ec   :  { %v6643_v21 = vpop.f32.mrf.mxu0 }
 0x1ed   :  { %v6645_v11 = vpop.f32.mrf.mxu1  ;;  %v6647_v44 = vadd.f32 %v2463_v32, %v2351_v35 }
 0x1ee   :  { %v6649_v63 = vpop.f32.mrf.mxu0 }
 0x1ef   :  { %v6651_v61 = vpop.f32.mrf.mxu1 }
 0x1f0   :  { %v2358_v14 = vpop.f32.mrf.mxu0  ;;  %3764 = vmatmul.mubr.bf16.gmra.mxu0 %v6518_v29 }
 0x1f1   :  { %v2471_v9 = vpop.f32.mrf.mxu1  ;;  %v2359_v15 = vadd.f32 %v2358_v14, %v6578_v8  ;;  %3771 = vmatprep.mubr.bf16.mxu0 %v6530_v7 }
 0x1f2   :  { %v2360_v23 = vpop.f32.mrf.mxu0 }
 0x1f3   :  { %v2473_v42 = vpop.f32.mrf.mxu1  ;;  %v6656_v49 = vadd.f32 %v2471_v9, %v2359_v15  ;;  %v2361_v1 = vadd.f32 %v2360_v23, %v6583_v16 }
 0x1f4   :  { %v6659_v36 = vpop.f32.mrf.mxu0 }
 0x1f5   :  { %v6661_v39 = vpop.f32.mrf.mxu1  ;;  %v6663_v33 = vadd.f32 %v2473_v42, %v2361_v1 }
 0x1f6   :  { %v6665_v52 = vpop.f32.mrf.mxu0 }
 0x1f7   :  { %v6667_v57 = vpop.f32.mrf.mxu1 }
 0x1f8   :  { %v2368_v29 = vpop.f32.mrf.mxu0  ;;  %3772 = vmatmul.mubr.bf16.gmra.mxu0 %v6532_v25 }
 0x1f9   :  { %v2481_v34 = vpop.f32.mrf.mxu1  ;;  %v2369_v7 = vadd.f32 %v2368_v29, %v6578_v8  ;;  %3779 = vmatprep.mubr.bf16.mxu0 %v6544_v0 }
 0x1fa   :  { %v2370_v55 = vpop.f32.mrf.mxu0 }
 0x1fb   :  { %v2483_v43 = vpop.f32.mrf.mxu1  ;;  %v6672_v46 = vadd.f32 %v2481_v34, %v2369_v7  ;;  %v2371_v3 = vadd.f32 %v2370_v55, %v6583_v16 }
 0x1fc   :  { %v6675_v38 = vpop.f32.mrf.mxu0 }
 0x1fd   :  { %v6677_v4 = vpop.f32.mrf.mxu1  ;;  %v6679_v40 = vadd.f32 %v2483_v43, %v2371_v3 }
 0x1fe   :  { %v6681_v22 = vpop.f32.mrf.mxu0 }
 0x1ff   :  { %v6683_v26 = vpop.f32.mrf.mxu1 }
 0x200   :  { %v2378_v25 = vpop.f32.mrf.mxu0  ;;  %3780 = vmatmul.mubr.bf16.gmra.mxu0 %v6546_v13 }
 0x201   :  { %v2491_v20 = vpop.f32.mrf.mxu1  ;;  %v2379_v0 = vadd.f32 %v2378_v25, %v6578_v8  ;;  %3787 = vmatprep.mubr.bf16.mxu0 %v6558_v10 }
 0x202   :  { %v2380_v32 = vpop.f32.mrf.mxu0 }
 0x203   :  { %v2493_v35 = vpop.f32.mrf.mxu1  ;;  %v6688_v14 = vadd.f32 %v2491_v20, %v2379_v0  ;;  %v2381_v9 = vadd.f32 %v2380_v32, %v6583_v16 }
 0x204   :  { %v6691_v15 = vpop.f32.mrf.mxu0 }
 0x205   :  { %v6693_v23 = vpop.f32.mrf.mxu1  ;;  %v6695_v42 = vadd.f32 %v2493_v35, %v2381_v9 }
 0x206   :  { %v6697_v1 = vpop.f32.mrf.mxu0 }
 0x207   :  { %v6699_v29 = vpop.f32.mrf.mxu1 }
 0x208   :  { %v2388_v13 = vpop.f32.mrf.mxu0  ;;  %3788 = vmatmul.mubr.bf16.gmra.mxu0 %v6560_v50  ;;  %v2323_v50 = vadd.f32 %v6590_v12, %v6578_v8 }
 0x209   :  { %v2501_v34 = vpop.f32.mrf.mxu1  ;;  %v2389_v10 = vadd.f32 %v2388_v13, %v6578_v8  ;;  %3795 = vmatprep.mubr.bf16.mxu0 %v6574_v41  ;;  %v2325_v13 = vadd.f32 %v6600_v45, %v6583_v16  ;;  %v2333_v45 = vadd.f32 %v6611_v5, %v6578_v8 }
 0x20a   :  { %v2390_v7 = vpop.f32.mrf.mxu0 }
 0x20b   :  { %v2503_v55 = vpop.f32.mrf.mxu1  ;;  %v6704_v43 = vadd.f32 %v2501_v34, %v2389_v10  ;;  %v2391_v3 = vadd.f32 %v2390_v7, %v6583_v16  ;;  %v2436_v7 = vadd.f32 %v6592_v24, %v2323_v50  ;;  %v2438_v12 = vadd.f32 %v6602_v51, %v2325_v13 }
 0x20c   :  { %v6707_v25 = vpop.f32.mrf.mxu0 }
 0x20d   :  { %7130 = vst [vmem:[#allocation21_spill] sm:$0xff] %v6704_v43  ;;  %7131 = vst [vmem:[#allocation24_spill] sm:$0xff] %v6707_v25  ;;  %v6709_v20 = vpop.f32.mrf.mxu1  ;;  %v6711_v0 = vadd.f32 %v2503_v55, %v2391_v3 }
 0x20e   :  { %7132 = vst [vmem:[#allocation22_spill] sm:$0xff] %v6709_v20  ;;  %v6713_v32 = vpop.f32.mrf.mxu0 }
 0x20f   :  { %7133 = vst [vmem:[#allocation23_spill] sm:$0xff] %v6711_v0  ;;  %7134 = vst [vmem:[#allocation20_spill] sm:$0xff] %v6713_v32  ;;  %v6715_v35 = vpop.f32.mrf.mxu1 }
 0x210   :  { %7135 = vst [vmem:[#allocation25_spill] sm:$0xff] %v6715_v35  ;;  %v2544_v41 = vpop.f32.mrf.mxu0  ;;  %3796 = vmatmul.mubr.bf16.gmra.mxu0 %v6580_v58 }
 0x211   :  { %v2657_v9 = vpop.f32.mrf.mxu1  ;;  %3803 = vmatprep.mubr.bf16.mxu0 %v6596_v30  ;;  %v2545_v3 = vadd.f32 %v2544_v41, %v6587_v60  ;;  %v2335_v60 = vadd.f32 %v6617_v37, %v6583_v16  ;;  %v2446_v41 = vadd.f32 %v6613_v28, %v2333_v45  ;;  %v5988_v37 = vld [vmem:[#allocation8 + $0x230] ss:$12 sps:$4 sm:$0xff]   ;;  %v5989_v28 = vld [vmem:[#allocation8 + $0x2d8] ss:$12 sps:$4 sm:$0xff]  }
 0x212   :  { %v2546_v34 = vpop.f32.mrf.mxu0 }
 0x213   :  { %v2659_v10 = vpop.f32.mrf.mxu1  ;;  %v2547_v55 = vadd.f32 %v2546_v34, %v6594_v18  ;;  %v2658_v32 = vadd.f32 %v2657_v9, %v2545_v3 }
 0x214   :  { %v2548_v62 = vpop.f32.mrf.mxu0 }
 0x215   :  { %v2661_v27 = vpop.f32.mrf.mxu1  ;;  %v2549_v35 = vadd.f32 %v2548_v62, %v2436_v7  ;;  %v2660_v0 = vadd.f32 %v2659_v10, %v2547_v55 }
 0x216   :  { %v2550_v43 = vpop.f32.mrf.mxu0 }
 0x217   :  { %v2663_v58 = vpop.f32.mrf.mxu1  ;;  %v2662_v30 = vadd.f32 %v2661_v27, %v2549_v35  ;;  %v2551_v20 = vadd.f32 %v2550_v43, %v2438_v12  ;;  %v2739_v13 = vmax.f32 %v2660_v0, 0.0  ;;  %v2738_v27 = vmax.f32 %v2658_v32, 0.0 }
 0x218   :  { %v2554_v25 = vpop.f32.mrf.mxu0  ;;  %3804 = vmatmul.mubr.bf16.gmra.mxu0 %v6598_v31  ;;  %v2448_v31 = vadd.f32 %v6619_v19, %v2335_v60  ;;  %v2343_v0 = vadd.f32 %v6627_v59, %v6578_v8  ;;  %v5991_v59 = vld [vmem:[#allocation8 + $0x2c0] ss:$12 sps:$4 sm:$0xff]  }
 0x219   :  { %v2667_v24 = vpop.f32.mrf.mxu1  ;;  %v2664_v18 = vadd.f32 %v2663_v58, %v2551_v20  ;;  %v2742_v50 = vmax.f32 %v2662_v30, 0.0  ;;  %v2555_v43 = vadd.f32 %v2554_v25, %v6608_v2  ;;  %v2345_v58 = vadd.f32 %v6633_v56, %v6583_v16  ;;  %v5990_v30 = vld [vmem:[#allocation8 + $0x218] ss:$12 sps:$4 sm:$0xff]  }
 0x21a   :  { %v2556_v51 = vpop.f32.mrf.mxu0 }
 0x21b   :  { %v2669_v62 = vpop.f32.mrf.mxu1  ;;  %v2743_v34 = vmax.f32 %v2664_v18, 0.0  ;;  %v2557_v5 = vadd.f32 %v2556_v51, %v6615_v17  ;;  %v6738_v20 = vpack.c.bf16 %v2742_v50, %v2738_v27  ;;  %v2668_v2 = vadd.f32 %v2667_v24, %v2555_v43 }
 0x21c   :  { %v2558_v35 = vpop.f32.mrf.mxu0  ;;  %v2456_v51 = vadd.f32 %v6629_v54, %v2343_v0  ;;  %v2458_v56 = vadd.f32 %v6635_v6, %v2345_v58 }
 0x21d   :  { %v2671_v9 = vpop.f32.mrf.mxu1  ;;  %v2559_v10 = vadd.f32 %v2558_v35, %v2446_v41  ;;  %v6736_v7 = vpack.c.bf16 %v2743_v34, %v2739_v13  ;;  %v2670_v17 = vadd.f32 %v2669_v62, %v2557_v5  ;;  %v2746_v13 = vmax.f32 %v2668_v2, 0.0 }
 0x21e   :  { %v2560_v55 = vpop.f32.mrf.mxu0 }
 0x21f   :  { %v2673_v3 = vpop.f32.mrf.mxu1  ;;  %v2672_v32 = vadd.f32 %v2671_v9, %v2559_v10  ;;  %v2561_v12 = vadd.f32 %v2560_v55, %v2448_v31  ;;  %3634 = vmatprep.mubr.bf16.mxu1 %v6736_v7  ;;  %v2747_v62 = vmax.f32 %v2670_v17, 0.0  ;;  %v5992_v9 = vld [vmem:[#allocation8 + $0x200] ss:$12 sps:$4 sm:$0xff]   ;;  %v2355_v17 = vadd.f32 %v6649_v63, %v6583_v16 }
 0x220   :  { %v2564_v25 = vpop.f32.mrf.mxu0  ;;  %3635 = vmatmul.mubr.bf16.vlgmr.msra.gmra.mxu1 %v6738_v20 }
 0x221   :  { %v2677_v19 = vpop.f32.mrf.mxu1  ;;  %v2674_v45 = vadd.f32 %v2673_v3, %v2561_v12  ;;  %5220 = vmatpush3.bf16.msra.mxu1 %v5988_v37  ;;  %v2750_v60 = vmax.f32 %v2672_v32, 0.0  ;;  %v2565_v34 = vadd.f32 %v2564_v25, %v6624_v53  ;;  %v5993_v37 = vld [vmem:[#allocation8 + $0x2a8] ss:$12 sps:$4 sm:$0xff]   ;;  %v2468_v63 = vadd.f32 %v6651_v61, %v2355_v17 }
 0x222   :  { %v2566_v18 = vpop.f32.mrf.mxu0  ;;  %5221 = vmatprep.subr.bf16.mxu1 %v5989_v28  ;;  %v5994_v12 = vld [vmem:[#allocation8 + $0x1e8] ss:$12 sps:$4 sm:$0xff]  }
 0x223   :  { %v2679_v50 = vpop.f32.mrf.mxu1  ;;  %v2751_v41 = vmax.f32 %v2674_v45, 0.0  ;;  %v2567_v24 = vadd.f32 %v2566_v18, %v6631_v48  ;;  %v6752_v31 = vpack.c.bf16 %v2750_v60, %v2746_v13  ;;  %v2353_v48 = vadd.f32 %v6643_v21, %v6578_v8  ;;  %v5995_v21 = vld [vmem:[#allocation8 + $0x290] ss:$12 sps:$4 sm:$0xff]  }
 0x224   :  { %v2568_v5 = vpop.f32.mrf.mxu0  ;;  %v2678_v6 = vadd.f32 %v2677_v19, %v2565_v34 }
 0x225   :  { %v2681_v27 = vpop.f32.mrf.mxu1  ;;  %v2569_v43 = vadd.f32 %v2568_v5, %v2456_v51  ;;  %v6750_v35 = vpack.c.bf16 %v2751_v41, %v2747_v62  ;;  %5222 = vmatpush3.bf16.msra.mxu1 %v5990_v30  ;;  %v2680_v55 = vadd.f32 %v2679_v50, %v2567_v24  ;;  %v2466_v45 = vadd.f32 %v6645_v11, %v2353_v48  ;;  %v5996_v24 = vld [vmem:[#allocation8 + $0x1d0] ss:$12 sps:$4 sm:$0xff]   ;;  %v5997_v5 = vld [vmem:[#allocation8 + $0x278] ss:$12 sps:$4 sm:$0xff]  }
 0x226   :  { %v2570_v10 = vpop.f32.mrf.mxu0  ;;  %5223 = vmatprep.subr.bf16.mxu1 %v5991_v59  ;;  %v2754_v18 = vmax.f32 %v2678_v6, 0.0 }
 0x227   :  { %v2683_v54 = vpop.f32.mrf.mxu1  ;;  %v2682_v53 = vadd.f32 %v2681_v27, %v2569_v43  ;;  %v2571_v3 = vadd.f32 %v2570_v10, %v2458_v56  ;;  %3644 = vmatprep.mubr.bf16.mxu1 %v6750_v35  ;;  %v2755_v30 = vmax.f32 %v2680_v55, 0.0  ;;  %v2365_v10 = vadd.f32 %v6665_v52, %v6583_v16 }
 0x228   :  { %v2574_v28 = vpop.f32.mrf.mxu0  ;;  %3645 = vmatmul.mubr.bf16.gmra.mxu1 %v6752_v31 }
 0x229   :  { %v2687_v0 = vpop.f32.mrf.mxu1  ;;  %v2684_v32 = vadd.f32 %v2683_v54, %v2571_v3  ;;  %5224 = vmatpush3.bf16.msra.mxu1 %v5992_v9  ;;  %v2758_v2 = vmax.f32 %v2682_v53, 0.0  ;;  %v2575_v50 = vadd.f32 %v2574_v28, %v6640_v47  ;;  %v2478_v52 = vadd.f32 %v6667_v57, %v2365_v10 }
 0x22a   :  { %v2576_v25 = vpop.f32.mrf.mxu0  ;;  %5225 = vmatprep.subr.bf16.mxu1 %v5993_v37  ;;  %v5998_v37 = vld [vmem:[#allocation8 + $0x1b8] ss:$12 sps:$4 sm:$0xff]  }
 0x22b   :  { %v2689_v58 = vpop.f32.mrf.mxu1  ;;  %v2759_v60 = vmax.f32 %v2684_v32, 0.0  ;;  %v2577_v19 = vadd.f32 %v2576_v25, %v6647_v44  ;;  %v6766_v13 = vpack.c.bf16 %v2758_v2, %v2754_v18  ;;  %v2363_v44 = vadd.f32 %v6659_v36, %v6578_v8  ;;  %v5999_v36 = vld [vmem:[#allocation8 + $0x260] ss:$12 sps:$4 sm:$0xff]  }
 0x22c   :  { %v2578_v59 = vpop.f32.mrf.mxu0  ;;  %v2688_v61 = vadd.f32 %v2687_v0, %v2575_v50 }
 0x22d   :  { %v2691_v51 = vpop.f32.mrf.mxu1  ;;  %v2579_v62 = vadd.f32 %v2578_v59, %v2466_v45  ;;  %v6764_v41 = vpack.c.bf16 %v2759_v60, %v2755_v30  ;;  %5226 = vmatpush3.bf16.msra.mxu1 %v5994_v12  ;;  %v2690_v27 = vadd.f32 %v2689_v58, %v2577_v19  ;;  %v2476_v3 = vadd.f32 %v6661_v39, %v2363_v44  ;;  %v6001_v60 = vld [vmem:[#allocation8 + $0x248] ss:$12 sps:$4 sm:$0xff]  }
 0x22e   :  { %v2580_v34 = vpop.f32.mrf.mxu0  ;;  %5227 = vmatprep.subr.bf16.mxu1 %v5995_v21  ;;  %v2762_v17 = vmax.f32 %v2688_v61, 0.0  ;;  %v6000_v21 = vld [vmem:[#allocation8 + $0x1a0] ss:$12 sps:$4 sm:$0xff]  }
 0x22f   :  { %v2693_v11 = vpop.f32.mrf.mxu1  ;;  %v2692_v47 = vadd.f32 %v2691_v51, %v2579_v62  ;;  %v2581_v56 = vadd.f32 %v2580_v34, %v2468_v63  ;;  %3654 = vmatprep.mubr.bf16.mxu1 %v6764_v41  ;;  %v2763_v6 = vmax.f32 %v2690_v27, 0.0  ;;  %v2375_v51 = vadd.f32 %v6681_v22, %v6583_v16  ;;  %v6002_v62 = vld [vmem:[#allocation8 + $0x188] ss:$12 sps:$4 sm:$0xff]  }
 0x230   :  { %v2584_v43 = vpop.f32.mrf.mxu0  ;;  %3655 = vmatmul.mubr.bf16.gmra.mxu1 %v6766_v13 }
 0x231   :  { %v2697_v9 = vpop.f32.mrf.mxu1  ;;  %v2694_v54 = vadd.f32 %v2693_v11, %v2581_v56  ;;  %5228 = vmatpush3.bf16.msra.mxu1 %v5996_v24  ;;  %v2766_v48 = vmax.f32 %v2692_v47, 0.0  ;;  %v2585_v32 = vadd.f32 %v2584_v43, %v6656_v49  ;;  %v2488_v22 = vadd.f32 %v6683_v26, %v2375_v51 }
 0x232   :  { %v2586_v55 = vpop.f32.mrf.mxu0  ;;  %5229 = vmatprep.subr.bf16.mxu1 %v5997_v5  ;;  %v2385_v26 = vadd.f32 %v6697_v1, %v6583_v16 }
 0x233   :  { %v2699_v53 = vpop.f32.mrf.mxu1  ;;  %v2767_v28 = vmax.f32 %v2694_v54, 0.0  ;;  %v2587_v0 = vadd.f32 %v2586_v55, %v6663_v33  ;;  %v6780_v45 = vpack.c.bf16 %v2766_v48, %v2762_v17  ;;  %v2373_v33 = vadd.f32 %v6675_v38, %v6578_v8 }
 0x234   :  { %v2588_v12 = vpop.f32.mrf.mxu0  ;;  %v2698_v57 = vadd.f32 %v2697_v9, %v2585_v32 }
 0x235   :  { %v2701_v2 = vpop.f32.mrf.mxu1  ;;  %v2589_v25 = vadd.f32 %v2588_v12, %v2476_v3  ;;  %v6778_v58 = vpack.c.bf16 %v2767_v28, %v2763_v6  ;;  %5230 = vmatpush3.bf16.msra.mxu1 %v5998_v37  ;;  %v2700_v19 = vadd.f32 %v2699_v53, %v2587_v0  ;;  %v2486_v38 = vadd.f32 %v6677_v4, %v2373_v33 }
 0x236   :  { %v2590_v30 = vpop.f32.mrf.mxu0  ;;  %5231 = vmatprep.subr.bf16.mxu1 %v5999_v36  ;;  %v2770_v47 = vmax.f32 %v2698_v57, 0.0  ;;  %v2383_v4 = vadd.f32 %v6691_v15, %v6578_v8 }
 0x237   :  { %v2703_v39 = vpop.f32.mrf.mxu1  ;;  %v2702_v49 = vadd.f32 %v2701_v2, %v2589_v25  ;;  %v2591_v18 = vadd.f32 %v2590_v30, %v2478_v52  ;;  %3664 = vmatprep.mubr.bf16.mxu1 %v6778_v58  ;;  %v2771_v5 = vmax.f32 %v2700_v19, 0.0 }
 0x238   :  { %v2594_v50 = vpop.f32.mrf.mxu0  ;;  %3665 = vmatmul.mubr.bf16.gmra.mxu1 %v6780_v45  ;;  %v2496_v32 = vadd.f32 %v6693_v23, %v2383_v4  ;;  %v7136_v23 = vld [vmem:[#allocation24_spill] sm:$0xff] }
 0x239   :  { %v2707_v59 = vpop.f32.mrf.mxu1  ;;  %v2704_v63 = vadd.f32 %v2703_v39, %v2591_v18  ;;  %5232 = vmatpush3.bf16.msra.mxu1 %v6000_v21  ;;  %v2774_v24 = vmax.f32 %v2702_v49, 0.0  ;;  %v2595_v56 = vadd.f32 %v2594_v50, %v6672_v46  ;;  %v2498_v39 = vadd.f32 %v6699_v29, %v2385_v26  ;;  %v7137_v29 = vld [vmem:[#allocation20_spill] sm:$0xff] }
 0x23a   :  { %v2596_v34 = vpop.f32.mrf.mxu0  ;;  %5233 = vmatprep.subr.bf16.mxu1 %v6001_v60  ;;  %v2393_v18 = vadd.f32 %v7136_v23, %v6578_v8  ;;  %v6012_v23 = vld [vmem:[#allocation10 + $0x18] sm:$0xff]  }
 0x23b   :  { %v2709_v11 = vpop.f32.mrf.mxu1  ;;  %v2775_v44 = vmax.f32 %v2704_v63, 0.0  ;;  %v2597_v27 = vadd.f32 %v2596_v34, %v6679_v40  ;;  %v6794_v54 = vpack.c.bf16 %v2774_v24, %v2770_v47  ;;  %v2708_v46 = vadd.f32 %v2707_v59, %v2595_v56 }
 0x23c   :  { %v2598_v61 = vpop.f32.mrf.mxu0  ;;  %v2395_v63 = vadd.f32 %v7137_v29, %v6583_v16  ;;  %v6017_v29 = vld [vmem:[#allocation10 + $0x40] sm:$0xff]  }
 0x23d   :  { %v2711_v43 = vpop.f32.mrf.mxu1  ;;  %v6792_v9 = vpack.c.bf16 %v2775_v44, %v2771_v5  ;;  %v2599_v10 = vadd.f32 %v2598_v61, %v2486_v38  ;;  %5234 = vmatpush3.bf16.msra.mxu1 %v6002_v62  ;;  %v2710_v55 = vadd.f32 %v2709_v11, %v2597_v27  ;;  %v2778_v52 = vmax.f32 %v2708_v46, 0.0  ;;  %v7138_v38 = vld [vmem:[#allocation22_spill] sm:$0xff]  ;;  %v7139_v27 = vld [vmem:[#allocation23_spill] sm:$0xff]  ;;  %v7140_v61 = vld [vmem:[#allocation21_spill] sm:$0xff] }
 0x23e   :  { %v2600_v37 = vpop.f32.mrf.mxu0  ;;  %v2506_v5 = vadd.f32 %v7138_v38, %v2393_v18  ;;  %v6021_v38 = vld [vmem:[#allocation10 + $0xa8] sm:$0xff]  }
 0x23f   :  { %v2713_v48 = vpop.f32.mrf.mxu1  ;;  %v2712_v40 = vadd.f32 %v2711_v43, %v2599_v10  ;;  %v2601_v53 = vadd.f32 %v2600_v37, %v2488_v22  ;;  %3674 = vmatprep.mubr.bf16.mxu1 %v6792_v9  ;;  %v2779_v15 = vmax.f32 %v2710_v55, 0.0  ;;  %v6003_v37 = vld [vmem:[#allocation10 + $0x78] sm:$0xff]  }
 0x240   :  { %v2604_v36 = vpop.f32.mrf.mxu0  ;;  %3675 = vmatmul.mubr.bf16.gmra.mxu1 %v6794_v54  ;;  %5283 = vmatprep.subr.bf16.mxu0 %v6003_v37 }
 0x241   :  { %v2717_v3 = vpop.f32.mrf.mxu1  ;;  %v2714_v6 = vadd.f32 %v2713_v48, %v2601_v53  ;;  %v2782_v28 = vmax.f32 %v2712_v40, 0.0  ;;  %v2605_v25 = vadd.f32 %v2604_v36, %v6688_v14  ;;  %v7141_v48 = vld [vmem:[#allocation25_spill] sm:$0xff]  ;;  %v6004_v40 = vld [vmem:[#allocation10 + $0x38] sm:$0xff]  }
 0x242   :  { %v2606_v0 = vpop.f32.mrf.mxu0  ;;  %v2508_v4 = vadd.f32 %v7141_v48, %v2395_v63  ;;  %5284 = vmatpush3.bf16.msra.mxu0 %v6004_v40 }
 0x243   :  { %v2719_v17 = vpop.f32.mrf.mxu1  ;;  %v2783_v12 = vmax.f32 %v2714_v6, 0.0  ;;  %v2607_v2 = vadd.f32 %v2606_v0, %v6695_v42  ;;  %v6808_v33 = vpack.c.bf16 %v2782_v28, %v2778_v52  ;;  %v2718_v14 = vadd.f32 %v2717_v3, %v2605_v25  ;;  %v6005_v0 = vld [vmem:[#allocation10 + $0x70] sm:$0xff]   ;;  %v6007_v25 = vld [vmem:[#allocation10 + $0x68] sm:$0xff]  }
 0x244   :  { %v2608_v21 = vpop.f32.mrf.mxu0  ;;  %5285 = vmatprep.subr.bf16.mxu0 %v6005_v0 }
 0x245   :  { %v2721_v30 = vpop.f32.mrf.mxu1  ;;  %v6806_v60 = vpack.c.bf16 %v2783_v12, %v2779_v15  ;;  %v2609_v1 = vadd.f32 %v2608_v21, %v2496_v32  ;;  %v2720_v57 = vadd.f32 %v2719_v17, %v2607_v2  ;;  %v2786_v56 = vmax.f32 %v2718_v14, 0.0  ;;  %v6006_v32 = vld [vmem:[#allocation10 + $0x30] sm:$0xff]   ;;  %v6015_v14 = vld [vmem:[#allocation10 + $0x48] sm:$0xff]  }
 0x246   :  { %v2610_v19 = vpop.f32.mrf.mxu0  ;;  %5286 = vmatpush3.bf16.msra.mxu0 %v6006_v32 }
 0x247   :  { %v2723_v49 = vpop.f32.mrf.mxu1  ;;  %v2722_v50 = vadd.f32 %v2721_v30, %v2609_v1  ;;  %v2611_v42 = vadd.f32 %v2610_v19, %v2498_v39  ;;  %3684 = vmatprep.mubr.bf16.mxu1 %v6806_v60  ;;  %v2787_v8 = vmax.f32 %v2720_v57, 0.0  ;;  %v6008_v30 = vld [vmem:[#allocation10 + $0x28] sm:$0xff]   ;;  %5287 = vmatprep.subr.bf16.mxu0 %v6007_v25  ;;  %v6009_v1 = vld [vmem:[#allocation10 + $0x60] sm:$0xff]   ;;  %v6013_v57 = vld [vmem:[#allocation10 + $0x50] sm:$0xff]  }
 0x248   :  { %v2614_v59 = vpop.f32.mrf.mxu0  ;;  %3685 = vmatmul.mubr.bf16.gmra.mxu1 %v6808_v33  ;;  %v6010_v19 = vld [vmem:[#allocation10 + $0x20] sm:$0xff]  }
 0x249   :  { %v2727_v51 = vpop.f32.mrf.mxu1  ;;  %v2724_v62 = vadd.f32 %v2723_v49, %v2611_v42  ;;  %v2790_v24 = vmax.f32 %v2722_v50, 0.0  ;;  %v2615_v43 = vadd.f32 %v2614_v59, %v7140_v61  ;;  %v6011_v49 = vld [vmem:[#allocation10 + $0x58] sm:$0xff]   ;;  %v6014_v50 = vld [vmem:[#allocation10 + $0x10] sm:$0xff]   ;;  %v6016_v59 = vld [vmem:[#allocation10 + $0x8] sm:$0xff]  }
 0x24a   :  { %v2616_v34 = vpop.f32.mrf.mxu0  ;;  %5288 = vmatpush3.bf16.msra.mxu0 %v6008_v30 }
 0x24b   :  { %v2729_v11 = vpop.f32.mrf.mxu1  ;;  %v2791_v44 = vmax.f32 %v2724_v62, 0.0  ;;  %v2617_v47 = vadd.f32 %v2616_v34, %v7139_v27  ;;  %v6822_v53 = vpack.c.bf16 %v2790_v24, %v2786_v56  ;;  %v2728_v6 = vadd.f32 %v2727_v51, %v2615_v43  ;;  %5289 = vmatprep.subr.bf16.mxu0 %v6009_v1  ;;  %v6023_v27 = vld [vmem:[#allocation10 + $0x98] sm:$0xff]   ;;  %v6024_v56 = vld [vmem:[#allocation10 + $0x90] sm:$0xff]   ;;  %v6025_v43 = vld [vmem:[#allocation10 + $0x88] sm:$0xff]  }
 0x24c   :  { %v2618_v22 = vpop.f32.mrf.mxu0 }
 0x24d   :  { %v2731_v10 = vpop.f32.mrf.mxu1  ;;  %v6820_v55 = vpack.c.bf16 %v2791_v44, %v2787_v8  ;;  %v2619_v16 = vadd.f32 %v2618_v22, %v2506_v5  ;;  %v2730_v36 = vadd.f32 %v2729_v11, %v2617_v47  ;;  %v2794_v52 = vmax.f32 %v2728_v6, 0.0  ;;  %v6022_v8 = vld [vmem:[#allocation10 + $0xa0] sm:$0xff]   ;;  %v6909_v6 = vld [vmem:[%s7104_s4] sm:$0x7] }
 0x24e   :  { %v2620_v46 = vpop.f32.mrf.mxu0  ;;  %5290 = vmatpush3.bf16.msra.mxu0 %v6010_v19 }
 0x24f   :  { %v2732_v3 = vadd.f32 %v2731_v10, %v2619_v16  ;;  %v2621_v26 = vadd.f32 %v2620_v46, %v2508_v4  ;;  %3694 = vmatprep.mubr.bf16.mxu1 %v6820_v55  ;;  %v2733_v28 = vpop.f32.mrf.mxu1  ;;  %v2795_v12 = vmax.f32 %v2730_v36, 0.0  ;;  %5291 = vmatprep.subr.bf16.mxu0 %v6011_v49  ;;  %v6026_v10 = vld [vmem:[#allocation10 + $0x80] sm:$0xff]  }
 0x250   :  { %3695 = vmatmul.mubr.bf16.gmra.mxu1 %v6822_v53 }
 0x251   :  { %v2734_v17 = vadd.f32 %v2733_v28, %v2621_v26  ;;  %v2798_v15 = vmax.f32 %v2732_v3, 0.0  ;;  %v7142_v28 = vld [vmem:[#allocation19_spill] sm:$0xff] }
 0x252   :  { %5292 = vmatpush3.bf16.msra.mxu0 %v6012_v23  ;;  %v7143_v0 = vsub.s32 1, %v7142_v28  ;;  %v7144_v32 = vsub.s32 0, %v7142_v28 }
 0x253   :  { %v2799_v2 = vmax.f32 %v2734_v17, 0.0  ;;  %v2830_v39 = vpack.c.bf16 %v2798_v15, %v2794_v52  ;;  %5293 = vmatprep.subr.bf16.mxu0 %v6013_v57 }
 0x254   :  { %v6914_v17 = vrot.slane %v6909_v6, %v7143_v0  ;;  %v6919_v15 = vrot.slane %v6909_v6, %v7144_v32 }
 0x255   :  { %v2831_v21 = vpack.c.bf16 %v2799_v2, %v2795_v12 }
 0x256   :  { %5294 = vmatpush3.bf16.msra.mxu0 %v6014_v50 }
 0x257   :  { %3704 = vmatprep.mubr.bf16.mxu1 %v2831_v21  ;;  %5295 = vmatprep.subr.bf16.mxu0 %v6015_v14 }
 0x258   :  { %3705 = vmatmul.mubr.bf16.gmra.mxu1 %v2830_v39 }
 0x259   :  { %3844 = vmatprep.mubr.bf16.mxu1 %v6736_v7 }
 0x25a   :  { %5296 = vmatpush3.bf16.msra.mxu0 %v6016_v59 }
 0x25b   :  { %5297 = vmatprep.subr.bf16.mxu0 %v6017_v29 }
 0x260   :  { %v6827_v18 = vpop.f32.mrf.mxu0  ;;  %3845 = vmatmul.mubr.bf16.vlgmr.msra.gmra.mxu1 %v6738_v20  ;;  %v6018_v20 = vld [vmem:[#allocation10] sm:$0xff]  }
 0x261   :  { %3852 = vmatprep.mubr.bf16.mxu1 %v6750_v35  ;;  %5298 = vmatpush3.bf16.msra.mxu0 %v6018_v20  ;;  %v3524_v30 = vadd.f32 %v6827_v18, %v6919_v15 }
 0x262   :  { %v6831_v42 = vpop.f32.mrf.mxu0 }
 0x263   :  { %v3526_v25 = vadd.f32 %v6831_v42, %v6914_v17 }
 0x264   :  { %v6833_v7 = vpop.f32.mrf.mxu0 }
 0x266   :  { %v6835_v51 = vpop.f32.mrf.mxu0 }
 0x267   :  { %v3530_v19 = vadd.f32 %v6835_v51, %v6914_v17 }
 0x268   :  { %3853 = vmatmul.mubr.bf16.gmra.mxu1 %v6752_v31  ;;  %v6839_v35 = vpop.f32.mrf.mxu0 }
 0x269   :  { %3860 = vmatprep.mubr.bf16.mxu1 %v6764_v41 }
 0x26a   :  { %v6841_v63 = vpop.f32.mrf.mxu0 }
 0x26b   :  { %v3536_v18 = vadd.f32 %v6841_v63, %v6914_v17 }
 0x26c   :  { %v6845_v62 = vpop.f32.mrf.mxu0 }
 0x26e   :  { %v6847_v24 = vpop.f32.mrf.mxu0 }
 0x270   :  { %3861 = vmatmul.mubr.bf16.gmra.mxu1 %v6766_v13  ;;  %v6851_v31 = vpop.f32.mrf.mxu0 }
 0x271   :  { %3868 = vmatprep.mubr.bf16.mxu1 %v6778_v58 }
 0x272   :  { %v6853_v41 = vpop.f32.mrf.mxu0 }
 0x274   :  { %v6857_v34 = vpop.f32.mrf.mxu0 }
 0x276   :  { %v6859_v13 = vpop.f32.mrf.mxu0 }
 0x278   :  { %3869 = vmatmul.mubr.bf16.gmra.mxu1 %v6780_v45  ;;  %v6863_v58 = vpop.f32.mrf.mxu0 }
 0x279   :  { %3876 = vmatprep.mubr.bf16.mxu1 %v6792_v9  ;;  %v6019_v9 = vld [vmem:[#allocation10 + $0xb8] sm:$0xff]  }
 0x27a   :  { %v6865_v45 = vpop.f32.mrf.mxu0  ;;  %5379 = vmatprep.subr.bf16.mxu1 %v6019_v9 }
 0x27b   :  { %5380 = vmatpush3.bf16.msra.mxu1 %v6019_v9 }
 0x27c   :  { %v6868_v11 = vpop.f32.mrf.mxu0 }
 0x280   :  { %3877 = vmatmul.mubr.bf16.gmra.mxu1 %v6794_v54  ;;  %v6870_v54 = vpop.f32.mrf.mxu0 }
 0x281   :  { %3884 = vmatprep.mubr.bf16.mxu1 %v6806_v60  ;;  %v6020_v60 = vld [vmem:[#allocation10 + $0xb0] sm:$0xff]  }
 0x282   :  { %5381 = vmatprep.subr.bf16.mxu1 %v6020_v60 }
 0x283   :  { %5382 = vmatpush3.bf16.msra.mxu1 %v6020_v60 }
 0x284   :  { %5383 = vmatprep.subr.bf16.mxu1 %v6021_v38 }
 0x287   :  { %5384 = vmatpush3.bf16.msra.mxu1 %v6021_v38  ;;  %v3538_v38 = vadd.f32 %v6845_v62, %v6919_v15 }
 0x288   :  { %3885 = vmatmul.mubr.bf16.gmra.mxu1 %v6808_v33  ;;  %v6872_v33 = vpop.f32.mrf.mxu0  ;;  %5385 = vmatprep.subr.bf16.mxu1 %v6022_v8 }
 0x289   :  { %3892 = vmatprep.mubr.bf16.mxu1 %v6820_v55 }
 0x28a   :  { %v6874_v5 = vpop.f32.mrf.mxu0 }
 0x28b   :  { %5386 = vmatpush3.bf16.msra.mxu1 %v6022_v8  ;;  %v3534_v8 = vadd.f32 %v6839_v35, %v6919_v15 }
 0x28c   :  { %v6876_v44 = vpop.f32.mrf.mxu0  ;;  %5387 = vmatprep.subr.bf16.mxu1 %v6023_v27 }
 0x28e   :  { %v6878_v47 = vpop.f32.mrf.mxu0 }
 0x28f   :  { %5388 = vmatpush3.bf16.msra.mxu1 %v6023_v27 }
 0x290   :  { %3893 = vmatmul.mubr.bf16.gmra.mxu1 %v6822_v53  ;;  %5389 = vmatprep.subr.bf16.mxu1 %v6024_v56  ;;  %v6880_v61 = vpop.f32.mrf.mxu0 }
 0x291   :  { %3900 = vmatprep.mubr.bf16.mxu1 %v2831_v21  ;;  %v3528_v21 = vadd.f32 %v6833_v7, %v6919_v15 }
 0x292   :  { %v6882_v22 = vpop.f32.mrf.mxu0 }
 0x293   :  { %5390 = vmatpush3.bf16.msra.mxu1 %v6024_v56 }
 0x294   :  { %5391 = vmatprep.subr.bf16.mxu1 %v6025_v43  ;;  %v6884_v37 = vpop.f32.mrf.mxu0 }
 0x296   :  { %v6886_v48 = vpop.f32.mrf.mxu0 }
 0x297   :  { %5392 = vmatpush3.bf16.msra.mxu1 %v6025_v43 }
 0x298   :  { %3901 = vmatmul.mubr.bf16.gmra.mxu1 %v2830_v39  ;;  %5393 = vmatprep.subr.bf16.mxu1 %v6026_v10  ;;  %v6888_v4 = vpop.f32.mrf.mxu0 }
 0x29a   :  { %v6890_v55 = vpop.f32.mrf.mxu0 }
 0x29b   :  { %5394 = vmatpush3.bf16.msra.mxu1 %v6026_v10  ;;  %v3540_v10 = vadd.f32 %v6847_v24, %v6914_v17  ;;  %v3548_v24 = vadd.f32 %v6857_v34, %v6919_v15 }
 0x29c   :  { %v6892_v16 = vpop.f32.mrf.mxu0 }
 0x29e   :  { %v6894_v40 = vpop.f32.mrf.mxu0 }
 0x2a0   :  { %v6896_v53 = vpop.f32.mrf.mxu0 }
 0x2a2   :  { %v6898_v46 = vpop.f32.mrf.mxu0 }
 0x2a4   :  { %v6900_v36 = vpop.f32.mrf.mxu0 }
 0x2a6   :  { %v6902_v3 = vpop.f32.mrf.mxu0 }
 0x2a8   :  { %v6904_v26 = vpop.f32.mrf.mxu0 }
 0x2aa   :  { %v6921_v12 = vpop.f32.mrf.mxu0 }
 0x2ac   :  { %v6929_v39 = vpop.f32.mrf.mxu0 }
 0x2ae   :  { %v6933_v59 = vpop.f32.mrf.mxu0 }
 0x2b0   :  { %v6941_v27 = vpop.f32.mrf.mxu0 }
 0x2e0   :  { %v3636_v2 = vpop.f32.mrf.mxu1 }
 0x2e1   :  { %v3637_v57 = vadd.f32 %v3636_v2, %v3524_v30 }
 0x2e2   :  { %v3638_v52 = vpop.f32.mrf.mxu1 }
 0x2e3   :  { %v3639_v49 = vadd.f32 %v3638_v52, %v3526_v25  ;;  %v3909_v9 = vmax.f32 %v3637_v57, 0.0  ;;  %v6945_v25 = vpop.f32.mrf.mxu0  ;;  %v3544_v57 = vadd.f32 %v6851_v31, %v6919_v15 }
 0x2e4   :  { %v3640_v1 = vpop.f32.mrf.mxu1 }
 0x2e5   :  { %v3641_v23 = vadd.f32 %v3640_v1, %v3528_v21  ;;  %v3910_v20 = vmax.f32 %v3639_v49, 0.0  ;;  %v3546_v49 = vadd.f32 %v6853_v41, %v6914_v17 }
 0x2e6   :  { %v3642_v50 = vpop.f32.mrf.mxu1 }
 0x2e7   :  { %v3643_v14 = vadd.f32 %v3642_v50, %v3530_v19  ;;  %v3912_v42 = vmax.f32 %v3641_v23, 0.0  ;;  %v6953_v50 = vpop.f32.mrf.mxu0 }
 0x2e8   :  { %v3646_v29 = vpop.f32.mrf.mxu1 }
 0x2e9   :  { %v3913_v7 = vmax.f32 %v3643_v14, 0.0  ;;  %v3957_v56 = vpack.c.bf16 %v3912_v42, %v3909_v9  ;;  %v3647_v2 = vadd.f32 %v3646_v29, %v3534_v8  ;;  %v3550_v29 = vadd.f32 %v6859_v13, %v6914_v17 }
 0x2ea   :  { %v3648_v60 = vpop.f32.mrf.mxu1  ;;  %v3558_v13 = vadd.f32 %v6868_v11, %v6919_v15 }
 0x2eb   :  { %v3958_v51 = vpack.c.bf16 %v3913_v7, %v3910_v20  ;;  %v3649_v0 = vadd.f32 %v3648_v60, %v3536_v18  ;;  %v3915_v1 = vmax.f32 %v3647_v2, 0.0  ;;  %v6957_v18 = vpop.f32.mrf.mxu0 }
 0x2ec   :  { %v3650_v43 = vpop.f32.mrf.mxu1 }
 0x2ed   :  { %v3651_v32 = vadd.f32 %v3650_v43, %v3538_v38  ;;  %4212 = vmatprep.mubr.bf16.mxu0 %v3958_v51  ;;  %v3916_v30 = vmax.f32 %v3649_v0, 0.0  ;;  %v3556_v43 = vadd.f32 %v6865_v45, %v6914_v17  ;;  %v3554_v0 = vadd.f32 %v6863_v58, %v6919_v15 }
 0x2ee   :  { %v3652_v52 = vpop.f32.mrf.mxu1  ;;  %4213 = vmatmul.mubr.bf16.vlgmr.msra.gmra.mxu0 %v3957_v56 }
 0x2ef   :  { %v3653_v63 = vadd.f32 %v3652_v52, %v3540_v10  ;;  %v3918_v62 = vmax.f32 %v3651_v32, 0.0  ;;  %v6965_v32 = vpop.f32.mrf.mxu0 }
 0x2f0   :  { %v3656_v21 = vpop.f32.mrf.mxu1 }
 0x2f1   :  { %v3919_v35 = vmax.f32 %v3653_v63, 0.0  ;;  %v3960_v14 = vpack.c.bf16 %v3918_v62, %v3915_v1  ;;  %v3657_v9 = vadd.f32 %v3656_v21, %v3544_v57  ;;  %v3560_v63 = vadd.f32 %v6870_v54, %v6914_v17  ;;  %v6969_v1 = vpop.f32.mrf.mxu0 }
 0x2f2   :  { %v3658_v19 = vpop.f32.mrf.mxu1  ;;  %v3566_v57 = vadd.f32 %v6874_v5, %v6914_v17  ;;  %v3568_v54 = vadd.f32 %v6876_v44, %v6919_v15 }
 0x2f3   :  { %v3961_v23 = vpack.c.bf16 %v3919_v35, %v3916_v30  ;;  %v3659_v20 = vadd.f32 %v3658_v19, %v3546_v49  ;;  %v3921_v8 = vmax.f32 %v3657_v9, 0.0  ;;  %v3570_v9 = vadd.f32 %v6878_v47, %v6914_v17 }
 0x2f4   :  { %v3660_v42 = vpop.f32.mrf.mxu1  ;;  %v3578_v47 = vadd.f32 %v6884_v37, %v6919_v15 }
 0x2f5   :  { %v3661_v7 = vadd.f32 %v3660_v42, %v3548_v24  ;;  %4220 = vmatprep.mubr.bf16.mxu0 %v3961_v23  ;;  %v3922_v51 = vmax.f32 %v3659_v20, 0.0  ;;  %v3564_v42 = vadd.f32 %v6872_v33, %v6919_v15 }
 0x2f6   :  { %v3662_v60 = vpop.f32.mrf.mxu1  ;;  %4221 = vmatmul.mubr.bf16.gmra.mxu0 %v3960_v14 }
 0x2f7   :  { %v3663_v41 = vadd.f32 %v3662_v60, %v3550_v29  ;;  %v3924_v34 = vmax.f32 %v3661_v7, 0.0  ;;  %v6977_v29 = vpop.f32.mrf.mxu0 }
 0x2f8   :  { %v3666_v38 = vpop.f32.mrf.mxu1 }
 0x2f9   :  { %v3925_v31 = vmax.f32 %v3663_v41, 0.0  ;;  %v3963_v2 = vpack.c.bf16 %v3924_v34, %v3921_v8  ;;  %v3667_v30 = vadd.f32 %v3666_v38, %v3554_v0  ;;  %v3574_v0 = vadd.f32 %v6880_v61, %v6919_v15 }
 0x2fa   :  { %v3668_v56 = vpop.f32.mrf.mxu1 }
 0x2fb   :  { %v3964_v10 = vpack.c.bf16 %v3925_v31, %v3922_v51  ;;  %v3669_v62 = vadd.f32 %v3668_v56, %v3556_v43  ;;  %v3927_v24 = vmax.f32 %v3667_v30, 0.0  ;;  %v6981_v51 = vpop.f32.mrf.mxu0 }
 0x2fc   :  { %v3670_v52 = vpop.f32.mrf.mxu1 }
 0x2fd   :  { %v3671_v21 = vadd.f32 %v3670_v52, %v3558_v13  ;;  %4228 = vmatprep.mubr.bf16.mxu0 %v3964_v10  ;;  %v3928_v49 = vmax.f32 %v3669_v62, 0.0  ;;  %v3576_v13 = vadd.f32 %v6882_v22, %v6914_v17  ;;  %v3580_v62 = vadd.f32 %v6886_v48, %v6914_v17 }
 0x2fe   :  { %v3672_v35 = vpop.f32.mrf.mxu1  ;;  %4229 = vmatmul.mubr.bf16.gmra.mxu0 %v3963_v2  ;;  %v6989_v2 = vpop.f32.mrf.mxu0  ;;  %v3588_v48 = vadd.f32 %v6892_v16, %v6919_v15 }
 0x2ff   :  { %v3673_v45 = vadd.f32 %v3672_v35, %v3560_v63  ;;  %v3930_v11 = vmax.f32 %v3671_v21, 0.0 }
 0x300   :  { %v3676_v19 = vpop.f32.mrf.mxu1 }
 0x301   :  { %v3931_v58 = vmax.f32 %v3673_v45, 0.0  ;;  %v3966_v20 = vpack.c.bf16 %v3930_v11, %v3927_v24  ;;  %v3677_v34 = vadd.f32 %v3676_v19, %v3564_v42  ;;  %v6993_v11 = vpop.f32.mrf.mxu0 }
 0x302   :  { %v3678_v23 = vpop.f32.mrf.mxu1 }
 0x303   :  { %v3967_v14 = vpack.c.bf16 %v3931_v58, %v3928_v49  ;;  %v3679_v60 = vadd.f32 %v3678_v23, %v3566_v57  ;;  %v3933_v56 = vmax.f32 %v3677_v34, 0.0  ;;  %v3586_v23 = vadd.f32 %v6890_v55, %v6914_v17 }
 0x304   :  { %v3680_v7 = vpop.f32.mrf.mxu1 }
 0x305   :  { %v3681_v41 = vadd.f32 %v3680_v7, %v3568_v54  ;;  %4236 = vmatprep.mubr.bf16.mxu0 %v3967_v14  ;;  %v3934_v8 = vmax.f32 %v3679_v60, 0.0  ;;  %v3584_v54 = vadd.f32 %v6888_v4, %v6919_v15  ;;  %v7001_v14 = vpop.f32.mrf.mxu0  ;;  %v3590_v7 = vadd.f32 %v6894_v40, %v6914_v17 }
 0x306   :  { %v3682_v38 = vpop.f32.mrf.mxu1  ;;  %4237 = vmatmul.mubr.bf16.gmra.mxu0 %v3966_v20  ;;  %v3598_v40 = vadd.f32 %v6900_v36, %v6919_v15 }
 0x307   :  { %v3683_v5 = vadd.f32 %v3682_v38, %v3570_v9  ;;  %v3936_v44 = vmax.f32 %v3681_v41, 0.0  ;;  %v7005_v38 = vpop.f32.mrf.mxu0 }
 0x308   :  { %v3686_v31 = vpop.f32.mrf.mxu1 }
 0x309   :  { %v3937_v33 = vmax.f32 %v3683_v5, 0.0  ;;  %v3969_v52 = vpack.c.bf16 %v3936_v44, %v3933_v56  ;;  %v3687_v35 = vadd.f32 %v3686_v31, %v3574_v0  ;;  %v3600_v0 = vadd.f32 %v6902_v3, %v6914_v17 }
 0x30a   :  { %v3688_v43 = vpop.f32.mrf.mxu1 }
 0x30b   :  { %v3970_v10 = vpack.c.bf16 %v3937_v33, %v3934_v8  ;;  %v3689_v21 = vadd.f32 %v3688_v43, %v3576_v13  ;;  %v3939_v58 = vmax.f32 %v3687_v35, 0.0  ;;  %v3596_v33 = vadd.f32 %v6898_v46, %v6914_v17  ;;  %v7013_v13 = vpop.f32.mrf.mxu0 }
 0x30c   :  { %v3690_v63 = vpop.f32.mrf.mxu1  ;;  %v3594_v43 = vadd.f32 %v6896_v53, %v6919_v15  ;;  %v7145_v53 = vsub.s32 2, %v7142_v28 }
 0x30d   :  { %v3691_v30 = vadd.f32 %v3690_v63, %v3578_v47  ;;  %4244 = vmatprep.mubr.bf16.mxu0 %v3970_v10  ;;  %v3940_v49 = vmax.f32 %v3689_v21, 0.0 }
 0x30e   :  { %v3692_v45 = vpop.f32.mrf.mxu1  ;;  %4245 = vmatmul.mubr.bf16.gmra.mxu0 %v3969_v52  ;;  %v7022_v15 = vrot.slane %v6909_v6, %v7145_v53 }
 0x30f   :  { %v3693_v22 = vadd.f32 %v3692_v45, %v3580_v62  ;;  %v3942_v37 = vmax.f32 %v3691_v30, 0.0  ;;  %v7017_v30 = vpop.f32.mrf.mxu0  ;;  %v5173_v45 = vadd.f32 %v6921_v12, %v6904_v26 }
 0x310   :  { %v3696_v19 = vpop.f32.mrf.mxu1 }
 0x311   :  { %v3943_v61 = vmax.f32 %v3693_v22, 0.0  ;;  %v3972_v42 = vpack.c.bf16 %v3942_v37, %v3939_v58  ;;  %v3697_v41 = vadd.f32 %v3696_v19, %v3584_v54  ;;  %v5176_v19 = vadd.f32 %v6933_v59, %v6929_v39  ;;  %v7028_v58 = vpop.f32.mrf.mxu0 }
 0x312   :  { %v3698_v24 = vpop.f32.mrf.mxu1  ;;  %v3750_v28 = vadd.f32 %v5173_v45, %v7022_v15  ;;  %v5179_v39 = vadd.f32 %v6945_v25, %v6941_v27 }
 0x313   :  { %v3973_v57 = vpack.c.bf16 %v3943_v61, %v3940_v49  ;;  %v3699_v9 = vadd.f32 %v3698_v24, %v3586_v23  ;;  %v3945_v31 = vmax.f32 %v3697_v41, 0.0  ;;  %v3753_v26 = vadd.f32 %v5176_v19, %v7022_v15 }
 0x314   :  { %v3700_v20 = vpop.f32.mrf.mxu1 }
 0x315   :  { %v3701_v60 = vadd.f32 %v3700_v20, %v3588_v48  ;;  %4252 = vmatprep.mubr.bf16.mxu0 %v3973_v57  ;;  %v3946_v44 = vmax.f32 %v3699_v9, 0.0  ;;  %v5199_v57 = vpop.f32.mrf.mxu0  ;;  %v5182_v20 = vadd.f32 %v6957_v18, %v6953_v50  ;;  %v5185_v50 = vadd.f32 %v6969_v1, %v6965_v32 }
 0x316   :  { %v3702_v34 = vpop.f32.mrf.mxu1  ;;  %4253 = vmatmul.mubr.bf16.gmra.mxu0 %v3972_v42 }
 0x317   :  { %v3703_v55 = vadd.f32 %v3702_v34, %v3590_v7  ;;  %v3948_v16 = vmax.f32 %v3701_v60, 0.0  ;;  %v7036_v41 = vpop.f32.mrf.mxu0 }
 0x318   :  { %v3706_v5 = vpop.f32.mrf.mxu1 }
 0x319   :  { %v3949_v4 = vmax.f32 %v3703_v55, 0.0  ;;  %v3975_v47 = vpack.c.bf16 %v3948_v16, %v3945_v31  ;;  %v3707_v62 = vadd.f32 %v3706_v5, %v3594_v43  ;;  %v3758_v55 = vadd.f32 %v5179_v39, %v7022_v15  ;;  %v5202_v27 = vpop.f32.mrf.mxu0 }
 0x31a   :  { %v3708_v8 = vpop.f32.mrf.mxu1 }
 0x31b   :  { %v3976_v56 = vpack.c.bf16 %v3949_v4, %v3946_v44  ;;  %v3709_v52 = vadd.f32 %v3708_v8, %v3596_v33  ;;  %v3951_v22 = vmax.f32 %v3707_v62, 0.0  ;;  %v3761_v44 = vadd.f32 %v5182_v20, %v7022_v15 }
 0x31c   :  { %v3710_v10 = vpop.f32.mrf.mxu1  ;;  %v5188_v33 = vadd.f32 %v6981_v51, %v6977_v29 }
 0x31d   :  { %v3711_v63 = vadd.f32 %v3710_v10, %v3598_v40  ;;  %4260 = vmatprep.mubr.bf16.mxu0 %v3976_v56  ;;  %v3952_v3 = vmax.f32 %v3709_v52, 0.0 }
 0x31e   :  { %v3712_v21 = vpop.f32.mrf.mxu1  ;;  %4261 = vmatmul.mubr.bf16.gmra.mxu0 %v3975_v47  ;;  %v5204_v47 = vpop.f32.mrf.mxu0  ;;  %v3769_v62 = vadd.f32 %v5188_v33, %v7022_v15 }
 0x31f   :  { %v3713_v46 = vadd.f32 %v3712_v21, %v3600_v0  ;;  %v3954_v36 = vmax.f32 %v3711_v63, 0.0  ;;  %v3766_v0 = vadd.f32 %v5185_v50, %v7022_v15 }
 0x320   :  { %v5235_v35 = vpop.f32.mrf.mxu1  ;;  %v5205_v32 = vpop.f32.mrf.mxu0 }
 0x321   :  { %v3955_v17 = vmax.f32 %v3713_v46, 0.0  ;;  %v3978_v24 = vpack.c.bf16 %v3954_v36, %v3951_v22  ;;  %v5191_v36 = vadd.f32 %v6993_v11, %v6989_v2 }
 0x322   :  { %v5236_v37 = vpop.f32.mrf.mxu1 }
 0x323   :  { %v3979_v49 = vpack.c.bf16 %v3955_v17, %v3952_v3  ;;  %v5237_v61 = vadd.f32 %v5236_v37, %v5235_v35  ;;  %v5194_v35 = vadd.f32 %v7005_v38, %v7001_v14  ;;  %v5207_v17 = vpop.f32.mrf.mxu0  ;;  %v3774_v37 = vadd.f32 %v5191_v36, %v7022_v15 }
 0x324   :  { %v5238_v23 = vpop.f32.mrf.mxu1 }
 0x325   :  { %4268 = vmatprep.mubr.bf16.mxu0 %v3979_v49  ;;  %v3847_v12 = vadd.f32 %v5237_v61, %v3750_v28  ;;  %v3777_v61 = vadd.f32 %v5194_v35, %v7022_v15  ;;  %v5208_v2 = vpop.f32.mrf.mxu0  ;;  %v5197_v28 = vadd.f32 %v7017_v30, %v7013_v13  ;;  %v5203_v30 = vadd.f32 %v5202_v27, %v7036_v41 }
 0x326   :  { %v5239_v6 = vpop.f32.mrf.mxu1  ;;  %4269 = vmatmul.mubr.bf16.gmra.mxu0 %v3978_v24  ;;  %v5209_v41 = vadd.f32 %v5208_v2, %v5207_v17 }
 0x327   :  { %v5240_v48 = vadd.f32 %v5239_v6, %v5238_v23  ;;  %v3911_v7 = vmax.f32 %v3847_v12, 0.0  ;;  %v5200_v6 = vadd.f32 %v5199_v57, %v7028_v58  ;;  %v5206_v57 = vadd.f32 %v5205_v32, %v5204_v47 }
 0x328   :  { %v5241_v54 = vpop.f32.mrf.mxu1 }
 0x329   :  { %v3850_v59 = vadd.f32 %v5240_v48, %v3753_v26 }
 0x32a   :  { %v5242_v42 = vpop.f32.mrf.mxu1 }
 0x32b   :  { %v3914_v9 = vmax.f32 %v3850_v59, 0.0  ;;  %v5243_v60 = vadd.f32 %v5242_v42, %v5241_v54  ;;  %v5210_v54 = vpop.f32.mrf.mxu0  ;;  %v3782_v59 = vadd.f32 %v5197_v28, %v7022_v15 }
 0x32c   :  { %v5244_v34 = vpop.f32.mrf.mxu1 }
 0x32d   :  { %v3959_v16 = vpack.c.bf16 %v3914_v9, %v3911_v7  ;;  %v3855_v4 = vadd.f32 %v5243_v60, %v3758_v55  ;;  %v3785_v7 = vadd.f32 %v5200_v6, %v7022_v15 }
 0x32e   :  { %v5245_v5 = vpop.f32.mrf.mxu1 }
 0x32f   :  { %v5246_v31 = vadd.f32 %v5245_v5, %v5244_v34  ;;  %5395 = vmatprep.mubr.bf16.mxu1 %v3959_v16  ;;  %v3917_v40 = vmax.f32 %v3855_v4, 0.0  ;;  %v5211_v34 = vpop.f32.mrf.mxu0 }
 0x330   :  { %v5247_v25 = vpop.f32.mrf.mxu1  ;;  %v5212_v47 = vadd.f32 %v5211_v34, %v5210_v54  ;;  %v6028_v54 = vld [vmem:[#allocation11 + $0x30] sm:$0xff]  }
 0x331   :  { %v3858_v18 = vadd.f32 %v5246_v31, %v3761_v44  ;;  %v5213_v4 = vpop.f32.mrf.mxu0 }
 0x332   :  { %v5248_v8 = vpop.f32.mrf.mxu1  ;;  %v3801_v36 = vadd.f32 %v5212_v47, %v7022_v15  ;;  %v7071_v47 = vld [vmem:[%s7106_s6] ss:$0 sm:$0xff] }
 0x333   :  { %v3920_v56 = vmax.f32 %v3858_v18, 0.0  ;;  %v5249_v43 = vadd.f32 %v5248_v8, %v5247_v25  ;;  %v3790_v25 = vadd.f32 %v5203_v30, %v7022_v15  ;;  %v3793_v8 = vadd.f32 %v5206_v57, %v7022_v15 }
 0x334   :  { %v5250_v10 = vpop.f32.mrf.mxu1 }
 0x335   :  { %v3962_v52 = vpack.c.bf16 %v3920_v56, %v3917_v40  ;;  %v3863_v21 = vadd.f32 %v5249_v43, %v3766_v0  ;;  %v5214_v56 = vpop.f32.mrf.mxu0 }
 0x336   :  { %v5251_v63 = vpop.f32.mrf.mxu1 }
 0x337   :  { %v5252_v46 = vadd.f32 %v5251_v63, %v5250_v10  ;;  %5396 = vmatmul.mubr.bf16.vlgmr.msra.gmra.mxu1 %v3962_v52  ;;  %v3923_v53 = vmax.f32 %v3863_v21, 0.0 }
 0x338   :  { %v5253_v1 = vpop.f32.mrf.mxu1 }
 0x339   :  { %v3866_v29 = vadd.f32 %v5252_v46, %v3769_v62  ;;  %v5216_v62 = vpop.f32.mrf.mxu0  ;;  %v3798_v46 = vadd.f32 %v5209_v41, %v7022_v15 }
 0x33a   :  { %v5254_v51 = vpop.f32.mrf.mxu1 }
 0x33b   :  { %v3926_v45 = vmax.f32 %v3866_v29, 0.0  ;;  %v5255_v3 = vadd.f32 %v5254_v51, %v5253_v1  ;;  %v5217_v35 = vpop.f32.mrf.mxu0 }
 0x33c   :  { %v5256_v22 = vpop.f32.mrf.mxu1 }
 0x33d   :  { %v3965_v19 = vpack.c.bf16 %v3926_v45, %v3923_v53  ;;  %v3871_v24 = vadd.f32 %v5255_v3, %v3774_v37  ;;  %v5215_v45 = vadd.f32 %v5214_v56, %v5213_v4 }
 0x33e   :  { %v5257_v49 = vpop.f32.mrf.mxu1 }
 0x33f   :  { %v5258_v23 = vadd.f32 %v5257_v49, %v5256_v22  ;;  %5399 = vmatprep.mubr.bf16.mxu1 %v3965_v19  ;;  %v3929_v26 = vmax.f32 %v3871_v24, 0.0  ;;  %v5218_v22 = vadd.f32 %v5217_v35, %v5216_v62  ;;  %v3806_v24 = vadd.f32 %v5215_v45, %v7022_v15 }
 0x340   :  { %v5259_v11 = vpop.f32.mrf.mxu1 }
 0x341   :  { %v3874_v14 = vadd.f32 %v5258_v23, %v3777_v61 }
 0x342   :  { %v5260_v38 = vpop.f32.mrf.mxu1 }
 0x343   :  { %v3932_v12 = vmax.f32 %v3874_v14, 0.0  ;;  %v5261_v48 = vadd.f32 %v5260_v38, %v5259_v11  ;;  %v3809_v11 = vadd.f32 %v5218_v22, %v7022_v15  ;;  %v6031_v15 = vld [vmem:[#allocation11 + $0x18] sm:$0xff]  }
 0x344   :  { %v5262_v39 = vpop.f32.mrf.mxu1 }
 0x345   :  { %v3968_v42 = vpack.c.bf16 %v3932_v12, %v3929_v26  ;;  %v3879_v9 = vadd.f32 %v5261_v48, %v3782_v59  ;;  %v6027_v12 = vld [vmem:[#allocation11 + $0x38] sm:$0xff]   ;;  %v6030_v59 = vld [vmem:[#allocation11 + $0x20] sm:$0xff]  }
 0x346   :  { %v5263_v20 = vpop.f32.mrf.mxu1  ;;  %5411 = vmatprep.subr.bf16.mxu1 %v6027_v12 }
 0x347   :  { %v5264_v60 = vadd.f32 %v5263_v20, %v5262_v39  ;;  %5400 = vmatmul.mubr.bf16.gmra.mxu1 %v3968_v42  ;;  %v3935_v16 = vmax.f32 %v3879_v9, 0.0  ;;  %v6029_v39 = vld [vmem:[#allocation11 + $0x28] sm:$0xff]   ;;  %v6032_v42 = vld [vmem:[#allocation11 + $0x10] sm:$0xff]  }
 0x348   :  { %v5265_v13 = vpop.f32.mrf.mxu1  ;;  %5412 = vmatpush3.bf16.msra.mxu1 %v6027_v12  ;;  %v6033_v20 = vld [vmem:[#allocation11 + $0x8] sm:$0xff]  }
 0x349   :  { %v3882_v55 = vadd.f32 %v5264_v60, %v3785_v7  ;;  %5413 = vmatprep.subr.bf16.mxu1 %v6028_v54  ;;  %v6034_v7 = vld [vmem:[#allocation11] sm:$0xff]  }
 0x34a   :  { %v5266_v58 = vpop.f32.mrf.mxu1 }
 0x34b   :  { %v3938_v5 = vmax.f32 %v3882_v55, 0.0  ;;  %v5267_v44 = vadd.f32 %v5266_v58, %v5265_v13 }
 0x34c   :  { %v5268_v31 = vpop.f32.mrf.mxu1  ;;  %5414 = vmatpush3.bf16.msra.mxu1 %v6028_v54 }
 0x34d   :  { %v3971_v50 = vpack.c.bf16 %v3938_v5, %v3935_v16  ;;  %v3887_v33 = vadd.f32 %v5267_v44, %v3790_v25  ;;  %5415 = vmatprep.subr.bf16.mxu1 %v6029_v39 }
 0x34e   :  { %v5269_v18 = vpop.f32.mrf.mxu1 }
 0x34f   :  { %v5270_v40 = vadd.f32 %v5269_v18, %v5268_v31  ;;  %5403 = vmatprep.mubr.bf16.mxu1 %v3971_v50  ;;  %v3941_v0 = vmax.f32 %v3887_v33, 0.0 }
 0x350   :  { %v5271_v43 = vpop.f32.mrf.mxu1  ;;  %5416 = vmatpush3.bf16.msra.mxu1 %v6029_v39 }
 0x351   :  { %v3890_v27 = vadd.f32 %v5270_v40, %v3793_v8  ;;  %5417 = vmatprep.subr.bf16.mxu1 %v6030_v59 }
 0x352   :  { %v5272_v10 = vpop.f32.mrf.mxu1 }
 0x353   :  { %v3944_v52 = vmax.f32 %v3890_v27, 0.0  ;;  %v5273_v63 = vadd.f32 %v5272_v10, %v5271_v43 }
 0x354   :  { %v5274_v21 = vpop.f32.mrf.mxu1  ;;  %5418 = vmatpush3.bf16.msra.mxu1 %v6030_v59 }
 0x355   :  { %v3974_v32 = vpack.c.bf16 %v3944_v52, %v3941_v0  ;;  %v3895_v29 = vadd.f32 %v5273_v63, %v3798_v46  ;;  %5419 = vmatprep.subr.bf16.mxu1 %v6031_v15 }
 0x356   :  { %v5275_v1 = vpop.f32.mrf.mxu1 }
 0x357   :  { %v5276_v51 = vadd.f32 %v5275_v1, %v5274_v21  ;;  %5404 = vmatmul.mubr.bf16.gmra.mxu1 %v3974_v32  ;;  %v3947_v37 = vmax.f32 %v3895_v29, 0.0 }
 0x358   :  { %v5277_v53 = vpop.f32.mrf.mxu1  ;;  %5420 = vmatpush3.bf16.msra.mxu1 %v6031_v15 }
 0x359   :  { %v3898_v3 = vadd.f32 %v5276_v51, %v3801_v36  ;;  %5421 = vmatprep.subr.bf16.mxu1 %v6032_v42 }
 0x35a   :  { %v5278_v17 = vpop.f32.mrf.mxu1 }
 0x35b   :  { %v3950_v19 = vmax.f32 %v3898_v3, 0.0  ;;  %v5279_v49 = vadd.f32 %v5278_v17, %v5277_v53 }
 0x35c   :  { %v5280_v61 = vpop.f32.mrf.mxu1  ;;  %5422 = vmatpush3.bf16.msra.mxu1 %v6032_v42 }
 0x35d   :  { %v3977_v23 = vpack.c.bf16 %v3950_v19, %v3947_v37  ;;  %v3903_v28 = vadd.f32 %v5279_v49, %v3806_v24  ;;  %5423 = vmatprep.subr.bf16.mxu1 %v6033_v20 }
 0x35e   :  { %v5281_v2 = vpop.f32.mrf.mxu1 }
 0x35f   :  { %v5282_v14 = vadd.f32 %v5281_v2, %v5280_v61  ;;  %5407 = vmatprep.mubr.bf16.mxu1 %v3977_v23  ;;  %v3953_v6 = vmax.f32 %v3903_v28, 0.0 }
 0x360   :  { %5424 = vmatpush3.bf16.msra.mxu1 %v6033_v20 }
 0x361   :  { %v3906_v38 = vadd.f32 %v5282_v14, %v3809_v11  ;;  %5425 = vmatprep.subr.bf16.mxu1 %v6034_v7 }
 0x363   :  { %v3956_v26 = vmax.f32 %v3906_v38, 0.0 }
 0x364   :  { %5426 = vmatpush3.bf16.msra.mxu1 %v6034_v7 }
 0x365   :  { %v3980_v48 = vpack.c.bf16 %v3956_v26, %v3953_v6 }
 0x367   :  { %5408 = vmatmul.mubr.bf16.gmra.mxu1 %v3980_v48 }
 0x3ae   :  { %v5299_v9 = vpop.f32.mrf.mxu0 }
 0x3b0   :  { %v5300_v60 = vpop.f32.mrf.mxu0 }
 0x3b1   :  { %v5301_v43 = vadd.f32 %v5300_v60, %v5299_v9 }
 0x3b2   :  { %v5302_v34 = vpop.f32.mrf.mxu0 }
 0x3b3   :  { %v4215_v62 = vadd.f32 %v5301_v43, %v7071_v47 }
 0x3b4   :  { %v5303_v13 = vpop.f32.mrf.mxu0 }
 0x3b5   :  { %v5304_v52 = vadd.f32 %v5303_v13, %v5302_v34 }
 0x3b6   :  { %v5305_v30 = vpop.f32.mrf.mxu0 }
 0x3b7   :  { %v4218_v51 = vadd.f32 %v5304_v52, %v7071_v47 }
 0x3b8   :  { %v5306_v55 = vpop.f32.mrf.mxu0 }
 0x3b9   :  { %v5307_v27 = vadd.f32 %v5306_v55, %v5305_v30 }
 0x3ba   :  { %v5308_v58 = vpop.f32.mrf.mxu0 }
 0x3bb   :  { %v4223_v32 = vadd.f32 %v5307_v27, %v7071_v47 }
 0x3bc   :  { %v5309_v57 = vpop.f32.mrf.mxu0 }
 0x3bd   :  { %v5310_v41 = vadd.f32 %v5309_v57, %v5308_v58 }
 0x3be   :  { %v5311_v16 = vpop.f32.mrf.mxu0 }
 0x3bf   :  { %v4226_v21 = vadd.f32 %v5310_v41, %v7071_v47 }
 0x3c0   :  { %v5312_v5 = vpop.f32.mrf.mxu0 }
 0x3c1   :  { %v5313_v23 = vadd.f32 %v5312_v5, %v5311_v16 }
 0x3c2   :  { %v5314_v44 = vpop.f32.mrf.mxu0 }
 0x3c3   :  { %v4231_v26 = vadd.f32 %v5313_v23, %v7071_v47 }
 0x3c4   :  { %v5315_v4 = vpop.f32.mrf.mxu0 }
 0x3c5   :  { %v5316_v38 = vadd.f32 %v5315_v4, %v5314_v44 }
 0x3c6   :  { %v5317_v31 = vpop.f32.mrf.mxu0 }
 0x3c7   :  { %v4234_v42 = vadd.f32 %v5316_v38, %v7071_v47 }
 0x3c8   :  { %v5318_v25 = vpop.f32.mrf.mxu0 }
 0x3c9   :  { %v5319_v11 = vadd.f32 %v5318_v25, %v5317_v31 }
 0x3ca   :  { %v5320_v50 = vpop.f32.mrf.mxu0 }
 0x3cb   :  { %v4239_v54 = vadd.f32 %v5319_v11, %v7071_v47 }
 0x3cc   :  { %v5321_v18 = vpop.f32.mrf.mxu0 }
 0x3cd   :  { %v5322_v2 = vadd.f32 %v5321_v18, %v5320_v50 }
 0x3ce   :  { %v5323_v8 = vpop.f32.mrf.mxu0 }
 0x3cf   :  { %v4242_v12 = vadd.f32 %v5322_v2, %v7071_v47 }
 0x3d0   :  { %v5324_v33 = vpop.f32.mrf.mxu0 }
 0x3d1   :  { %v5325_v5 = vadd.f32 %v5324_v33, %v5323_v8 }
 0x3d2   :  { %v7064_v40 = vpop.f32.mrf.mxu0 }
 0x3d3   :  { %v4247_v43 = vadd.f32 %v5325_v5, %v7071_v47 }
 0x3d4   :  { %v7066_v56 = vpop.f32.mrf.mxu0 }
 0x3d5   :  { %v5328_v50 = vadd.f32 %v7066_v56, %v7064_v40 }
 0x3d6   :  { %v5329_v10 = vpop.f32.mrf.mxu0 }
 0x3d7   :  { %v4250_v8 = vadd.f32 %v5328_v50, %v7071_v47 }
 0x3d8   :  { %v5330_v46 = vpop.f32.mrf.mxu0 }
 0x3d9   :  { %v5331_v4 = vadd.f32 %v5330_v46, %v5329_v10 }
 0x3da   :  { %v5332_v3 = vpop.f32.mrf.mxu0 }
 0x3dc   :  { %v5333_v61 = vpop.f32.mrf.mxu0 }
 0x3dd   :  { %v5334_v44 = vadd.f32 %v5333_v61, %v5332_v3 }
 0x3de   :  { %v5335_v28 = vpop.f32.mrf.mxu0 }
 0x3df   :  { %v4258_v41 = vadd.f32 %v5334_v44, %v7071_v47 }
 0x3e0   :  { %v5336_v48 = vpop.f32.mrf.mxu0 }
 0x3e2   :  { %v5338_v60 = vpop.f32.mrf.mxu0 }
 0x3e4   :  { %v5339_v57 = vpop.f32.mrf.mxu0 }
 0x3e6   :  { %v5341_v31 = vpop.f32.mrf.mxu0 }
 0x3e8   :  { %v5342_v27 = vpop.f32.mrf.mxu0 }
 0x3ea   :  { %v5344_v46 = vpop.f32.mrf.mxu0 }
 0x3f7   :  { %v5397_v0 = vpop.f32.mrf.mxu1 }
 0x3f8   :  { %v4320_v35 = vadd.f32 %v5397_v0, %v4223_v32  ;;  %v4255_v0 = vadd.f32 %v5331_v4, %v7071_v47 }
 0x3f9   :  { %v4311_v63 = vpop.f32.mrf.mxu1 }
 0x3fa   :  { %v4312_v36 = vadd.f32 %v4311_v63, %v4215_v62  ;;  %v4376_v19 = vmax.f32 %v4320_v35, 0.0  ;;  %v5337_v35 = vadd.f32 %v5336_v48, %v5335_v28 }
 0x3fb   :  { %v5398_v1 = vpop.f32.mrf.mxu1 }
 0x3fc   :  { %v4323_v29 = vadd.f32 %v5398_v1, %v4226_v21  ;;  %v4374_v22 = vmax.f32 %v4312_v36, 0.0 }
 0x3fd   :  { %v4314_v53 = vpop.f32.mrf.mxu1 }
 0x3fe   :  { %v4315_v45 = vadd.f32 %v4314_v53, %v4218_v51  ;;  %v4377_v17 = vmax.f32 %v4323_v29, 0.0  ;;  %v5345_v29 = vpop.f32.mrf.mxu0 }
 0x3ff   :  { %v5346_v53 = vadd.f32 %v5345_v29, %v5344_v46 }
 0x400   :  { %v4375_v37 = vmax.f32 %v4315_v45, 0.0  ;;  %v4391_v24 = vpack.c.bf16 %v4377_v17, %v4376_v19  ;;  %v5343_v45 = vadd.f32 %v5342_v27, %v5341_v31  ;;  %v5340_v17 = vadd.f32 %v5339_v57, %v5338_v60 }
 0x401   :  { %v4274_v19 = vadd.f32 %v5346_v53, %v7071_v47 }
 0x402   :  { %v4390_v49 = vpack.c.bf16 %v4375_v37, %v4374_v22  ;;  %v4263_v37 = vadd.f32 %v5337_v35, %v7071_v47  ;;  %v4266_v2 = vadd.f32 %v5340_v17, %v7071_v47 }
 0x404   :  { %5427 = vmatprep.mubr.bf16.mxu1 %v4390_v49  ;;  %v4271_v49 = vadd.f32 %v5343_v45, %v7071_v47 }
 0x405   :  { %5428 = vmatmul.mubr.bf16.vlgmr.msra.gmra.mxu1 %v4391_v24 }
 0x407   :  { %v5401_v14 = vpop.f32.mrf.mxu1 }
 0x408   :  { %v4336_v20 = vadd.f32 %v5401_v14, %v4239_v54 }
 0x409   :  { %v4327_v6 = vpop.f32.mrf.mxu1 }
 0x40a   :  { %v4328_v59 = vadd.f32 %v4327_v6, %v4231_v26  ;;  %v4380_v55 = vmax.f32 %v4336_v20, 0.0 }
 0x40b   :  { %v5402_v39 = vpop.f32.mrf.mxu1 }
 0x40c   :  { %v4339_v15 = vadd.f32 %v5402_v39, %v4242_v12  ;;  %v4378_v13 = vmax.f32 %v4328_v59, 0.0  ;;  %v5067_v59 = vld [vmem:[%s7108_s8] ss:$0 sm:$0xff]  ;;  %s6257_s8 = smov [#allocation13]  }
 0x40d   :  { %v4330_v7 = vpop.f32.mrf.mxu1  ;;  %s4651_s24 = sshll.u32 %s6257_s8, 4  ;;  %s4652_s24 = int_to_ptr.vmem [resolvable:$true] %s4651_s24 }
 0x40e   :  { %v4331_v9 = vadd.f32 %v4330_v7, %v4234_v42  ;;  %v4381_v34 = vmax.f32 %v4339_v15, 0.0  ;;  %s6212_s1 = scalar_lea.vmem %s4652_s24, 1024  ;;  %p6217_p3 = scmp.lt.s32.totalorder %s4652_s24, %s4652_s24 }
 0x40f   :  { %p6213_p2 = scmp.ne.s32.totalorder %s4652_s24, %s6212_s1  ;;  %p6218_p4 = scmp.lt.s32.totalorder %s6212_s1, %s6212_s1 }
 0x410   :  { %v4379_v30 = vmax.f32 %v4331_v9, 0.0  ;;  %v4393_v16 = vpack.c.bf16 %v4381_v34, %v4380_v55 }
 0x411   :  { %p6219_p5 = por %p6218_p4, %p6217_p3 }
 0x412   :  { %v4392_v58 = vpack.c.bf16 %v4379_v30, %v4378_v13 }
 0x413   :  { %p6220_p6 = pnand %p6219_p5, %p6213_p2 }
 0x414   :  { %5431 = vmatprep.mubr.bf16.mxu1 %v4392_v58 }
 0x415   :  { %5432 = vmatmul.mubr.bf16.gmra.mxu1 %v4393_v16 }
 0x417   :  { %v5405_v25 = vpop.f32.mrf.mxu1 }
 0x418   :  { %v4352_v33 = vadd.f32 %v5405_v25, %v4255_v0 }
 0x419   :  { %v4343_v18 = vpop.f32.mrf.mxu1 }
 0x41a   :  { %v4344_v63 = vadd.f32 %v4343_v18, %v4247_v43  ;;  %v4384_v56 = vmax.f32 %v4352_v33, 0.0 }
 0x41b   :  { %v5406_v52 = vpop.f32.mrf.mxu1 }
 0x41c   :  { %v4355_v62 = vadd.f32 %v5406_v52, %v4258_v41  ;;  %v4382_v1 = vmax.f32 %v4344_v63, 0.0 }
 0x41d   :  { %v4346_v10 = vpop.f32.mrf.mxu1 }
 0x41e   :  { %v4347_v21 = vadd.f32 %v4346_v10, %v4250_v8  ;;  %v4385_v32 = vmax.f32 %v4355_v62, 0.0 }
 0x420   :  { %v4383_v40 = vmax.f32 %v4347_v21, 0.0  ;;  %v4395_v51 = vpack.c.bf16 %v4385_v32, %v4384_v56 }
 0x422   :  { %v4394_v36 = vpack.c.bf16 %v4383_v40, %v4382_v1 }
 0x424   :  { %5435 = vmatprep.mubr.bf16.mxu1 %v4394_v36 }
 0x425   :  { %5436 = vmatmul.mubr.bf16.gmra.mxu1 %v4395_v51 }
 0x427   :  { %v5409_v3 = vpop.f32.mrf.mxu1 }
 0x428   :  { %v4368_v11 = vadd.f32 %v5409_v3, %v4271_v49 }
 0x429   :  { %v4359_v22 = vpop.f32.mrf.mxu1 }
 0x42a   :  { %v4360_v24 = vadd.f32 %v4359_v22, %v4263_v37  ;;  %v4388_v12 = vmax.f32 %v4368_v11, 0.0 }
 0x42b   :  { %v5410_v61 = vpop.f32.mrf.mxu1 }
 0x42c   :  { %v4371_v23 = vadd.f32 %v5410_v61, %v4274_v19  ;;  %v4386_v6 = vmax.f32 %v4360_v24, 0.0 }
 0x42d   :  { %v4362_v14 = vpop.f32.mrf.mxu1 }
 0x42e   :  { %v4363_v38 = vadd.f32 %v4362_v14, %v4266_v2  ;;  %v4389_v28 = vmax.f32 %v4371_v23, 0.0 }
 0x430   :  { %v4387_v26 = vmax.f32 %v4363_v38, 0.0  ;;  %v4397_v54 = vpack.c.bf16 %v4389_v28, %v4388_v12 }
 0x432   :  { %v4396_v48 = vpack.c.bf16 %v4387_v26, %v4386_v6 }
 0x434   :  { %5439 = vmatprep.mubr.bf16.mxu1 %v4396_v48 }
 0x435   :  { %5440 = vmatmul.mubr.bf16.gmra.mxu1 %v4397_v54 }
 0x4c5   :  { %v5429_v39 = vpop.f32.mrf.mxu1 }
 0x4c6   :  { %v4512_v20 = vadd.f32 %v5429_v39, %v5067_v59 }
 0x4c7   :  { %v4503_v15 = vpop.f32.mrf.mxu1 }
 0x4c8   :  { %v4504_v9 = vadd.f32 %v5067_v59, %v4503_v15 }
 0x4c9   :  { %v5430_v42 = vpop.f32.mrf.mxu1 }
 0x4ca   :  { %v4515_v47 = vadd.f32 %v5430_v42, %v5067_v59 }
 0x4cb   :  { %v4506_v7 = vpop.f32.mrf.mxu1 }
 0x4cc   :  { %v5116_v60 = vpack.c.bf16 %v4515_v47, %v4512_v20  ;;  %v4507_v34 = vadd.f32 %v5067_v59, %v4506_v7 }
 0x4ce   :  { %5148 = vst [vmem:[#allocation13 + $0x8] sm:$0xff] %v5116_v60   ;;  %v5111_v13 = vpack.c.bf16 %v4507_v34, %v4504_v9 }
 0x4d0   :  { %5112 = vst [vmem:[#allocation13] sm:$0xff] %v5111_v13  }
 0x4d5   :  { %v5433_v30 = vpop.f32.mrf.mxu1 }
 0x4d6   :  { %v4528_v57 = vadd.f32 %v5433_v30, %v5067_v59 }
 0x4d7   :  { %v4519_v55 = vpop.f32.mrf.mxu1 }
 0x4d8   :  { %v4520_v44 = vadd.f32 %v5067_v59, %v4519_v55 }
 0x4d9   :  { %v5434_v58 = vpop.f32.mrf.mxu1 }
 0x4da   :  { %v4531_v16 = vadd.f32 %v5434_v58, %v5067_v59 }
 0x4db   :  { %v4522_v5 = vpop.f32.mrf.mxu1 }
 0x4dc   :  { %v5126_v4 = vpack.c.bf16 %v4531_v16, %v4528_v57  ;;  %v4523_v31 = vadd.f32 %v5067_v59, %v4522_v5 }
 0x4de   :  { %5150 = vst [vmem:[#allocation13 + $0x18] sm:$0xff] %v5126_v4   ;;  %v5121_v25 = vpack.c.bf16 %v4523_v31, %v4520_v44 }
 0x4e0   :  { %5149 = vst [vmem:[#allocation13 + $0x10] sm:$0xff] %v5121_v25  }
 0x4e5   :  { %v5437_v50 = vpop.f32.mrf.mxu1 }
 0x4e6   :  { %v4544_v41 = vadd.f32 %v5437_v50, %v5067_v59 }
 0x4e7   :  { %v4535_v18 = vpop.f32.mrf.mxu1 }
 0x4e8   :  { %v4536_v52 = vadd.f32 %v5067_v59, %v4535_v18 }
 0x4e9   :  { %v5438_v43 = vpop.f32.mrf.mxu1 }
 0x4ea   :  { %v4547_v27 = vadd.f32 %v5438_v43, %v5067_v59 }
 0x4eb   :  { %v4538_v0 = vpop.f32.mrf.mxu1 }
 0x4ec   :  { %v5136_v63 = vpack.c.bf16 %v4547_v27, %v4544_v41  ;;  %v4539_v62 = vadd.f32 %v5067_v59, %v4538_v0 }
 0x4ee   :  { %5152 = vst [vmem:[#allocation13 + $0x28] sm:$0xff] %v5136_v63   ;;  %v5131_v8 = vpack.c.bf16 %v4539_v62, %v4536_v52 }
 0x4f0   :  { %5151 = vst [vmem:[#allocation13 + $0x20] sm:$0xff] %v5131_v8  }
 0x4f5   :  { %v5441_v33 = vpop.f32.mrf.mxu1 }
 0x4f6   :  { %v4560_v46 = vadd.f32 %v5441_v33, %v5067_v59 }
 0x4f7   :  { %v4551_v10 = vpop.f32.mrf.mxu1 }
 0x4f8   :  { %v4552_v40 = vadd.f32 %v5067_v59, %v4551_v10 }
 0x4f9   :  { %v5442_v21 = vpop.f32.mrf.mxu1 }
 0x4fa   :  { %v4563_v32 = vadd.f32 %v5442_v21, %v5067_v59 }
 0x4fb   :  { %v4554_v1 = vpop.f32.mrf.mxu1 }
 0x4fc   :  { %v5146_v56 = vpack.c.bf16 %v4563_v32, %v4560_v46  ;;  %v4555_v36 = vadd.f32 %v5067_v59, %v4554_v1 }
 0x4fe   :  { %5154 = vst [vmem:[#allocation13 + $0x38] sm:$0xff] %v5146_v56   ;;  %v5141_v29 = vpack.c.bf16 %v4555_v36, %v4552_v40 }
 0x500   :  { %5153 = vst [vmem:[#allocation13 + $0x30] sm:$0xff] %v5141_v29  }
 0x501   :  { %6223 = shalt.err (!%p6220_p6)
}
 0x502   :  { %4657 = dma.vmem_to_hbm [thread:$0]  %s4652_s24, 1024, %s7109_s9, [#allocation4], %s6253_s0, %s6253_s0, %s6254_s15  }
 0x503   :  { %6240 = dma.done.wait [#allocation4], 1024  }
 0x504   :  { %6241 = vsyncadd [#allocation4], 4294966272 }
 0x505   :  { %4661 = vsyncpa [#allocation3], 1 }
 0x506   :  { %4662 = vsyncpa [#allocation6], 1 }
 0x507   :  { %4663 = vsyncpa [#allocation9], 1 }
 0x508   :  { %4664 = vsyncpa [#allocation12], 1 }
 0x509   :  { %4665 = vsyncpa [#allocation4], 1 }

</bundles_post_ra>
